<compile_context>
chip_gen: v7x
topology: tpu7x:2x2x1
jax: 0.10.0
libtpu: 0.0.40
codegen_flags: <defaults>
</compile_context>

<pallas_src>
import numpy as np

import jax
import jax.numpy as jnp
from jax import lax
from jax.experimental import pallas as pl
from jax.experimental.pallas import tpu as pltpu


# ----------------------------------------------------------------------------
# Host-side (one-time) weight preprocessing helpers
# ----------------------------------------------------------------------------
def _make_bigw(w_oihw, W):
    """Banded conv matrices: [3, W*Cin, W*Cout], one per kernel row (di)."""
    w = np.asarray(w_oihw, np.float32)          # [Cout, Cin, 3, 3]
    cout, cin = w.shape[0], w.shape[1]
    bw = np.zeros((3, W * cin, W * cout), np.float32)
    for di in range(3):
        for j in range(W):
            for dj in range(3):
                jp = j + dj - 1
                if 0 <= jp < W:
                    bw[di, jp * cin:(jp + 1) * cin, j * cout:(j + 1) * cout] = \
                        w[:, :, di, dj].T
    return bw


def _make_lanesel(W, C):
    """Even-column-group selector [W*C, (W//2)*C] for the 2x2 pool compaction."""
    ls = np.zeros((W * C, (W // 2) * C), np.float32)
    for jo in range(W // 2):
        for c in range(C):
            ls[(2 * jo) * C + c, jo * C + c] = 1.0
    return ls


def _lane_tile(v, W):
    """Per-channel vector -> per-lane vector of length W*C for (j, c) lanes."""
    return np.tile(np.asarray(v, np.float32), W)


def _bn_fold(conv_bias, bn, W, eps=1e-5):
    """Fold conv bias + eval-mode BatchNorm into per-lane scale / shift."""
    g, b, m, v = (np.asarray(t, np.float32) for t in bn)
    s = g / np.sqrt(v + eps)
    t = (np.asarray(conv_bias, np.float32) - m) * s + b
    return _lane_tile(s, W), _lane_tile(t, W)


# ----------------------------------------------------------------------------
# Synthetic parameters (PyTorch-layout) — deterministic, no checkpoint
# ----------------------------------------------------------------------------
def init_params(key):
    ks = iter(jax.random.split(key, 8))

    def conv_p(cout, cin, scale=0.1):
        w = scale * jax.random.normal(next(ks), (cout, cin, 3, 3), jnp.float32)
        return w, jnp.zeros((cout,), jnp.float32)

    def bn_p(c):  # gamma, beta, running_mean, running_var (PyTorch defaults)
        return (jnp.ones((c,), jnp.float32), jnp.zeros((c,), jnp.float32),
                jnp.zeros((c,), jnp.float32), jnp.ones((c,), jnp.float32))

    p = {}
    p["w1"], p["b1"] = conv_p(8, 4)
    p["w1_1"], p["b1_1"] = conv_p(8, 8)
    p["bn1"] = bn_p(8)
    p["w2"], p["b2"] = conv_p(16, 8)
    p["bn2"] = bn_p(16)
    p["w3"], p["b3"] = conv_p(32, 16)
    p["bn3"] = bn_p(32)
    p["w4"], p["b4"] = conv_p(64, 32)
    p["bn4"] = bn_p(64)
    p["fc_w"] = 0.01 * jax.random.normal(next(ks), (64, 512), jnp.float32)
    p["fc_b"] = jnp.zeros((512,), jnp.float32)
    return p


def pack_params(p):
    """One-time layout transform of the weights for the fused kernel."""
    bf = jnp.bfloat16
    w1 = jnp.asarray(_make_bigw(p["w1"], 16)).astype(bf)      # [3,  64, 128]
    w11 = jnp.asarray(_make_bigw(p["w1_1"], 16)).astype(bf)   # [3, 128, 128]
    w2 = jnp.asarray(_make_bigw(p["w2"], 8)).astype(bf)       # [3,  64, 128]
    w3 = jnp.asarray(_make_bigw(p["w3"], 4)).astype(bf)       # [3,  64, 128]
    w4 = jnp.asarray(_make_bigw(p["w4"], 2)).astype(bf)       # [3,  64, 128]

    ls = np.stack([_make_lanesel(16, 8), _make_lanesel(8, 16),
                   _make_lanesel(4, 32), _make_lanesel(2, 64)])  # [4,128,64]
    ls = jnp.asarray(ls).astype(bf)

    fcw = jnp.asarray(p["fc_w"]).astype(bf)                   # [64, 512]

    # All small per-lane constants packed into one (8,128)-friendly f32 array.
    consts = np.zeros((16, 512), np.float32)
    consts[0, :128] = _lane_tile(p["b1"], 16)                           # conv1 bias
    s, t = _bn_fold(p["b1_1"], p["bn1"], 16); consts[1, :128] = s; consts[2, :128] = t
    s, t = _bn_fold(p["b2"],   p["bn2"],  8); consts[3, :128] = s; consts[4, :128] = t
    s, t = _bn_fold(p["b3"],   p["bn3"],  4); consts[5, :128] = s; consts[6, :128] = t
    s, t = _bn_fold(p["b4"],   p["bn4"],  2); consts[7, :128] = s; consts[8, :128] = t
    consts[9, :512] = np.asarray(p["fc_b"], np.float32)                 # fc bias
    consts = jnp.asarray(consts)

    return (w1, w11, w2, w3, w4, ls, fcw, consts)


# ----------------------------------------------------------------------------
# The single fused Pallas kernel (TB images per grid step)
# ----------------------------------------------------------------------------
def _basemodel_kernel(x_ref, w1, w11, w2, w3, w4, ls_ref, fcw_ref, c_ref,
                      o_ref, scr_ref):
    f32, bf16 = jnp.float32, jnp.bfloat16

    def conv(x, w_ref, H):
        # x: [M, W*Cin] f32 (M = TB*H); w_ref: [3, W*Cin, W*Cout] bf16.
        M, WC = x.shape
        r = lax.broadcasted_iota(jnp.int32, (M, WC), 0) % H
        # Row shifts via XLU roll + boundary mask (no cross-image bleed).
        xd = jnp.where(r != 0,     pltpu.roll(x, 1,     axis=0), 0.0)   # x[i-1]
        xu = jnp.where(r != H - 1, pltpu.roll(x, M - 1, axis=0), 0.0)   # x[i+1]
        y = jnp.dot(xd.astype(bf16), w_ref[0], preferred_element_type=f32)
        y += jnp.dot(x.astype(bf16),  w_ref[1], preferred_element_type=f32)
        y += jnp.dot(xu.astype(bf16), w_ref[2], preferred_element_type=f32)
        return y

    def elu(y):  # F.elu, alpha=1
        return jnp.where(y > 0, y, jnp.exp(jnp.minimum(y, 0.0)) - 1.0)

    def pool(y, ls, C):
        # 2x2 max pool.  y: [M, 128] f32 -> [M//2, 64] f32.
        M = y.shape[0]
        scr_ref[0:M, :] = y
        rmax = jnp.maximum(scr_ref[pl.ds(0, M // 2, stride=2), :],
                           scr_ref[pl.ds(1, M // 2, stride=2), :])
        lmax = jnp.maximum(rmax, pltpu.roll(rmax, 128 - C, axis=1))
        return jnp.dot(lmax.astype(bf16), ls, preferred_element_type=f32)

    h = x_ref[...]                                            # [TB*16, 64]
    h = conv(h, w1, 16) + c_ref[0:1, 0:128]                   # conv1 (+bias)
    h = conv(h, w11, 16)                                      # conv1_1
    h = elu(h * c_ref[1:2, 0:128] + c_ref[2:3, 0:128])        # bn1 + ELU
    h = pool(h, ls_ref[0], 8)                                 # max1 -> [TB*8, 64]
    h = conv(h, w2, 8)                                        # conv2
    h = elu(h * c_ref[3:4, 0:128] + c_ref[4:5, 0:128])        # bn2 + ELU
    h = pool(h, ls_ref[1], 16)                                # max2 -> [TB*4, 64]
    h = conv(h, w3, 4)                                        # conv3
    h = elu(h * c_ref[5:6, 0:128] + c_ref[6:7, 0:128])        # bn3 + ELU
    h = pool(h, ls_ref[2], 32)                                # max3 -> [TB*2, 64]
    h = conv(h, w4, 2)                                        # conv4
    h = elu(h * c_ref[7:8, 0:128] + c_ref[8:9, 0:128])        # bn4 + ELU
    h = pool(h, ls_ref[3], 64)                                # max4 -> [TB, 64]
    # Dropout(p=0) / eval dropout are identity; flatten is the row layout itself.
    o_ref[...] = (jnp.dot(h.astype(bf16), fcw_ref[...],
                          preferred_element_type=f32)
                  + c_ref[9:10, 0:512])                       # fc -> [TB, 512]


def _round_up(x, m):
    return (x + m - 1) // m * m


def basemodel_forward(x_nchw, packed, tb=128):
    B, C, H, W = x_nchw.shape
    assert (C, H, W) == (4, 16, 16), "synthetic deep() expects 4x16x16 input"

    # Tile size along the batch: multiple of 8, >=128 recommended on v6e/v7x.
    TB = min(_round_up(tb, 8), _round_up(B, 8))
    Bp = _round_up(B, TB)

    # NCHW -> per-image lane-dense rows: row = (image, h), lane = w*C + c.
    xh = jnp.transpose(x_nchw, (0, 2, 3, 1))                  # [B, 16, 16, 4]
    if Bp != B:
        xh = jnp.pad(xh, ((0, Bp - B), (0, 0), (0, 0), (0, 0)))
    x2 = xh.reshape(Bp * H, W * C)                            # [Bp*16, 64]

    def const_spec(a):
        nd = a.ndim
        return pl.BlockSpec(a.shape, lambda b, _nd=nd: (0,) * _nd)

    out = pl.pallas_call(
        _basemodel_kernel,
        grid=(Bp // TB,),
        in_specs=[pl.BlockSpec((TB * H, W * C), lambda b: (b, 0))]
                 + [const_spec(a) for a in packed],
        out_specs=pl.BlockSpec((TB, 512), lambda b: (b, 0)),
        out_shape=jax.ShapeDtypeStruct((Bp, 512), jnp.float32),
        scratch_shapes=[pltpu.VMEM((TB * 16, 128), jnp.float32)],
        compiler_params=pltpu.CompilerParams(
            dimension_semantics=("parallel",)),
    )(x2, *packed)
    return out[:B]


# ----------------------------------------------------------------------------
# Pure-JAX reference (f32, HIGHEST precision) for a numerical sanity check
# ----------------------------------------------------------------------------
def reference_forward(x_nchw, p):
    eps = 1e-5
    hi = lax.Precision.HIGHEST
    x = jnp.transpose(x_nchw, (0, 2, 3, 1))

    def conv(h, w, b):
        wh = jnp.transpose(w, (2, 3, 1, 0))              # OIHW -> HWIO
        y = lax.conv_general_dilated(
            h, wh, window_strides=(1, 1), padding="SAME",
            dimension_numbers=("NHWC", "HWIO", "NHWC"), precision=hi)
        return y + b

    def bn_elu(h, bn):
        g, b, m, v = bn
        y = (h - m) / jnp.sqrt(v + eps) * g + b
        return jnp.where(y > 0, y, jnp.exp(jnp.minimum(y, 0.0)) - 1.0)

    def pool(h):
        n, hh, ww, c = h.shape
        return h.reshape(n, hh // 2, 2, ww // 2, 2, c).max(axis=(2, 4))

    h = conv(x, p["w1"], p["b1"])
    h = conv(h, p["w1_1"], p["b1_1"])
    h = pool(bn_elu(h, p["bn1"]))
    h = pool(bn_elu(conv(h, p["w2"], p["b2"]), p["bn2"]))
    h = pool(bn_elu(conv(h, p["w3"], p["b3"]), p["bn3"]))
    h = pool(bn_elu(conv(h, p["w4"], p["b4"]), p["bn4"]))
    h = h.reshape(h.shape[0], -1)
    return jnp.dot(h, p["fc_w"], precision=hi) + p["fc_b"]


# ----------------------------------------------------------------------------
if __name__ == "__main__":
    key = jax.random.PRNGKey(0)
    kx, kp = jax.random.split(key)

    x = jax.random.normal(kx, (2, 4, 16, 16), jnp.float32)     # NCHW input
    params = init_params(kp)
    packed = pack_params(params)

    fwd = jax.jit(basemodel_forward)
    out = fwd(x, packed)
    jax.block_until_ready(out)

    assert out.shape == (2, 512)

    ref = reference_forward(x, params)
    jax.block_until_ready(ref)
    max_err = float(jnp.max(jnp.abs(out - ref)))
    assert max_err < 5e-2, f"kernel/reference mismatch: {max_err}"

    print("KERNEL_OK")
</pallas_src>

<mosaic_0001>
module attributes {stable_mosaic.version = 11 : i64} {
  func.func @_basemodel_kernel(%arg0: i32, %arg1: memref<128x64xf32, #tpu.memory_space<vmem>>, %arg2: memref<3x64x128xbf16, #tpu.memory_space<vmem>>, %arg3: memref<3x128x128xbf16, #tpu.memory_space<vmem>>, %arg4: memref<3x64x128xbf16, #tpu.memory_space<vmem>>, %arg5: memref<3x64x128xbf16, #tpu.memory_space<vmem>>, %arg6: memref<3x64x128xbf16, #tpu.memory_space<vmem>>, %arg7: memref<4x128x64xbf16, #tpu.memory_space<vmem>>, %arg8: memref<64x512xbf16, #tpu.memory_space<vmem>>, %arg9: memref<16x512xf32, #tpu.memory_space<vmem>>, %arg10: memref<8x512xf32, #tpu.memory_space<vmem>>, %arg11: memref<128x128xf32, #tpu.memory_space<vmem>>) attributes {dimension_semantics = [#tpu.dimension_semantics<parallel>], iteration_bounds = array<i64: 1>, scalar_prefetch = 0 : i64, scratch_operands = 1 : i64, tpu.core_type = #tpu.core_type<tc>, window_params = [{transform_indices = @transform_0, window_bounds = array<i64: 128, 64>}, {pipeline_mode = #tpu.pipeline_mode<synchronous>, transform_indices = @transform_1, window_bounds = array<i64: 3, 64, 128>}, {pipeline_mode = #tpu.pipeline_mode<synchronous>, transform_indices = @transform_2, window_bounds = array<i64: 3, 128, 128>}, {pipeline_mode = #tpu.pipeline_mode<synchronous>, transform_indices = @transform_3, window_bounds = array<i64: 3, 64, 128>}, {pipeline_mode = #tpu.pipeline_mode<synchronous>, transform_indices = @transform_4, window_bounds = array<i64: 3, 64, 128>}, {pipeline_mode = #tpu.pipeline_mode<synchronous>, transform_indices = @transform_5, window_bounds = array<i64: 3, 64, 128>}, {pipeline_mode = #tpu.pipeline_mode<synchronous>, transform_indices = @transform_6, window_bounds = array<i64: 4, 128, 64>}, {pipeline_mode = #tpu.pipeline_mode<synchronous>, transform_indices = @transform_7, window_bounds = array<i64: 64, 512>}, {pipeline_mode = #tpu.pipeline_mode<synchronous>, transform_indices = @transform_8, window_bounds = array<i64: 16, 512>}, {transform_indices = @transform_9, window_bounds = array<i64: 8, 512>}]} {
    %c0 = arith.constant 0 : index
    %c0_0 = arith.constant 0 : index
    %0 = vector.load %arg1[%c0, %c0_0] : memref<128x64xf32, #tpu.memory_space<vmem>>, vector<128x64xf32>
    %1 = tpu.iota {dimensions = array<i32: 0>} : vector<128x64xi32>
    %c16_i32 = arith.constant 16 : i32
    %c0_i32 = arith.constant 0 : i32
    %2 = arith.cmpi eq, %c16_i32, %c0_i32 : i32
    %c1_i32 = arith.constant 1 : i32
    %3 = arith.select %2, %c1_i32, %c16_i32 : i32
    %4 = vector.broadcast %3 : i32 to vector<128x64xi32>
    %5 = arith.remsi %1, %4 : vector<128x64xi32>
    %c0_i32_1 = arith.constant 0 : i32
    %6 = vector.broadcast %c0_i32_1 : i32 to vector<128x64xi32>
    %7 = arith.cmpi ne, %5, %6 : vector<128x64xi32>
    %c0_i32_2 = arith.constant 0 : i32
    %8 = vector.broadcast %c0_i32_2 : i32 to vector<128x64xi32>
    %9 = arith.cmpi slt, %5, %8 : vector<128x64xi32>
    %c0_i32_3 = arith.constant 0 : i32
    %10 = arith.cmpi slt, %3, %c0_i32_3 : i32
    %11 = vector.broadcast %10 : i1 to vector<128x64xi1>
    %12 = vector.broadcast %11 : vector<128x64xi1> to vector<128x64xi1>
    %13 = arith.xori %9, %12 : vector<128x64xi1>
    %14 = arith.andi %13, %7 : vector<128x64xi1>
    %15 = vector.broadcast %3 : i32 to vector<128x64xi32>
    %16 = arith.addi %5, %15 : vector<128x64xi32>
    %17 = arith.select %14, %16, %5 : vector<128x64xi1>, vector<128x64xi32>
    %c0_i32_4 = arith.constant 0 : i32
    %18 = vector.broadcast %c0_i32_4 : i32 to vector<128x64xi32>
    %19 = arith.cmpi ne, %17, %18 : vector<128x64xi32>
    %c1_i32_5 = arith.constant 1 : i32
    %20 = tpu.dynamic_rotate %0 by %c1_i32_5 dim 0 : vector<128x64xf32>, i32 -> vector<128x64xf32>
    %cst = arith.constant 0.000000e+00 : f32
    %21 = vector.broadcast %cst : f32 to vector<128x64xf32>
    %22 = arith.select %19, %20, %21 : vector<128x64xi1>, vector<128x64xf32>
    %c15_i32 = arith.constant 15 : i32
    %23 = vector.broadcast %c15_i32 : i32 to vector<128x64xi32>
    %24 = arith.cmpi ne, %17, %23 : vector<128x64xi32>
    %c127_i32 = arith.constant 127 : i32
    %25 = tpu.dynamic_rotate %0 by %c127_i32 dim 0 : vector<128x64xf32>, i32 -> vector<128x64xf32>
    %cst_6 = arith.constant 0.000000e+00 : f32
    %26 = vector.broadcast %cst_6 : f32 to vector<128x64xf32>
    %27 = arith.select %24, %25, %26 : vector<128x64xi1>, vector<128x64xf32>
    %28 = arith.truncf %22 : vector<128x64xf32> to vector<128x64xbf16>
    %c0_7 = arith.constant 0 : index
    %c0_8 = arith.constant 0 : index
    %c0_9 = arith.constant 0 : index
    %29 = vector.load %arg2[%c0_7, %c0_8, %c0_9] : memref<3x64x128xbf16, #tpu.memory_space<vmem>>, vector<1x64x128xbf16>
    %30 = vector.shape_cast %29 : vector<1x64x128xbf16> to vector<64x128xbf16>
    %cst_10 = arith.constant dense<0.000000e+00> : vector<128x128xf32>
    %31 = tpu.matmul %28, %30, %cst_10 {dimension_numbers = #tpu.dot_dimension_numbers<[1], [0], [0], [1], [0, 0, 1, 1], [], []>} : vector<128x64xbf16>, vector<64x128xbf16>, vector<128x128xf32> -> vector<128x128xf32>
    %32 = arith.truncf %0 : vector<128x64xf32> to vector<128x64xbf16>
    %c1 = arith.constant 1 : index
    %c0_11 = arith.constant 0 : index
    %c0_12 = arith.constant 0 : index
    %33 = vector.load %arg2[%c1, %c0_11, %c0_12] : memref<3x64x128xbf16, #tpu.memory_space<vmem>>, vector<1x64x128xbf16>
    %34 = vector.shape_cast %33 : vector<1x64x128xbf16> to vector<64x128xbf16>
    %cst_13 = arith.constant dense<0.000000e+00> : vector<128x128xf32>
    %35 = tpu.matmul %32, %34, %cst_13 {dimension_numbers = #tpu.dot_dimension_numbers<[1], [0], [0], [1], [0, 0, 1, 1], [], []>} : vector<128x64xbf16>, vector<64x128xbf16>, vector<128x128xf32> -> vector<128x128xf32>
    %36 = arith.addf %31, %35 : vector<128x128xf32>
    %37 = arith.truncf %27 : vector<128x64xf32> to vector<128x64xbf16>
    %c2 = arith.constant 2 : index
    %c0_14 = arith.constant 0 : index
    %c0_15 = arith.constant 0 : index
    %38 = vector.load %arg2[%c2, %c0_14, %c0_15] : memref<3x64x128xbf16, #tpu.memory_space<vmem>>, vector<1x64x128xbf16>
    %39 = vector.shape_cast %38 : vector<1x64x128xbf16> to vector<64x128xbf16>
    %cst_16 = arith.constant dense<0.000000e+00> : vector<128x128xf32>
    %40 = tpu.matmul %37, %39, %cst_16 {dimension_numbers = #tpu.dot_dimension_numbers<[1], [0], [0], [1], [0, 0, 1, 1], [], []>} : vector<128x64xbf16>, vector<64x128xbf16>, vector<128x128xf32> -> vector<128x128xf32>
    %41 = arith.addf %36, %40 : vector<128x128xf32>
    %c0_17 = arith.constant 0 : index
    %c0_18 = arith.constant 0 : index
    %42 = vector.load %arg9[%c0_17, %c0_18] : memref<16x512xf32, #tpu.memory_space<vmem>>, vector<1x128xf32>
    %43 = vector.broadcast %42 : vector<1x128xf32> to vector<128x128xf32>
    %44 = arith.addf %41, %43 : vector<128x128xf32>
    %45 = tpu.iota {dimensions = array<i32: 0>} : vector<128x128xi32>
    %c16_i32_19 = arith.constant 16 : i32
    %c0_i32_20 = arith.constant 0 : i32
    %46 = arith.cmpi eq, %c16_i32_19, %c0_i32_20 : i32
    %c1_i32_21 = arith.constant 1 : i32
    %47 = arith.select %46, %c1_i32_21, %c16_i32_19 : i32
    %48 = vector.broadcast %47 : i32 to vector<128x128xi32>
    %49 = arith.remsi %45, %48 : vector<128x128xi32>
    %c0_i32_22 = arith.constant 0 : i32
    %50 = vector.broadcast %c0_i32_22 : i32 to vector<128x128xi32>
    %51 = arith.cmpi ne, %49, %50 : vector<128x128xi32>
    %c0_i32_23 = arith.constant 0 : i32
    %52 = vector.broadcast %c0_i32_23 : i32 to vector<128x128xi32>
    %53 = arith.cmpi slt, %49, %52 : vector<128x128xi32>
    %c0_i32_24 = arith.constant 0 : i32
    %54 = arith.cmpi slt, %47, %c0_i32_24 : i32
    %55 = vector.broadcast %54 : i1 to vector<128x128xi1>
    %56 = vector.broadcast %55 : vector<128x128xi1> to vector<128x128xi1>
    %57 = arith.xori %53, %56 : vector<128x128xi1>
    %58 = arith.andi %57, %51 : vector<128x128xi1>
    %59 = vector.broadcast %47 : i32 to vector<128x128xi32>
    %60 = arith.addi %49, %59 : vector<128x128xi32>
    %61 = arith.select %58, %60, %49 : vector<128x128xi1>, vector<128x128xi32>
    %c0_i32_25 = arith.constant 0 : i32
    %62 = vector.broadcast %c0_i32_25 : i32 to vector<128x128xi32>
    %63 = arith.cmpi ne, %61, %62 : vector<128x128xi32>
    %c1_i32_26 = arith.constant 1 : i32
    %64 = tpu.dynamic_rotate %44 by %c1_i32_26 dim 0 : vector<128x128xf32>, i32 -> vector<128x128xf32>
    %cst_27 = arith.constant 0.000000e+00 : f32
    %65 = vector.broadcast %cst_27 : f32 to vector<128x128xf32>
    %66 = arith.select %63, %64, %65 : vector<128x128xi1>, vector<128x128xf32>
    %c15_i32_28 = arith.constant 15 : i32
    %67 = vector.broadcast %c15_i32_28 : i32 to vector<128x128xi32>
    %68 = arith.cmpi ne, %61, %67 : vector<128x128xi32>
    %c127_i32_29 = arith.constant 127 : i32
    %69 = tpu.dynamic_rotate %44 by %c127_i32_29 dim 0 : vector<128x128xf32>, i32 -> vector<128x128xf32>
    %cst_30 = arith.constant 0.000000e+00 : f32
    %70 = vector.broadcast %cst_30 : f32 to vector<128x128xf32>
    %71 = arith.select %68, %69, %70 : vector<128x128xi1>, vector<128x128xf32>
    %72 = arith.truncf %66 : vector<128x128xf32> to vector<128x128xbf16>
    %c0_31 = arith.constant 0 : index
    %c0_32 = arith.constant 0 : index
    %c0_33 = arith.constant 0 : index
    %73 = vector.load %arg3[%c0_31, %c0_32, %c0_33] : memref<3x128x128xbf16, #tpu.memory_space<vmem>>, vector<1x128x128xbf16>
    %74 = vector.shape_cast %73 : vector<1x128x128xbf16> to vector<128x128xbf16>
    %cst_34 = arith.constant dense<0.000000e+00> : vector<128x128xf32>
    %75 = tpu.matmul %72, %74, %cst_34 {dimension_numbers = #tpu.dot_dimension_numbers<[1], [0], [0], [1], [0, 0, 1, 1], [], []>} : vector<128x128xbf16>, vector<128x128xbf16>, vector<128x128xf32> -> vector<128x128xf32>
    %76 = arith.truncf %44 : vector<128x128xf32> to vector<128x128xbf16>
    %c1_35 = arith.constant 1 : index
    %c0_36 = arith.constant 0 : index
    %c0_37 = arith.constant 0 : index
    %77 = vector.load %arg3[%c1_35, %c0_36, %c0_37] : memref<3x128x128xbf16, #tpu.memory_space<vmem>>, vector<1x128x128xbf16>
    %78 = vector.shape_cast %77 : vector<1x128x128xbf16> to vector<128x128xbf16>
    %cst_38 = arith.constant dense<0.000000e+00> : vector<128x128xf32>
    %79 = tpu.matmul %76, %78, %cst_38 {dimension_numbers = #tpu.dot_dimension_numbers<[1], [0], [0], [1], [0, 0, 1, 1], [], []>} : vector<128x128xbf16>, vector<128x128xbf16>, vector<128x128xf32> -> vector<128x128xf32>
    %80 = arith.addf %75, %79 : vector<128x128xf32>
    %81 = arith.truncf %71 : vector<128x128xf32> to vector<128x128xbf16>
    %c2_39 = arith.constant 2 : index
    %c0_40 = arith.constant 0 : index
    %c0_41 = arith.constant 0 : index
    %82 = vector.load %arg3[%c2_39, %c0_40, %c0_41] : memref<3x128x128xbf16, #tpu.memory_space<vmem>>, vector<1x128x128xbf16>
    %83 = vector.shape_cast %82 : vector<1x128x128xbf16> to vector<128x128xbf16>
    %cst_42 = arith.constant dense<0.000000e+00> : vector<128x128xf32>
    %84 = tpu.matmul %81, %83, %cst_42 {dimension_numbers = #tpu.dot_dimension_numbers<[1], [0], [0], [1], [0, 0, 1, 1], [], []>} : vector<128x128xbf16>, vector<128x128xbf16>, vector<128x128xf32> -> vector<128x128xf32>
    %85 = arith.addf %80, %84 : vector<128x128xf32>
    %c1_43 = arith.constant 1 : index
    %c0_44 = arith.constant 0 : index
    %86 = vector.load %arg9[%c1_43, %c0_44] : memref<16x512xf32, #tpu.memory_space<vmem>>, vector<1x128xf32>
    %87 = vector.broadcast %86 : vector<1x128xf32> to vector<128x128xf32>
    %88 = arith.mulf %85, %87 : vector<128x128xf32>
    %c2_45 = arith.constant 2 : index
    %c0_46 = arith.constant 0 : index
    %89 = vector.load %arg9[%c2_45, %c0_46] : memref<16x512xf32, #tpu.memory_space<vmem>>, vector<1x128xf32>
    %90 = vector.broadcast %89 : vector<1x128xf32> to vector<128x128xf32>
    %91 = arith.addf %88, %90 : vector<128x128xf32>
    %cst_47 = arith.constant 0.000000e+00 : f32
    %92 = vector.broadcast %cst_47 : f32 to vector<128x128xf32>
    %93 = arith.cmpf ogt, %91, %92 : vector<128x128xf32>
    %cst_48 = arith.constant 0.000000e+00 : f32
    %94 = vector.broadcast %cst_48 : f32 to vector<128x128xf32>
    %95 = arith.minimumf %91, %94 : vector<128x128xf32>
    %96 = math.exp %95 : vector<128x128xf32>
    %cst_49 = arith.constant 1.000000e+00 : f32
    %97 = vector.broadcast %cst_49 : f32 to vector<128x128xf32>
    %98 = arith.subf %96, %97 : vector<128x128xf32>
    %99 = arith.select %93, %91, %98 : vector<128x128xi1>, vector<128x128xf32>
    %c0_50 = arith.constant 0 : index
    %c0_51 = arith.constant 0 : index
    %c0_52 = arith.constant 0 : index
    %100 = vector.load %arg7[%c0_50, %c0_51, %c0_52] : memref<4x128x64xbf16, #tpu.memory_space<vmem>>, vector<1x128x64xbf16>
    %101 = vector.shape_cast %100 : vector<1x128x64xbf16> to vector<128x64xbf16>
    %c0_53 = arith.constant 0 : index
    %c0_54 = arith.constant 0 : index
    %102 = vector.load %arg11[%c0_53, %c0_54] : memref<128x128xf32, #tpu.memory_space<vmem>>, vector<128x128xf32>
    tpu.vector_store %arg11[%c0_53, %c0_54], %99 {strides = array<i32>} : memref<128x128xf32, #tpu.memory_space<vmem>>, vector<128x128xf32>,
    %c0_55 = arith.constant 0 : index
    %c0_56 = arith.constant 0 : index
    %103 = tpu.strided_load %arg11[%c0_55, %c0_56] {strides = array<i32: 2, 1>} : memref<128x128xf32, #tpu.memory_space<vmem>>, vector<64x128xf32>
    %c1_57 = arith.constant 1 : index
    %c0_58 = arith.constant 0 : index
    %104 = tpu.strided_load %arg11[%c1_57, %c0_58] {strides = array<i32: 2, 1>} : memref<128x128xf32, #tpu.memory_space<vmem>>, vector<64x128xf32>
    %105 = arith.maximumf %103, %104 : vector<64x128xf32>
    %c120_i32 = arith.constant 120 : i32
    %106 = tpu.dynamic_rotate %105 by %c120_i32 dim 1 : vector<64x128xf32>, i32 -> vector<64x128xf32>
    %107 = arith.maximumf %105, %106 : vector<64x128xf32>
    %108 = arith.truncf %107 : vector<64x128xf32> to vector<64x128xbf16>
    %cst_59 = arith.constant dense<0.000000e+00> : vector<64x64xf32>
    %109 = tpu.matmul %108, %101, %cst_59 {dimension_numbers = #tpu.dot_dimension_numbers<[1], [0], [0], [1], [0, 0, 1, 1], [], []>} : vector<64x128xbf16>, vector<128x64xbf16>, vector<64x64xf32> -> vector<64x64xf32>
    %110 = tpu.iota {dimensions = array<i32: 0>} : vector<64x64xi32>
    %c8_i32 = arith.constant 8 : i32
    %c0_i32_60 = arith.constant 0 : i32
    %111 = arith.cmpi eq, %c8_i32, %c0_i32_60 : i32
    %c1_i32_61 = arith.constant 1 : i32
    %112 = arith.select %111, %c1_i32_61, %c8_i32 : i32
    %113 = vector.broadcast %112 : i32 to vector<64x64xi32>
    %114 = arith.remsi %110, %113 : vector<64x64xi32>
    %c0_i32_62 = arith.constant 0 : i32
    %115 = vector.broadcast %c0_i32_62 : i32 to vector<64x64xi32>
    %116 = arith.cmpi ne, %114, %115 : vector<64x64xi32>
    %c0_i32_63 = arith.constant 0 : i32
    %117 = vector.broadcast %c0_i32_63 : i32 to vector<64x64xi32>
    %118 = arith.cmpi slt, %114, %117 : vector<64x64xi32>
    %c0_i32_64 = arith.constant 0 : i32
    %119 = arith.cmpi slt, %112, %c0_i32_64 : i32
    %120 = vector.broadcast %119 : i1 to vector<64x64xi1>
    %121 = vector.broadcast %120 : vector<64x64xi1> to vector<64x64xi1>
    %122 = arith.xori %118, %121 : vector<64x64xi1>
    %123 = arith.andi %122, %116 : vector<64x64xi1>
    %124 = vector.broadcast %112 : i32 to vector<64x64xi32>
    %125 = arith.addi %114, %124 : vector<64x64xi32>
    %126 = arith.select %123, %125, %114 : vector<64x64xi1>, vector<64x64xi32>
    %c0_i32_65 = arith.constant 0 : i32
    %127 = vector.broadcast %c0_i32_65 : i32 to vector<64x64xi32>
    %128 = arith.cmpi ne, %126, %127 : vector<64x64xi32>
    %c1_i32_66 = arith.constant 1 : i32
    %129 = tpu.dynamic_rotate %109 by %c1_i32_66 dim 0 : vector<64x64xf32>, i32 -> vector<64x64xf32>
    %cst_67 = arith.constant 0.000000e+00 : f32
    %130 = vector.broadcast %cst_67 : f32 to vector<64x64xf32>
    %131 = arith.select %128, %129, %130 : vector<64x64xi1>, vector<64x64xf32>
    %c7_i32 = arith.constant 7 : i32
    %132 = vector.broadcast %c7_i32 : i32 to vector<64x64xi32>
    %133 = arith.cmpi ne, %126, %132 : vector<64x64xi32>
    %c63_i32 = arith.constant 63 : i32
    %134 = tpu.dynamic_rotate %109 by %c63_i32 dim 0 : vector<64x64xf32>, i32 -> vector<64x64xf32>
    %cst_68 = arith.constant 0.000000e+00 : f32
    %135 = vector.broadcast %cst_68 : f32 to vector<64x64xf32>
    %136 = arith.select %133, %134, %135 : vector<64x64xi1>, vector<64x64xf32>
    %137 = arith.truncf %131 : vector<64x64xf32> to vector<64x64xbf16>
    %c0_69 = arith.constant 0 : index
    %c0_70 = arith.constant 0 : index
    %c0_71 = arith.constant 0 : index
    %138 = vector.load %arg4[%c0_69, %c0_70, %c0_71] : memref<3x64x128xbf16, #tpu.memory_space<vmem>>, vector<1x64x128xbf16>
    %139 = vector.shape_cast %138 : vector<1x64x128xbf16> to vector<64x128xbf16>
    %cst_72 = arith.constant dense<0.000000e+00> : vector<64x128xf32>
    %140 = tpu.matmul %137, %139, %cst_72 {dimension_numbers = #tpu.dot_dimension_numbers<[1], [0], [0], [1], [0, 0, 1, 1], [], []>} : vector<64x64xbf16>, vector<64x128xbf16>, vector<64x128xf32> -> vector<64x128xf32>
    %141 = arith.truncf %109 : vector<64x64xf32> to vector<64x64xbf16>
    %c1_73 = arith.constant 1 : index
    %c0_74 = arith.constant 0 : index
    %c0_75 = arith.constant 0 : index
    %142 = vector.load %arg4[%c1_73, %c0_74, %c0_75] : memref<3x64x128xbf16, #tpu.memory_space<vmem>>, vector<1x64x128xbf16>
    %143 = vector.shape_cast %142 : vector<1x64x128xbf16> to vector<64x128xbf16>
    %cst_76 = arith.constant dense<0.000000e+00> : vector<64x128xf32>
    %144 = tpu.matmul %141, %143, %cst_76 {dimension_numbers = #tpu.dot_dimension_numbers<[1], [0], [0], [1], [0, 0, 1, 1], [], []>} : vector<64x64xbf16>, vector<64x128xbf16>, vector<64x128xf32> -> vector<64x128xf32>
    %145 = arith.addf %140, %144 : vector<64x128xf32>
    %146 = arith.truncf %136 : vector<64x64xf32> to vector<64x64xbf16>
    %c2_77 = arith.constant 2 : index
    %c0_78 = arith.constant 0 : index
    %c0_79 = arith.constant 0 : index
    %147 = vector.load %arg4[%c2_77, %c0_78, %c0_79] : memref<3x64x128xbf16, #tpu.memory_space<vmem>>, vector<1x64x128xbf16>
    %148 = vector.shape_cast %147 : vector<1x64x128xbf16> to vector<64x128xbf16>
    %cst_80 = arith.constant dense<0.000000e+00> : vector<64x128xf32>
    %149 = tpu.matmul %146, %148, %cst_80 {dimension_numbers = #tpu.dot_dimension_numbers<[1], [0], [0], [1], [0, 0, 1, 1], [], []>} : vector<64x64xbf16>, vector<64x128xbf16>, vector<64x128xf32> -> vector<64x128xf32>
    %150 = arith.addf %145, %149 : vector<64x128xf32>
    %c3 = arith.constant 3 : index
    %c0_81 = arith.constant 0 : index
    %151 = vector.load %arg9[%c3, %c0_81] : memref<16x512xf32, #tpu.memory_space<vmem>>, vector<1x128xf32>
    %152 = vector.broadcast %151 : vector<1x128xf32> to vector<64x128xf32>
    %153 = arith.mulf %150, %152 : vector<64x128xf32>
    %c4 = arith.constant 4 : index
    %c0_82 = arith.constant 0 : index
    %154 = vector.load %arg9[%c4, %c0_82] : memref<16x512xf32, #tpu.memory_space<vmem>>, vector<1x128xf32>
    %155 = vector.broadcast %154 : vector<1x128xf32> to vector<64x128xf32>
    %156 = arith.addf %153, %155 : vector<64x128xf32>
    %cst_83 = arith.constant 0.000000e+00 : f32
    %157 = vector.broadcast %cst_83 : f32 to vector<64x128xf32>
    %158 = arith.cmpf ogt, %156, %157 : vector<64x128xf32>
    %cst_84 = arith.constant 0.000000e+00 : f32
    %159 = vector.broadcast %cst_84 : f32 to vector<64x128xf32>
    %160 = arith.minimumf %156, %159 : vector<64x128xf32>
    %161 = math.exp %160 : vector<64x128xf32>
    %cst_85 = arith.constant 1.000000e+00 : f32
    %162 = vector.broadcast %cst_85 : f32 to vector<64x128xf32>
    %163 = arith.subf %161, %162 : vector<64x128xf32>
    %164 = arith.select %158, %156, %163 : vector<64x128xi1>, vector<64x128xf32>
    %c1_86 = arith.constant 1 : index
    %c0_87 = arith.constant 0 : index
    %c0_88 = arith.constant 0 : index
    %165 = vector.load %arg7[%c1_86, %c0_87, %c0_88] : memref<4x128x64xbf16, #tpu.memory_space<vmem>>, vector<1x128x64xbf16>
    %166 = vector.shape_cast %165 : vector<1x128x64xbf16> to vector<128x64xbf16>
    %c0_89 = arith.constant 0 : index
    %c0_90 = arith.constant 0 : index
    %167 = vector.load %arg11[%c0_89, %c0_90] : memref<128x128xf32, #tpu.memory_space<vmem>>, vector<64x128xf32>
    tpu.vector_store %arg11[%c0_89, %c0_90], %164 {strides = array<i32>} : memref<128x128xf32, #tpu.memory_space<vmem>>, vector<64x128xf32>,
    %c0_91 = arith.constant 0 : index
    %c0_92 = arith.constant 0 : index
    %168 = tpu.strided_load %arg11[%c0_91, %c0_92] {strides = array<i32: 2, 1>} : memref<128x128xf32, #tpu.memory_space<vmem>>, vector<32x128xf32>
    %c1_93 = arith.constant 1 : index
    %c0_94 = arith.constant 0 : index
    %169 = tpu.strided_load %arg11[%c1_93, %c0_94] {strides = array<i32: 2, 1>} : memref<128x128xf32, #tpu.memory_space<vmem>>, vector<32x128xf32>
    %170 = arith.maximumf %168, %169 : vector<32x128xf32>
    %c112_i32 = arith.constant 112 : i32
    %171 = tpu.dynamic_rotate %170 by %c112_i32 dim 1 : vector<32x128xf32>, i32 -> vector<32x128xf32>
    %172 = arith.maximumf %170, %171 : vector<32x128xf32>
    %173 = arith.truncf %172 : vector<32x128xf32> to vector<32x128xbf16>
    %cst_95 = arith.constant dense<0.000000e+00> : vector<32x64xf32>
    %174 = tpu.matmul %173, %166, %cst_95 {dimension_numbers = #tpu.dot_dimension_numbers<[1], [0], [0], [1], [0, 0, 1, 1], [], []>} : vector<32x128xbf16>, vector<128x64xbf16>, vector<32x64xf32> -> vector<32x64xf32>
    %175 = tpu.iota {dimensions = array<i32: 0>} : vector<32x64xi32>
    %c4_i32 = arith.constant 4 : i32
    %c0_i32_96 = arith.constant 0 : i32
    %176 = arith.cmpi eq, %c4_i32, %c0_i32_96 : i32
    %c1_i32_97 = arith.constant 1 : i32
    %177 = arith.select %176, %c1_i32_97, %c4_i32 : i32
    %178 = vector.broadcast %177 : i32 to vector<32x64xi32>
    %179 = arith.remsi %175, %178 : vector<32x64xi32>
    %c0_i32_98 = arith.constant 0 : i32
    %180 = vector.broadcast %c0_i32_98 : i32 to vector<32x64xi32>
    %181 = arith.cmpi ne, %179, %180 : vector<32x64xi32>
    %c0_i32_99 = arith.constant 0 : i32
    %182 = vector.broadcast %c0_i32_99 : i32 to vector<32x64xi32>
    %183 = arith.cmpi slt, %179, %182 : vector<32x64xi32>
    %c0_i32_100 = arith.constant 0 : i32
    %184 = arith.cmpi slt, %177, %c0_i32_100 : i32
    %185 = vector.broadcast %184 : i1 to vector<32x64xi1>
    %186 = vector.broadcast %185 : vector<32x64xi1> to vector<32x64xi1>
    %187 = arith.xori %183, %186 : vector<32x64xi1>
    %188 = arith.andi %187, %181 : vector<32x64xi1>
    %189 = vector.broadcast %177 : i32 to vector<32x64xi32>
    %190 = arith.addi %179, %189 : vector<32x64xi32>
    %191 = arith.select %188, %190, %179 : vector<32x64xi1>, vector<32x64xi32>
    %c0_i32_101 = arith.constant 0 : i32
    %192 = vector.broadcast %c0_i32_101 : i32 to vector<32x64xi32>
    %193 = arith.cmpi ne, %191, %192 : vector<32x64xi32>
    %c1_i32_102 = arith.constant 1 : i32
    %194 = tpu.dynamic_rotate %174 by %c1_i32_102 dim 0 : vector<32x64xf32>, i32 -> vector<32x64xf32>
    %cst_103 = arith.constant 0.000000e+00 : f32
    %195 = vector.broadcast %cst_103 : f32 to vector<32x64xf32>
    %196 = arith.select %193, %194, %195 : vector<32x64xi1>, vector<32x64xf32>
    %c3_i32 = arith.constant 3 : i32
    %197 = vector.broadcast %c3_i32 : i32 to vector<32x64xi32>
    %198 = arith.cmpi ne, %191, %197 : vector<32x64xi32>
    %c31_i32 = arith.constant 31 : i32
    %199 = tpu.dynamic_rotate %174 by %c31_i32 dim 0 : vector<32x64xf32>, i32 -> vector<32x64xf32>
    %cst_104 = arith.constant 0.000000e+00 : f32
    %200 = vector.broadcast %cst_104 : f32 to vector<32x64xf32>
    %201 = arith.select %198, %199, %200 : vector<32x64xi1>, vector<32x64xf32>
    %202 = arith.truncf %196 : vector<32x64xf32> to vector<32x64xbf16>
    %c0_105 = arith.constant 0 : index
    %c0_106 = arith.constant 0 : index
    %c0_107 = arith.constant 0 : index
    %203 = vector.load %arg5[%c0_105, %c0_106, %c0_107] : memref<3x64x128xbf16, #tpu.memory_space<vmem>>, vector<1x64x128xbf16>
    %204 = vector.shape_cast %203 : vector<1x64x128xbf16> to vector<64x128xbf16>
    %cst_108 = arith.constant dense<0.000000e+00> : vector<32x128xf32>
    %205 = tpu.matmul %202, %204, %cst_108 {dimension_numbers = #tpu.dot_dimension_numbers<[1], [0], [0], [1], [0, 0, 1, 1], [], []>} : vector<32x64xbf16>, vector<64x128xbf16>, vector<32x128xf32> -> vector<32x128xf32>
    %206 = arith.truncf %174 : vector<32x64xf32> to vector<32x64xbf16>
    %c1_109 = arith.constant 1 : index
    %c0_110 = arith.constant 0 : index
    %c0_111 = arith.constant 0 : index
    %207 = vector.load %arg5[%c1_109, %c0_110, %c0_111] : memref<3x64x128xbf16, #tpu.memory_space<vmem>>, vector<1x64x128xbf16>
    %208 = vector.shape_cast %207 : vector<1x64x128xbf16> to vector<64x128xbf16>
    %cst_112 = arith.constant dense<0.000000e+00> : vector<32x128xf32>
    %209 = tpu.matmul %206, %208, %cst_112 {dimension_numbers = #tpu.dot_dimension_numbers<[1], [0], [0], [1], [0, 0, 1, 1], [], []>} : vector<32x64xbf16>, vector<64x128xbf16>, vector<32x128xf32> -> vector<32x128xf32>
    %210 = arith.addf %205, %209 : vector<32x128xf32>
    %211 = arith.truncf %201 : vector<32x64xf32> to vector<32x64xbf16>
    %c2_113 = arith.constant 2 : index
    %c0_114 = arith.constant 0 : index
    %c0_115 = arith.constant 0 : index
    %212 = vector.load %arg5[%c2_113, %c0_114, %c0_115] : memref<3x64x128xbf16, #tpu.memory_space<vmem>>, vector<1x64x128xbf16>
    %213 = vector.shape_cast %212 : vector<1x64x128xbf16> to vector<64x128xbf16>
    %cst_116 = arith.constant dense<0.000000e+00> : vector<32x128xf32>
    %214 = tpu.matmul %211, %213, %cst_116 {dimension_numbers = #tpu.dot_dimension_numbers<[1], [0], [0], [1], [0, 0, 1, 1], [], []>} : vector<32x64xbf16>, vector<64x128xbf16>, vector<32x128xf32> -> vector<32x128xf32>
    %215 = arith.addf %210, %214 : vector<32x128xf32>
    %c5 = arith.constant 5 : index
    %c0_117 = arith.constant 0 : index
    %216 = vector.load %arg9[%c5, %c0_117] : memref<16x512xf32, #tpu.memory_space<vmem>>, vector<1x128xf32>
    %217 = vector.broadcast %216 : vector<1x128xf32> to vector<32x128xf32>
    %218 = arith.mulf %215, %217 : vector<32x128xf32>
    %c6 = arith.constant 6 : index
    %c0_118 = arith.constant 0 : index
    %219 = vector.load %arg9[%c6, %c0_118] : memref<16x512xf32, #tpu.memory_space<vmem>>, vector<1x128xf32>
    %220 = vector.broadcast %219 : vector<1x128xf32> to vector<32x128xf32>
    %221 = arith.addf %218, %220 : vector<32x128xf32>
    %cst_119 = arith.constant 0.000000e+00 : f32
    %222 = vector.broadcast %cst_119 : f32 to vector<32x128xf32>
    %223 = arith.cmpf ogt, %221, %222 : vector<32x128xf32>
    %cst_120 = arith.constant 0.000000e+00 : f32
    %224 = vector.broadcast %cst_120 : f32 to vector<32x128xf32>
    %225 = arith.minimumf %221, %224 : vector<32x128xf32>
    %226 = math.exp %225 : vector<32x128xf32>
    %cst_121 = arith.constant 1.000000e+00 : f32
    %227 = vector.broadcast %cst_121 : f32 to vector<32x128xf32>
    %228 = arith.subf %226, %227 : vector<32x128xf32>
    %229 = arith.select %223, %221, %228 : vector<32x128xi1>, vector<32x128xf32>
    %c2_122 = arith.constant 2 : index
    %c0_123 = arith.constant 0 : index
    %c0_124 = arith.constant 0 : index
    %230 = vector.load %arg7[%c2_122, %c0_123, %c0_124] : memref<4x128x64xbf16, #tpu.memory_space<vmem>>, vector<1x128x64xbf16>
    %231 = vector.shape_cast %230 : vector<1x128x64xbf16> to vector<128x64xbf16>
    %c0_125 = arith.constant 0 : index
    %c0_126 = arith.constant 0 : index
    %232 = vector.load %arg11[%c0_125, %c0_126] : memref<128x128xf32, #tpu.memory_space<vmem>>, vector<32x128xf32>
    tpu.vector_store %arg11[%c0_125, %c0_126], %229 {strides = array<i32>} : memref<128x128xf32, #tpu.memory_space<vmem>>, vector<32x128xf32>,
    %c0_127 = arith.constant 0 : index
    %c0_128 = arith.constant 0 : index
    %233 = tpu.strided_load %arg11[%c0_127, %c0_128] {strides = array<i32: 2, 1>} : memref<128x128xf32, #tpu.memory_space<vmem>>, vector<16x128xf32>
    %c1_129 = arith.constant 1 : index
    %c0_130 = arith.constant 0 : index
    %234 = tpu.strided_load %arg11[%c1_129, %c0_130] {strides = array<i32: 2, 1>} : memref<128x128xf32, #tpu.memory_space<vmem>>, vector<16x128xf32>
    %235 = arith.maximumf %233, %234 : vector<16x128xf32>
    %c96_i32 = arith.constant 96 : i32
    %236 = tpu.dynamic_rotate %235 by %c96_i32 dim 1 : vector<16x128xf32>, i32 -> vector<16x128xf32>
    %237 = arith.maximumf %235, %236 : vector<16x128xf32>
    %238 = arith.truncf %237 : vector<16x128xf32> to vector<16x128xbf16>
    %cst_131 = arith.constant dense<0.000000e+00> : vector<16x64xf32>
    %239 = tpu.matmul %238, %231, %cst_131 {dimension_numbers = #tpu.dot_dimension_numbers<[1], [0], [0], [1], [0, 0, 1, 1], [], []>} : vector<16x128xbf16>, vector<128x64xbf16>, vector<16x64xf32> -> vector<16x64xf32>
    %240 = tpu.iota {dimensions = array<i32: 0>} : vector<16x64xi32>
    %c2_i32 = arith.constant 2 : i32
    %c0_i32_132 = arith.constant 0 : i32
    %241 = arith.cmpi eq, %c2_i32, %c0_i32_132 : i32
    %c1_i32_133 = arith.constant 1 : i32
    %242 = arith.select %241, %c1_i32_133, %c2_i32 : i32
    %243 = vector.broadcast %242 : i32 to vector<16x64xi32>
    %244 = arith.remsi %240, %243 : vector<16x64xi32>
    %c0_i32_134 = arith.constant 0 : i32
    %245 = vector.broadcast %c0_i32_134 : i32 to vector<16x64xi32>
    %246 = arith.cmpi ne, %244, %245 : vector<16x64xi32>
    %c0_i32_135 = arith.constant 0 : i32
    %247 = vector.broadcast %c0_i32_135 : i32 to vector<16x64xi32>
    %248 = arith.cmpi slt, %244, %247 : vector<16x64xi32>
    %c0_i32_136 = arith.constant 0 : i32
    %249 = arith.cmpi slt, %242, %c0_i32_136 : i32
    %250 = vector.broadcast %249 : i1 to vector<16x64xi1>
    %251 = vector.broadcast %250 : vector<16x64xi1> to vector<16x64xi1>
    %252 = arith.xori %248, %251 : vector<16x64xi1>
    %253 = arith.andi %252, %246 : vector<16x64xi1>
    %254 = vector.broadcast %242 : i32 to vector<16x64xi32>
    %255 = arith.addi %244, %254 : vector<16x64xi32>
    %256 = arith.select %253, %255, %244 : vector<16x64xi1>, vector<16x64xi32>
    %c0_i32_137 = arith.constant 0 : i32
    %257 = vector.broadcast %c0_i32_137 : i32 to vector<16x64xi32>
    %258 = arith.cmpi ne, %256, %257 : vector<16x64xi32>
    %c1_i32_138 = arith.constant 1 : i32
    %259 = tpu.dynamic_rotate %239 by %c1_i32_138 dim 0 : vector<16x64xf32>, i32 -> vector<16x64xf32>
    %cst_139 = arith.constant 0.000000e+00 : f32
    %260 = vector.broadcast %cst_139 : f32 to vector<16x64xf32>
    %261 = arith.select %258, %259, %260 : vector<16x64xi1>, vector<16x64xf32>
    %c1_i32_140 = arith.constant 1 : i32
    %262 = vector.broadcast %c1_i32_140 : i32 to vector<16x64xi32>
    %263 = arith.cmpi ne, %256, %262 : vector<16x64xi32>
    %c15_i32_141 = arith.constant 15 : i32
    %264 = tpu.dynamic_rotate %239 by %c15_i32_141 dim 0 : vector<16x64xf32>, i32 -> vector<16x64xf32>
    %cst_142 = arith.constant 0.000000e+00 : f32
    %265 = vector.broadcast %cst_142 : f32 to vector<16x64xf32>
    %266 = arith.select %263, %264, %265 : vector<16x64xi1>, vector<16x64xf32>
    %267 = arith.truncf %261 : vector<16x64xf32> to vector<16x64xbf16>
    %c0_143 = arith.constant 0 : index
    %c0_144 = arith.constant 0 : index
    %c0_145 = arith.constant 0 : index
    %268 = vector.load %arg6[%c0_143, %c0_144, %c0_145] : memref<3x64x128xbf16, #tpu.memory_space<vmem>>, vector<1x64x128xbf16>
    %269 = vector.shape_cast %268 : vector<1x64x128xbf16> to vector<64x128xbf16>
    %cst_146 = arith.constant dense<0.000000e+00> : vector<16x128xf32>
    %270 = tpu.matmul %267, %269, %cst_146 {dimension_numbers = #tpu.dot_dimension_numbers<[1], [0], [0], [1], [0, 0, 1, 1], [], []>} : vector<16x64xbf16>, vector<64x128xbf16>, vector<16x128xf32> -> vector<16x128xf32>
    %271 = arith.truncf %239 : vector<16x64xf32> to vector<16x64xbf16>
    %c1_147 = arith.constant 1 : index
    %c0_148 = arith.constant 0 : index
    %c0_149 = arith.constant 0 : index
    %272 = vector.load %arg6[%c1_147, %c0_148, %c0_149] : memref<3x64x128xbf16, #tpu.memory_space<vmem>>, vector<1x64x128xbf16>
    %273 = vector.shape_cast %272 : vector<1x64x128xbf16> to vector<64x128xbf16>
    %cst_150 = arith.constant dense<0.000000e+00> : vector<16x128xf32>
    %274 = tpu.matmul %271, %273, %cst_150 {dimension_numbers = #tpu.dot_dimension_numbers<[1], [0], [0], [1], [0, 0, 1, 1], [], []>} : vector<16x64xbf16>, vector<64x128xbf16>, vector<16x128xf32> -> vector<16x128xf32>
    %275 = arith.addf %270, %274 : vector<16x128xf32>
    %276 = arith.truncf %266 : vector<16x64xf32> to vector<16x64xbf16>
    %c2_151 = arith.constant 2 : index
    %c0_152 = arith.constant 0 : index
    %c0_153 = arith.constant 0 : index
    %277 = vector.load %arg6[%c2_151, %c0_152, %c0_153] : memref<3x64x128xbf16, #tpu.memory_space<vmem>>, vector<1x64x128xbf16>
    %278 = vector.shape_cast %277 : vector<1x64x128xbf16> to vector<64x128xbf16>
    %cst_154 = arith.constant dense<0.000000e+00> : vector<16x128xf32>
    %279 = tpu.matmul %276, %278, %cst_154 {dimension_numbers = #tpu.dot_dimension_numbers<[1], [0], [0], [1], [0, 0, 1, 1], [], []>} : vector<16x64xbf16>, vector<64x128xbf16>, vector<16x128xf32> -> vector<16x128xf32>
    %280 = arith.addf %275, %279 : vector<16x128xf32>
    %c7 = arith.constant 7 : index
    %c0_155 = arith.constant 0 : index
    %281 = vector.load %arg9[%c7, %c0_155] : memref<16x512xf32, #tpu.memory_space<vmem>>, vector<1x128xf32>
    %282 = vector.broadcast %281 : vector<1x128xf32> to vector<16x128xf32>
    %283 = arith.mulf %280, %282 : vector<16x128xf32>
    %c8 = arith.constant 8 : index
    %c0_156 = arith.constant 0 : index
    %284 = vector.load %arg9[%c8, %c0_156] : memref<16x512xf32, #tpu.memory_space<vmem>>, vector<1x128xf32>
    %285 = vector.broadcast %284 : vector<1x128xf32> to vector<16x128xf32>
    %286 = arith.addf %283, %285 : vector<16x128xf32>
    %cst_157 = arith.constant 0.000000e+00 : f32
    %287 = vector.broadcast %cst_157 : f32 to vector<16x128xf32>
    %288 = arith.cmpf ogt, %286, %287 : vector<16x128xf32>
    %cst_158 = arith.constant 0.000000e+00 : f32
    %289 = vector.broadcast %cst_158 : f32 to vector<16x128xf32>
    %290 = arith.minimumf %286, %289 : vector<16x128xf32>
    %291 = math.exp %290 : vector<16x128xf32>
    %cst_159 = arith.constant 1.000000e+00 : f32
    %292 = vector.broadcast %cst_159 : f32 to vector<16x128xf32>
    %293 = arith.subf %291, %292 : vector<16x128xf32>
    %294 = arith.select %288, %286, %293 : vector<16x128xi1>, vector<16x128xf32>
    %c3_160 = arith.constant 3 : index
    %c0_161 = arith.constant 0 : index
    %c0_162 = arith.constant 0 : index
    %295 = vector.load %arg7[%c3_160, %c0_161, %c0_162] : memref<4x128x64xbf16, #tpu.memory_space<vmem>>, vector<1x128x64xbf16>
    %296 = vector.shape_cast %295 : vector<1x128x64xbf16> to vector<128x64xbf16>
    %c0_163 = arith.constant 0 : index
    %c0_164 = arith.constant 0 : index
    %297 = vector.load %arg11[%c0_163, %c0_164] : memref<128x128xf32, #tpu.memory_space<vmem>>, vector<16x128xf32>
    tpu.vector_store %arg11[%c0_163, %c0_164], %294 {strides = array<i32>} : memref<128x128xf32, #tpu.memory_space<vmem>>, vector<16x128xf32>,
    %c0_165 = arith.constant 0 : index
    %c0_166 = arith.constant 0 : index
    %298 = tpu.strided_load %arg11[%c0_165, %c0_166] {strides = array<i32: 2, 1>} : memref<128x128xf32, #tpu.memory_space<vmem>>, vector<8x128xf32>
    %c1_167 = arith.constant 1 : index
    %c0_168 = arith.constant 0 : index
    %299 = tpu.strided_load %arg11[%c1_167, %c0_168] {strides = array<i32: 2, 1>} : memref<128x128xf32, #tpu.memory_space<vmem>>, vector<8x128xf32>
    %300 = arith.maximumf %298, %299 : vector<8x128xf32>
    %c64_i32 = arith.constant 64 : i32
    %301 = tpu.dynamic_rotate %300 by %c64_i32 dim 1 : vector<8x128xf32>, i32 -> vector<8x128xf32>
    %302 = arith.maximumf %300, %301 : vector<8x128xf32>
    %303 = arith.truncf %302 : vector<8x128xf32> to vector<8x128xbf16>
    %cst_169 = arith.constant dense<0.000000e+00> : vector<8x64xf32>
    %304 = tpu.matmul %303, %296, %cst_169 {dimension_numbers = #tpu.dot_dimension_numbers<[1], [0], [0], [1], [0, 0, 1, 1], [], []>} : vector<8x128xbf16>, vector<128x64xbf16>, vector<8x64xf32> -> vector<8x64xf32>
    %305 = arith.truncf %304 : vector<8x64xf32> to vector<8x64xbf16>
    %c0_170 = arith.constant 0 : index
    %c0_171 = arith.constant 0 : index
    %306 = vector.load %arg8[%c0_170, %c0_171] : memref<64x512xbf16, #tpu.memory_space<vmem>>, vector<64x512xbf16>
    %cst_172 = arith.constant dense<0.000000e+00> : vector<8x512xf32>
    %307 = tpu.matmul %305, %306, %cst_172 {dimension_numbers = #tpu.dot_dimension_numbers<[1], [0], [0], [1], [0, 0, 1, 1], [], []>} : vector<8x64xbf16>, vector<64x512xbf16>, vector<8x512xf32> -> vector<8x512xf32>
    %c9 = arith.constant 9 : index
    %c0_173 = arith.constant 0 : index
    %308 = vector.load %arg9[%c9, %c0_173] : memref<16x512xf32, #tpu.memory_space<vmem>>, vector<1x512xf32>
    %309 = vector.broadcast %308 : vector<1x512xf32> to vector<8x512xf32>
    %310 = arith.addf %307, %309 : vector<8x512xf32>
    %c0_174 = arith.constant 0 : index
    %c0_175 = arith.constant 0 : index
    %311 = vector.load %arg10[%c0_174, %c0_175] : memref<8x512xf32, #tpu.memory_space<vmem>>, vector<8x512xf32>
    tpu.vector_store %arg10[%c0_174, %c0_175], %310 {strides = array<i32>} : memref<8x512xf32, #tpu.memory_space<vmem>>, vector<8x512xf32>,
    return
  }
  func.func @transform_0(%arg0: i32) -> (i32, i32) {
    %c0_i32 = arith.constant 0 : i32
    %c0_i32_0 = arith.constant 0 : i32
    return %arg0, %c0_i32 : i32, i32
  }
  func.func @transform_1(%arg0: i32) -> (i32, i32, i32) {
    %c0_i32 = arith.constant 0 : i32
    %c0_i32_0 = arith.constant 0 : i32
    %c0_i32_1 = arith.constant 0 : i32
    %c0_i32_2 = arith.constant 0 : i32
    return %c0_i32, %c0_i32_0, %c0_i32_1 : i32, i32, i32
  }
  func.func @transform_2(%arg0: i32) -> (i32, i32, i32) {
    %c0_i32 = arith.constant 0 : i32
    %c0_i32_0 = arith.constant 0 : i32
    %c0_i32_1 = arith.constant 0 : i32
    %c0_i32_2 = arith.constant 0 : i32
    return %c0_i32, %c0_i32_0, %c0_i32_1 : i32, i32, i32
  }
  func.func @transform_3(%arg0: i32) -> (i32, i32, i32) {
    %c0_i32 = arith.constant 0 : i32
    %c0_i32_0 = arith.constant 0 : i32
    %c0_i32_1 = arith.constant 0 : i32
    %c0_i32_2 = arith.constant 0 : i32
    return %c0_i32, %c0_i32_0, %c0_i32_1 : i32, i32, i32
  }
  func.func @transform_4(%arg0: i32) -> (i32, i32, i32) {
    %c0_i32 = arith.constant 0 : i32
    %c0_i32_0 = arith.constant 0 : i32
    %c0_i32_1 = arith.constant 0 : i32
    %c0_i32_2 = arith.constant 0 : i32
    return %c0_i32, %c0_i32_0, %c0_i32_1 : i32, i32, i32
  }
  func.func @transform_5(%arg0: i32) -> (i32, i32, i32) {
    %c0_i32 = arith.constant 0 : i32
    %c0_i32_0 = arith.constant 0 : i32
    %c0_i32_1 = arith.constant 0 : i32
    %c0_i32_2 = arith.constant 0 : i32
    return %c0_i32, %c0_i32_0, %c0_i32_1 : i32, i32, i32
  }
  func.func @transform_6(%arg0: i32) -> (i32, i32, i32) {
    %c0_i32 = arith.constant 0 : i32
    %c0_i32_0 = arith.constant 0 : i32
    %c0_i32_1 = arith.constant 0 : i32
    %c0_i32_2 = arith.constant 0 : i32
    return %c0_i32, %c0_i32_0, %c0_i32_1 : i32, i32, i32
  }
  func.func @transform_7(%arg0: i32) -> (i32, i32) {
    %c0_i32 = arith.constant 0 : i32
    %c0_i32_0 = arith.constant 0 : i32
    %c0_i32_1 = arith.constant 0 : i32
    return %c0_i32, %c0_i32_0 : i32, i32
  }
  func.func @transform_8(%arg0: i32) -> (i32, i32) {
    %c0_i32 = arith.constant 0 : i32
    %c0_i32_0 = arith.constant 0 : i32
    %c0_i32_1 = arith.constant 0 : i32
    return %c0_i32, %c0_i32_0 : i32, i32
  }
  func.func @transform_9(%arg0: i32) -> (i32, i32) {
    %c0_i32 = arith.constant 0 : i32
    %c0_i32_0 = arith.constant 0 : i32
    return %arg0, %c0_i32 : i32, i32
  }
}

</mosaic_0001>

<bundles_post_ra>
// kernel: basemodel_forward.1
= control target key start
LH: loop header
LB: loop body
LE: loop exit
PB: predicated region body
PF: predicated region fallthrough
CT: control target
= control target key end

     0   :  { %vm6560_vm0 = vcmask 523264   ;;  %v49_v20 = vlaneseq  ;;  %s4997_s23 = smov 120   ;;  %s4998_s19 = smov 112   ;;  %s6549_s1 = inlined_call_operand.vmem [shape: bf16[3,64,128], index: 1, kind: input, shape index: {}]   ;;  %s6550_s0 = inlined_call_operand.vmem [shape: f32[128,64], index: 0, kind: input, shape index: {}]   ;;  %s6551_s2 = inlined_call_operand.vmem [shape: bf16[3,128,128], index: 2, kind: input, shape index: {}]   ;;  %s6552_s8 = inlined_call_operand.vmem [shape: f32[16,512], index: 8, kind: input, shape index: {}]   ;;  %s6553_s6 = inlined_call_operand.vmem [shape: bf16[4,128,64], index: 6, kind: input, shape index: {}]   ;;  %s6554_s3 = inlined_call_operand.vmem [shape: bf16[3,64,128], index: 3, kind: input, shape index: {}]   ;;  %s6555_s4 = inlined_call_operand.vmem [shape: bf16[3,64,128], index: 4, kind: input, shape index: {}]   ;;  %s6556_s5 = inlined_call_operand.vmem [shape: bf16[3,64,128], index: 5, kind: input, shape index: {}]   ;;  %s6557_s7 = inlined_call_operand.vmem [shape: bf16[64,512], index: 7, kind: input, shape index: {}]   ;;  %s6558_s9 = inlined_call_operand.vmem [shape: f32[8,512], index: 9, kind: output, shape index: {}]  }
   0x1   :  { %v4808_v0 = vld [vmem:[%s6549_s1 + $0x20] sm:$0xff]   ;;  %v4809_v1 = vld [vmem:[%s6549_s1 + $0x28] sm:$0xff]   ;;  %v4810_v2 = vld [vmem:[%s6549_s1 + $0x30] sm:$0xff]   ;;  %s5001_s17 = smov 96   ;;  %s5002_s14 = smov 64  }
   0x2   :  { %4297 = vmatprep.subr.bf16.mxu0 %v4808_v0  ;;  %v5066_v3 = vld [vmem:[%s6550_s0] sm:$0xff]  ;;  %v5071_v4 = vld [vmem:[%s6550_s0 + $0x8] sm:$0xff]  ;;  %v4811_v6 = vld [vmem:[%s6549_s1 + $0x38] sm:$0xff]   ;;  %v5147_v26 = vshrl.u32 %v49_v20, 7 }
   0x3   :  { %4298 = vmatpush3.bf16.msra.mxu0 %v4808_v0  ;;  %v404_v5 = vpack.c.bf16 %v5071_v4, %v5066_v3  ;;  %v5082_v7 = vld [vmem:[%s6550_s0 + $0x10] sm:$0xff]  ;;  %v5087_v8 = vld [vmem:[%s6550_s0 + $0x18] sm:$0xff]  ;;  %v4812_v9 = vld [vmem:[%s6549_s1] sm:$0xff]   ;;  %v274_v32 = vrot.slane %v5066_v3, 7  ;;  %v275_v41 = vrot.slane %v5071_v4, 7 }
   0x4   :  { %4299 = vmatprep.subr.bf16.mxu0 %v4809_v1  ;;  %v5095_v10 = vld [vmem:[%s6550_s0 + $0x20] sm:$0xff]  ;;  %v5100_v11 = vld [vmem:[%s6550_s0 + $0x28] sm:$0xff]  ;;  %v405_v12 = vpack.c.bf16 %v5087_v8, %v5082_v7  ;;  %v5112_v15 = vld [vmem:[%s6550_s0 + $0x30] sm:$0xff]  ;;  %v70_v36 = vand.u32 15, %v5147_v26  ;;  %v5191_v38 = vadd.s32 16, %v5147_v26  ;;  %vm6559_vm1 = vcmp.lt.s32.totalorder %v5147_v26, 1 }
   0x5   :  { %4305 = vmatprep.mubr.msk.bf16.mxu0 %vm6560_vm0, %v404_v5  ;;  %v406_v13 = vpack.c.bf16 %v5100_v11, %v5095_v10  ;;  %v4813_v14 = vld [vmem:[%s6549_s1 + $0x8] sm:$0xff]   ;;  %v5118_v16 = vld [vmem:[%s6550_s0 + $0x38] sm:$0xff]  ;;  %v5124_v17 = vld [vmem:[%s6550_s0 + $0x40] sm:$0xff]  ;;  %v5201_v42 = vadd.s32 32, %v5147_v26  ;;  %v276_v47 = vrot.slane %v5082_v7, 7  ;;  %v278_v48 = vrot.slane %v5095_v10, 7 }
   0x6   :  { %v5129_v18 = vld [vmem:[%s6550_s0 + $0x48] sm:$0xff]  ;;  %v4814_v19 = vld [vmem:[%s6549_s1 + $0x10] sm:$0xff]   ;;  %v4820_v21 = vld [vmem:[%s6551_s2 + $0x40] sm:$0xff]   ;;  %v407_v22 = vpack.c.bf16 %v5118_v16, %v5112_v15  ;;  %vm5203_vm2 = vcmp.ne.s32.totalorder %v70_v36, 0  ;;  %v84_v46 = vand.u32 15, %v5191_v38  ;;  %v305_v50 = vsel %vm6559_vm1, %v274_v32, %v275_v41 }
   0x7   :  { %4300 = vmatpush3.bf16.msra.mxu0 %v4809_v1  ;;  %v4821_v23 = vld [vmem:[%s6551_s2 + $0x48] sm:$0xff]   ;;  %v408_v24 = vpack.c.bf16 %v5129_v18, %v5124_v17  ;;  %4369 = vmatprep.subr.bf16.mxu1 %v4820_v21  ;;  %v4815_v25 = vld [vmem:[%s6549_s1 + $0x18] sm:$0xff]   ;;  %v5152_v27 = vld [vmem:[%s6550_s0 + $0x50] sm:$0xff]  ;;  %6576 = vst [vmem:[#allocation3_spill] sm:$0xff] %v5201_v42  ;;  %v98_v52 = vand.u32 15, %v5201_v42  ;;  %v277_v53 = vrot.slane %v5087_v8, 7  ;;  %v304_v56 = vsel %vm6559_vm1, %v275_v41, %v276_v47 }
   0x8   :  { %4301 = vmatprep.subr.bf16.mxu0 %v4810_v2  ;;  %4370 = vmatpush3.bf16.msra.mxu1 %v4820_v21  ;;  %v5157_v28 = vld [vmem:[%s6550_s0 + $0x58] sm:$0xff]  ;;  %v4822_v29 = vld [vmem:[%s6551_s2 + $0x50] sm:$0xff]   ;;  %v5166_v30 = vld [vmem:[%s6550_s0 + $0x60] sm:$0xff]  ;;  %vm5233_vm3 = vcmp.ne.s32.totalorder %v84_v46, 0  ;;  %v5242_v58 = vadd.s32 48, %v5147_v26  ;;  %v58_v60 = vadd.s32 64, %v5147_v26 }
   0x9   :  { %4371 = vmatprep.subr.bf16.mxu1 %v4821_v23  ;;  %v5172_v31 = vld [vmem:[%s6550_s0 + $0x78] sm:$0xff]  ;;  %v5178_v33 = vld [vmem:[%s6550_s0 + $0x68] sm:$0xff]  ;;  %v5184_v35 = vld [vmem:[%s6549_s1 + $0x40] sm:$0xff]   ;;  %v409_v39 = vpack.c.bf16 %v5157_v28, %v5152_v27  ;;  %v279_v61 = vrot.slane %v5100_v11, 7  ;;  %vm5246_vm4 = vcmp.ne.s32.totalorder %v98_v52, 0  ;;  %v302_v63 = vsel %vm6559_vm1, %v277_v53, %v278_v48 }
   0xa   :  { %v289_v34 = vrot.slane %v5172_v31, 7  ;;  %v4823_v37 = vld [vmem:[%s6551_s2 + $0x58] sm:$0xff]   ;;  %v410_v40 = vpack.c.bf16 %v5178_v33, %v5166_v30  ;;  %v4824_v45 = vld [vmem:[%s6551_s2 + $0x60] sm:$0xff]   ;;  %v5222_v49 = vld [vmem:[%s6550_s0 + $0x70] sm:$0xff]  ;;  %6581 = vst [vmem:[#allocation4_spill] sm:$0xff] %v5242_v58  ;;  %v309_v0 = vsel %vm5233_vm3, %v304_v56, 0.0 }
   0xb   :  { %4302 = vmatpush3.bf16.msra.mxu0 %v4810_v2  ;;  %v4825_v54 = vld [vmem:[%s6551_s2 + $0x68] sm:$0xff]   ;;  %v411_v57 = vpack.c.bf16 %v5172_v31, %v5222_v49  ;;  %v280_v1 = vrot.slane %v5112_v15, 7  ;;  %v282_v2 = vrot.slane %v5124_v17, 7  ;;  %v112_v5 = vand.u32 15, %v5242_v58  ;;  %v4838_v55 = vld [vmem:[%s6551_s2 + $0x90] sm:$0xff]   ;;  %v4839_v62 = vld [vmem:[%s6551_s2 + $0x98] sm:$0xff]  }
   0xc   :  { %4303 = vmatprep.subr.bf16.mxu0 %v4811_v6  ;;  %4372 = vmatpush3.bf16.msra.mxu1 %v4821_v23  ;;  %v306_v44 = vsel %vm6559_vm1, %v289_v34, %v274_v32  ;;  %v283_v21 = vrot.slane %v5129_v18, 7  ;;  %v62_v36 = vadd.s32 96, %v5147_v26  ;;  %v286_v46 = vrot.slane %v5166_v30, 7 }
   0xd   :  { %4373 = vmatprep.subr.bf16.mxu1 %v4822_v29  ;;  %v307_v51 = vsel %vm5203_vm2, %v306_v44, 0.0  ;;  %vm5267_vm5 = vcmp.ne.s32.totalorder %v112_v5, 0  ;;  %v300_v23 = vsel %vm6559_vm1, %v279_v61, %v280_v1  ;;  %v287_v52 = vrot.slane %v5178_v33, 7 }
   0xe   :  { %v388_v59 = vpack.c.bf16 %v305_v50, %v307_v51  ;;  %v297_v41 = vsel %vm6559_vm1, %v282_v2, %v283_v21  ;;  %v285_v50 = vrot.slane %v5157_v28, 7  ;;  %v64_v56 = vadd.s32 112, %v5147_v26 }
   0xf   :  { %4304 = vmatpush3.bf16.msra.mxu0 %v4811_v6  ;;  %v303_v6 = vsel %vm6559_vm1, %v276_v47, %v277_v53  ;;  %v154_v47 = vand.u32 15, %v62_v36  ;;  %vm355_vm9 = vcmp.lt.s32.totalorder %v5147_v26, 7  ;;  %v4842_v53 = vld [vmem:[%s6551_s2 + $0xb0] sm:$0xff]  }
  0x10   :  { %4321 = vmatprep.subr.bf16.mxu0 %v4812_v9  ;;  %4374 = vmatpush3.bf16.msra.mxu1 %v4822_v29  ;;  %v4841_v29 = vld [vmem:[%s6551_s2 + $0xa8] sm:$0xff]  }
  0x11   :  { %4375 = vmatprep.subr.bf16.mxu1 %v4823_v37  ;;  %vm5312_vm8 = vcmp.ne.s32.totalorder %v154_v47, 0 }
  0x12   :  { %4306 = vmatmul.mubr.msk.bf16.vlgmr.msra.gmra.mrb[0].mxu0 %vm6560_vm0, %v405_v12  ;;  %v126_v12 = vand.u32 15, %v58_v60  ;;  %v294_v60 = vsel %vm6559_vm1, %v285_v50, %v286_v46 }
  0x13   :  { %4322 = vmatpush3.bf16.msra.mxu0 %v4812_v9  ;;  %4309 = vmatprep.mubr.msk.bf16.mxu0 %vm6560_vm0, %v406_v13  ;;  %v311_v9 = vsel %vm5246_vm4, %v302_v63, 0.0  ;;  %v301_v13 = vsel %vm6559_vm1, %v278_v48, %v279_v61  ;;  %v5319_v61 = vadd.s32 8, %v5147_v26  ;;  %v319_v5 = vsel %vm5312_vm8, %v294_v60, 0.0 }
  0x14   :  { %4323 = vmatprep.subr.bf16.mxu0 %v4813_v14  ;;  %4376 = vmatpush3.bf16.msra.mxu1 %v4823_v37  ;;  %v390_v20 = vpack.c.bf16 %v301_v13, %v311_v9  ;;  %vm5277_vm6 = vcmp.ne.s32.totalorder %v126_v12, 0  ;;  %v340_v9 = vrot.slane %v5071_v4, 1  ;;  %v341_v12 = vrot.slane %v5082_v7, 1 }
  0x15   :  { %4377 = vmatprep.subr.bf16.mxu1 %v4824_v45  ;;  %6592 = vst [vmem:[#allocation5_spill] sm:$0xff] %v5319_v61  ;;  %v77_v13 = vand.u32 15, %v5319_v61 }
  0x17   :  { %4324 = vmatpush3.bf16.msra.mxu0 %v4813_v14  ;;  %v389_v14 = vpack.c.bf16 %v303_v6, %v309_v0  ;;  %v168_v6 = vand.u32 15, %v64_v56  ;;  %vm5346_vm11 = vcmp.ne.s32.totalorder %v77_v13, 15  ;;  %v347_v56 = vrot.slane %v5124_v17, 1 }
  0x18   :  { %4325 = vmatprep.subr.bf16.mxu0 %v4814_v19  ;;  %4378 = vmatpush3.bf16.msra.mxu1 %v4824_v45  ;;  %v350_v13 = vrot.slane %v5157_v28, 1  ;;  %v353_v28 = vrot.slane %v5222_v49, 1 }
  0x19   :  { %4379 = vmatprep.subr.bf16.mxu1 %v4825_v54  ;;  %vm5340_vm10 = vcmp.ne.s32.totalorder %v168_v6, 0 }
  0x1a   :  { %4310 = vmatmul.mubr.msk.bf16.gmra.mrb[4].mxu0 %vm6560_vm0, %v407_v22  ;;  %v4840_v22 = vld [vmem:[%s6551_s2 + $0xa0] sm:$0xff]  }
  0x1b   :  { %4313 = vmatprep.mubr.msk.bf16.mxu0 %vm6560_vm0, %v408_v24  ;;  %4326 = vmatpush3.bf16.msra.mxu0 %v4814_v19  ;;  %v281_v19 = vrot.slane %v5118_v16, 7  ;;  %v4817_v24 = vld [vmem:[%s6549_s1 + $0x48] sm:$0xff]  }
  0x1c   :  { %4327 = vmatprep.subr.bf16.mxu0 %v4815_v25  ;;  %4380 = vmatpush3.bf16.msra.mxu1 %v4825_v54 }
  0x1d   :  { %v298_v32 = vsel %vm6559_vm1, %v281_v19, %v282_v2  ;;  %v299_v37 = vsel %vm6559_vm1, %v280_v1, %v281_v19  ;;  %v288_v1 = vrot.slane %v5222_v49, 7  ;;  %v293_v2 = vsel %vm6559_vm1, %v286_v46, %v287_v52 }
  0x1e   :  { %v315_v44 = vsel %vm5277_vm6, %v298_v32, 0.0  ;;  %v394_v19 = vpack.c.bf16 %v293_v2, %v319_v5  ;;  %v342_v32 = vrot.slane %v5087_v8, 1 }
  0x1f   :  { %4328 = vmatpush3.bf16.msra.mxu0 %v4815_v25  ;;  %v60_v25 = vadd.s32 80, %v5147_v26  ;;  %v392_v51 = vpack.c.bf16 %v297_v41, %v315_v44  ;;  %v292_v4 = vsel %vm6559_vm1, %v287_v52, %v288_v1  ;;  %v291_v36 = vsel %vm6559_vm1, %v288_v1, %v289_v34 }
  0x20   :  { %4345 = vmatprep.subr.bf16.mxu0 %v5184_v35  ;;  %v344_v44 = vrot.slane %v5100_v11, 1  ;;  %v349_v1 = vrot.slane %v5152_v27, 1 }
  0x21   :  { %v140_v45 = vand.u32 15, %v60_v25  ;;  %v5353_v25 = vadd.s32 40, %v5147_v26 }
  0x22   :  { %4314 = vmatmul.mubr.msk.bf16.gmra.mrb[8].mxu0 %vm6560_vm0, %v409_v39  ;;  %v313_v39 = vsel %vm5267_vm5, %v300_v23, 0.0  ;;  %v360_v49 = vsel %vm355_vm9, %v349_v1, %v350_v13 }
  0x23   :  { %4317 = vmatprep.mubr.msk.bf16.mxu0 %vm6560_vm0, %v410_v40  ;;  %v284_v40 = vrot.slane %v5152_v27, 7  ;;  %v391_v48 = vpack.c.bf16 %v299_v37, %v313_v39  ;;  %vm5302_vm7 = vcmp.ne.s32.totalorder %v140_v45, 0  ;;  %6598 = vst [vmem:[#allocation7_spill] sm:$0xff] %v5353_v25  ;;  %v321_v37 = vsel %vm5340_vm10, %v292_v4, 0.0 }
  0x24   :  { %v345_v45 = vrot.slane %v5112_v15, 1  ;;  %v105_v34 = vand.u32 15, %v5353_v25  ;;  %v59_v15 = vadd.s32 72, %v5147_v26  ;;  %v63_v27 = vadd.s32 104, %v5147_v26 }
  0x25   :  { %v296_v54 = vsel %vm6559_vm1, %v283_v21, %v284_v40  ;;  %v295_v63 = vsel %vm6559_vm1, %v284_v40, %v285_v50  ;;  %v5338_v21 = vadd.s32 24, %v5147_v26  ;;  %v343_v40 = vrot.slane %v5095_v10, 1 }
  0x26   :  { %v317_v0 = vsel %vm5302_vm7, %v296_v54, 0.0  ;;  %vm5384_vm13 = vcmp.ne.s32.totalorder %v105_v34, 15  ;;  %v365_v11 = vsel %vm355_vm9, %v344_v44, %v345_v45  ;;  %v346_v54 = vrot.slane %v5118_v16, 1 }
  0x27   :  { %6593 = vst [vmem:[#allocation6_spill] sm:$0xff] %v5338_v21  ;;  %v91_v39 = vand.u32 15, %v5338_v21  ;;  %v367_v10 = vsel %vm355_vm9, %v342_v32, %v343_v40  ;;  %v377_v60 = vsel %vm5384_vm13, %v365_v11, 0.0  ;;  %v133_v2 = vand.u32 15, %v59_v15 }
  0x28   :  { %v6604_v16 = vmov 0  ;;  %v363_v17 = vsel %vm355_vm9, %v346_v54, %v347_v56  ;;  %v351_v4 = vrot.slane %v5166_v30, 1 }
  0x29   :  { %vm5375_vm12 = vcmp.ne.s32.totalorder %v91_v39, 15  ;;  %vm5413_vm15 = vcmp.ne.s32.totalorder %v133_v2, 15  ;;  %v161_v39 = vand.u32 15, %v63_v27 }
  0x2a   :  { %4318 = vmatmul.mubr.msk.bf16.gmra.mrb[12].mxu0 %vm6560_vm0, %v411_v57  ;;  %v4819_v57 = vld [vmem:[%s6549_s1 + $0x58] sm:$0xff]   ;;  %v375_v52 = vsel %vm5375_vm12, %v367_v10, 0.0  ;;  %v359_v30 = vsel %vm355_vm9, %v350_v13, %v351_v4 }
  0x2b   :  { %4329 = vmatprep.mubr.msk.bf16.mxu0 %vm6560_vm0, %v388_v59  ;;  %v4843_v59 = vld [vmem:[%s6551_s2 + $0xb8] sm:$0xff]  }
  0x32   :  { %4330 = vmatmul.mubr.msk.bf16.vlgmr.msra.gmra.mrb[0].mxu0 %vm6560_vm0, %v389_v14  ;;  %v393_v14 = vpack.c.bf16 %v295_v63, %v317_v0  ;;  %v348_v0 = vrot.slane %v5129_v18, 1 }
  0x33   :  { %4346 = vmatpush3.bf16.msra.mxu0 %v5184_v35  ;;  %4333 = vmatprep.mubr.msk.bf16.mxu0 %vm6560_vm0, %v390_v20  ;;  %v4818_v35 = vld [vmem:[%s6549_s1 + $0x50] sm:$0xff]   ;;  %v339_v20 = vrot.slane %v5066_v3, 1 }
  0x34   :  { %4347 = vmatprep.subr.bf16.mxu0 %v4817_v24  ;;  %v361_v18 = vsel %vm355_vm9, %v348_v0, %v349_v1  ;;  %v4826_v3 = vld [vmem:[%s6551_s2 + $0x70] sm:$0xff]  }
  0x35   :  { %v370_v41 = vsel %vm355_vm9, %v339_v20, %v340_v9  ;;  %4381 = vmatprep.subr.bf16.mxu1 %v4826_v3 }
  0x36   :  { %4382 = vmatpush3.bf16.msra.mxu1 %v4826_v3 }
  0x37   :  { %4348 = vmatpush3.bf16.msra.mxu0 %v4817_v24  ;;  %v369_v24 = vsel %vm355_vm9, %v340_v9, %v341_v12  ;;  %v61_v9 = vadd.s32 88, %v5147_v26 }
  0x38   :  { %4349 = vmatprep.subr.bf16.mxu0 %v4818_v35  ;;  %v373_v8 = vsel %vm5346_vm11, %v369_v24, 0.0  ;;  %v362_v24 = vsel %vm355_vm9, %v347_v56, %v348_v0 }
  0x39   :  { %v712_v46 = vpack.c.bf16 %v373_v8, %v370_v41  ;;  %v6608_v8 = vmov 0 }
  0x3a   :  { %4334 = vmatmul.mubr.msk.bf16.gmra.mrb[4].mxu0 %vm6560_vm0, %v391_v48  ;;  %v5382_v48 = vadd.s32 56, %v5147_v26 }
  0x3b   :  { %4337 = vmatprep.mubr.msk.bf16.mxu0 %vm6560_vm0, %v392_v51  ;;  %4350 = vmatpush3.bf16.msra.mxu0 %v4818_v35  ;;  %v395_v35 = vpack.c.bf16 %v291_v36, %v321_v37  ;;  %v368_v51 = vsel %vm355_vm9, %v341_v12, %v342_v32  ;;  %v6606_v12 = vmov 0  ;;  %v381_v32 = vsel %vm5413_vm15, %v361_v18, 0.0 }
  0x3c   :  { %4351 = vmatprep.subr.bf16.mxu0 %v4819_v57  ;;  %6601 = vst [vmem:[#allocation8_spill] sm:$0xff] %v5382_v48  ;;  %v119_v63 = vand.u32 15, %v5382_v48  ;;  %v713_v5 = vpack.c.bf16 %v375_v52, %v368_v51  ;;  %v6607_v12 = vsel %vm5413_vm15, 4294967295, %v6606_v12  ;;  %v147_v36 = vand.u32 15, %v61_v9 }
  0x3d   :  { %v352_v37 = vrot.slane %v5178_v33, 1  ;;  %v716_v41 = vpack.c.bf16 %v381_v32, %v362_v24  ;;  %vm6612_vm15 = vcmask 523264   ;;  %v6614_v52 = vmov 0 }
  0x3e   :  { %vm5406_vm14 = vcmp.ne.s32.totalorder %v119_v63, 15  ;;  %vm5434_vm1 = vcmp.ne.s32.totalorder %v147_v36, 15  ;;  %v5485_v63 = vld [vmem:[%s6552_s8] ss:$0 sm:$0xff] }
  0x3f   :  { %4352 = vmatpush3.bf16.msra.mxu0 %v4819_v57  ;;  %v366_v57 = vsel %vm355_vm9, %v343_v40, %v344_v44  ;;  %v6605_v16 = vsel %vm5406_vm14, 4294967295, %v6604_v16  ;;  %v6609_v8 = vsel %vm5434_vm1, 4294967295, %v6608_v8  ;;  %v65_v44 = vadd.s32 120, %v5147_v26 }
  0x40   :  { %v714_v6 = vpack.c.bf16 %v377_v60, %v366_v57  ;;  %v357_v33 = vsel %vm355_vm9, %v352_v37, %v353_v28  ;;  %v383_v34 = vsel %vm5434_vm1, %v359_v30, 0.0  ;;  %v4828_v60 = vld [vmem:[%s6551_s2] sm:$0xff]  }
  0x41   :  { %v175_v11 = vand.u32 15, %v65_v44  ;;  %v717_v15 = vpack.c.bf16 %v383_v34, %v360_v49 }
  0x42   :  { %4338 = vmatmul.mubr.msk.bf16.gmra.mrb[8].mxu0 %vm6560_vm0, %v393_v14  ;;  %v364_v14 = vsel %vm355_vm9, %v345_v45, %v346_v54  ;;  %v6610_v45 = vmov 0 }
  0x43   :  { %4341 = vmatprep.mubr.msk.bf16.mxu0 %vm6560_vm0, %v394_v19  ;;  %v379_v19 = vsel %vm5406_vm14, %v363_v17, 0.0  ;;  %vm6613_vm14 = vmmov %vm6612_vm15 }
  0x44   :  { %v715_v40 = vpack.c.bf16 %v379_v19, %v364_v14  ;;  %vm6616_vm1 = vmmov %vm6613_vm14 }
  0x4a   :  { %4342 = vmatmul.mubr.msk.bf16.gmra.mrb[12].mxu0 %vm6560_vm0, %v395_v35  ;;  %v354_v35 = vrot.slane %v5172_v31, 1 }
  0x4b   :  { %4353 = vmatprep.mubr.msk.bf16.mxu0 %vm6560_vm0, %v712_v46  ;;  %v358_v46 = vsel %vm355_vm9, %v351_v4, %v352_v37 }
  0x4c   :  { %v371_v54 = vsel %vm355_vm9, %v354_v35, %v339_v20  ;;  %v356_v31 = vsel %vm355_vm9, %v353_v28, %v354_v35  ;;  %v4827_v20 = vld [vmem:[%s6551_s2 + $0x78] sm:$0xff]  }
  0x4d   :  { %4383 = vmatprep.subr.bf16.mxu1 %v4827_v20 }
  0x4e   :  { %4384 = vmatpush3.bf16.msra.mxu1 %v4827_v20 }
  0x4f   :  { %4401 = vmatprep.subr.bf16.mxu1 %v4828_v60 }
  0x52   :  { %4354 = vmatmul.mubr.msk.bf16.vlgmr.msra.gmra.mrb[0].mxu0 %vm6560_vm0, %v713_v5 }
  0x53   :  { %4357 = vmatprep.mubr.msk.bf16.mxu0 %vm6560_vm0, %v714_v6  ;;  %vm5441_vm0 = vcmp.ne.s32.totalorder %v161_v39, 15 }
  0x54   :  { %v6611_v45 = vsel %vm5441_vm0, 4294967295, %v6610_v45  ;;  %v385_v10 = vsel %vm5441_vm0, %v357_v33, 0.0  ;;  %vm6617_vm0 = vmmov %vm6616_vm1 }
  0x55   :  { %v718_v51 = vpack.c.bf16 %v385_v10, %v358_v46 }
  0x5a   :  { %4358 = vmatmul.mubr.msk.bf16.gmra.mrb[4].mxu0 %vm6612_vm15, %v715_v40  ;;  %vm5458_vm15 = vcmp.ne.s32.totalorder %v175_v11, 15 }
  0x5b   :  { %4361 = vmatprep.mubr.msk.bf16.mxu0 %vm6613_vm14, %v716_v41  ;;  %v6615_v52 = vsel %vm5458_vm15, 4294967295, %v6614_v52  ;;  %v387_v56 = vsel %vm5458_vm15, %v371_v54, 0.0  ;;  %v4829_v41 = vld [vmem:[%s6551_s2 + $0x8] sm:$0xff]  }
  0x5c   :  { %v719_v57 = vpack.c.bf16 %v387_v56, %v356_v31  ;;  %v4830_v56 = vld [vmem:[%s6551_s2 + $0x10] sm:$0xff]  }
  0x62   :  { %4362 = vmatmul.mubr.msk.bf16.gmra.mrb[8].mxu0 %vm6613_vm14, %v717_v15 }
  0x63   :  { %4365 = vmatprep.mubr.msk.bf16.mxu0 %vm6616_vm1, %v718_v51 }
  0x6a   :  { %4366 = vmatmul.mubr.msk.bf16.gmra.mrb[12].mxu0 %vm6617_vm0, %v719_v57  ;;  %vm6618_vm0 = vcmp.lt.s32.totalorder %v5147_v26, 1 }
  0x6b   :  { %vm6619_vm1 = vmmov %vm6618_vm0 }
  0x6c   :  { %vm6620_vm14 = vmmov %vm6618_vm0 }
  0x6d   :  { %vm6623_vm15 = vmmov %vm6618_vm0 }
 0x125   :  { %v4355_v0 = vpop.f32.mrb[0].mxu0 }
 0x126   :  { %v893_v1 = vadd.f32 %v4355_v0, %v5485_v63  ;;  %v811_v2 = vpop.f32.mrb[1].mxu0 }
 0x127   :  { %v5489_v5 = vadd.f32 %v5485_v63, %v811_v2  ;;  %v4356_v6 = vpop.f32.mrb[2].mxu0 }
 0x128   :  { %v894_v17 = vadd.f32 %v4356_v6, %v5485_v63  ;;  %v814_v9 = vpop.f32.mrb[3].mxu0  ;;  %v909_v18 = vrot.slane %v893_v1, 7  ;;  %v957_v27 = vrot.slane %v893_v1, 1 }
 0x129   :  { %v892_v13 = vadd.f32 %v5485_v63, %v814_v9  ;;  %v6567_v14 = vrot.slane %v5489_v5, 7  ;;  %v6566_v32 = vrot.slane %v5489_v5, 1  ;;  %v6628_v61 = vrot.slane %v5489_v5, 7 }
 0x12a   :  { %v910_v19 = vrot.slane %v894_v17, 7  ;;  %v958_v4 = vrot.slane %v894_v17, 1  ;;  %v1028_v24 = vpack.c.bf16 %v894_v17, %v893_v1 }
 0x12b   :  { %v908_v36 = vrot.slane %v892_v13, 7  ;;  %v956_v37 = vrot.slane %v892_v13, 1  ;;  %v1027_v28 = vpack.c.bf16 %v892_v13, %v5489_v5 }
 0x12c   :  { %v5498_v39 = vsel %vm6618_vm0, %v909_v18, %v910_v19  ;;  %v5502_v40 = vsel %vm355_vm9, %v957_v27, %v958_v4 }
 0x12d   :  { %v5509_v30 = vsel %vm6619_vm1, %v908_v36, %v909_v18  ;;  %v4359_v44 = vpop.f32.mrb[4].mxu0  ;;  %4385 = vmatprep.mubr.bf16.mxu1 %v1027_v28  ;;  %v5515_v33 = vsel %vm6620_vm14, %v6567_v14, %v908_v36  ;;  %v5519_v49 = vsel %vm355_vm9, %v956_v37, %v957_v27  ;;  %v5525_v34 = vsel %vm355_vm9, %v6566_v32, %v956_v37  ;;  %vm6621_vm1 = vmmov %vm6618_vm0 }
 0x12e   :  { %v897_v46 = vadd.f32 %v4359_v44, %v5485_v63  ;;  %v827_v10 = vpop.f32.mrb[5].mxu0  ;;  %4386 = vmatmul.mubr.bf16.vlgmr.msra.gmra.mrb[0].mxu1 %v1028_v24  ;;  %v4831_v24 = vld [vmem:[%s6551_s2 + $0x18] sm:$0xff]   ;;  %vm6622_vm14 = vmmov %vm6618_vm0 }
 0x12f   :  { %v895_v15 = vadd.f32 %v5485_v63, %v827_v10  ;;  %v4360_v51 = vpop.f32.mrb[6].mxu0  ;;  %4402 = vmatpush3.bf16.msra.mxu1 %v4828_v60 }
 0x130   :  { %v898_v54 = vadd.f32 %v4360_v51, %v5485_v63  ;;  %v830_v31 = vpop.f32.mrb[7].mxu0  ;;  %4403 = vmatprep.subr.bf16.mxu1 %v4829_v41  ;;  %v913_v57 = vrot.slane %v897_v46, 7  ;;  %v961_v1 = vrot.slane %v897_v46, 1 }
 0x131   :  { %v911_v3 = vrot.slane %v895_v15, 7  ;;  %v959_v20 = vrot.slane %v895_v15, 1  ;;  %v896_v0 = vadd.f32 %v5485_v63, %v830_v31 }
 0x132   :  { %v914_v2 = vrot.slane %v898_v54, 7  ;;  %v962_v6 = vrot.slane %v898_v54, 1  ;;  %v1030_v17 = vpack.c.bf16 %v898_v54, %v897_v46 }
 0x133   :  { %v5540_v60 = vsel %vm355_vm9, %v958_v4, %v959_v20  ;;  %v912_v9 = vrot.slane %v896_v0, 7  ;;  %v960_v18 = vrot.slane %v896_v0, 1  ;;  %4404 = vmatpush3.bf16.msra.mxu1 %v4829_v41  ;;  %v1029_v27 = vpack.c.bf16 %v896_v0, %v895_v15 }
 0x134   :  { %4405 = vmatprep.subr.bf16.mxu1 %v4830_v56  ;;  %v5549_v36 = vsel %vm6618_vm0, %v910_v19, %v911_v3  ;;  %v5553_v4 = vsel %vm6621_vm1, %v913_v57, %v914_v2  ;;  %v5557_v37 = vsel %vm355_vm9, %v961_v1, %v962_v6  ;;  %vm6625_vm1 = vmmov %vm6618_vm0  ;;  %v6640_v23 = vpack.c.bf16 %v5540_v60, %v5502_v40  ;;  %v5807_v40 = vld [vmem:[%s6552_s8 + $0x1] ss:$0 sm:$0xff] }
 0x135   :  { %v4363_v28 = vpop.f32.mrb[8].mxu0  ;;  %4389 = vmatprep.mubr.bf16.mxu1 %v1029_v27  ;;  %v5561_v41 = vsel %vm6622_vm14, %v911_v3, %v912_v9  ;;  %v5565_v44 = vsel %vm6623_vm15, %v912_v9, %v913_v57  ;;  %v5569_v19 = vsel %vm355_vm9, %v960_v18, %v961_v1  ;;  %v5573_v46 = vsel %vm355_vm9, %v959_v20, %v960_v18  ;;  %v4832_v1 = vld [vmem:[%s6551_s2 + $0x20] sm:$0xff]   ;;  %vm6624_vm15 = vmmov %vm6618_vm0 }
 0x136   :  { %v901_v10 = vadd.f32 %v4363_v28, %v5485_v63  ;;  %v843_v15 = vpop.f32.mrb[9].mxu0  ;;  %4390 = vmatmul.mubr.bf16.gmra.mrb[4].mxu1 %v1030_v17  ;;  %vm6626_vm14 = vmmov %vm6618_vm0  ;;  %v6641_v7 = vpack.c.bf16 %v5569_v19, %v5573_v46 }
 0x137   :  { %v899_v57 = vadd.f32 %v5485_v63, %v843_v15  ;;  %v4364_v3 = vpop.f32.mrb[10].mxu0  ;;  %4406 = vmatpush3.bf16.msra.mxu1 %v4830_v56 }
 0x138   :  { %v5584_v20 = vadd.f32 %v4364_v3, %v5485_v63  ;;  %v846_v0 = vpop.f32.mrb[11].mxu0  ;;  %4407 = vmatprep.subr.bf16.mxu1 %v4831_v24  ;;  %v917_v17 = vrot.slane %v901_v10, 7  ;;  %v965_v28 = vrot.slane %v901_v10, 1 }
 0x139   :  { %v915_v9 = vrot.slane %v899_v57, 7  ;;  %v963_v18 = vrot.slane %v899_v57, 1  ;;  %v900_v27 = vadd.f32 %v5485_v63, %v846_v0  ;;  %v4833_v0 = vld [vmem:[%s6551_s2 + $0x28] sm:$0xff]  }
 0x13a   :  { %v918_v31 = vrot.slane %v5584_v20, 7  ;;  %v966_v15 = vrot.slane %v5584_v20, 1  ;;  %v1032_v56 = vpack.c.bf16 %v5584_v20, %v901_v10 }
 0x13b   :  { %v916_v3 = vrot.slane %v900_v27, 7  ;;  %v964_v13 = vrot.slane %v900_v27, 1  ;;  %4408 = vmatpush3.bf16.msra.mxu1 %v4831_v24  ;;  %v1031_v11 = vpack.c.bf16 %v900_v27, %v899_v57  ;;  %v5595_v54 = vsel %vm6624_vm15, %v914_v2, %v915_v9  ;;  %vm6627_vm15 = vmmov %vm6618_vm0 }
 0x13c   :  { %4409 = vmatprep.subr.bf16.mxu1 %v4832_v1  ;;  %v5602_v51 = vsel %vm6618_vm0, %v917_v17, %v918_v31  ;;  %v5606_v10 = vsel %vm355_vm9, %v962_v6, %v963_v18  ;;  %v5610_v24 = vsel %vm355_vm9, %v965_v28, %v966_v15 }
 0x13d   :  { %v4367_v57 = vpop.f32.mrb[12].mxu0  ;;  %4393 = vmatprep.mubr.bf16.mxu1 %v1031_v11  ;;  %v5614_v2 = vsel %vm6625_vm1, %v915_v9, %v916_v3  ;;  %v5618_v20 = vsel %vm6626_vm14, %v916_v3, %v917_v17  ;;  %v5624_v6 = vsel %vm355_vm9, %v964_v13, %v965_v28  ;;  %v5633_v17 = vsel %vm355_vm9, %v963_v18, %v964_v13  ;;  %v4834_v11 = vld [vmem:[%s6551_s2 + $0x30] sm:$0xff]  }
 0x13e   :  { %v905_v35 = vadd.f32 %v4367_v57, %v5485_v63  ;;  %v859_v32 = vpop.f32.mrb[13].mxu0  ;;  %4394 = vmatmul.mubr.bf16.gmra.mrb[8].mxu1 %v1032_v56  ;;  %vm4996_vm1 = vmmov 1   ;;  %v6644_v47 = vpack.c.bf16 %v5606_v10, %v5557_v37  ;;  %v6645_v50 = vpack.c.bf16 %v5624_v6, %v5633_v17 }
 0x13f   :  { %v903_v3 = vadd.f32 %v5485_v63, %v859_v32  ;;  %v4368_v27 = vpop.f32.mrb[14].mxu0  ;;  %4410 = vmatpush3.bf16.msra.mxu1 %v4832_v1  ;;  %vm5652_vm14 = vmpackc.low %vm4996_vm1, %vm5203_vm2 }
 0x140   :  { %v906_v57 = vadd.f32 %v4368_v27, %v5485_v63  ;;  %v862_v56 = vpop.f32.mrb[15].mxu0  ;;  %4411 = vmatprep.subr.bf16.mxu1 %v4833_v0  ;;  %v921_v9 = vrot.slane %v905_v35, 7  ;;  %v969_v18 = vrot.slane %v905_v35, 1  ;;  %vm6632_vm2 = vmmov %vm6618_vm0 }
 0x141   :  { %v919_v14 = vrot.slane %v903_v3, 7  ;;  %v967_v48 = vrot.slane %v903_v3, 1  ;;  %v904_v13 = vadd.f32 %v5485_v63, %v862_v56 }
 0x142   :  { %v922_v32 = vrot.slane %v906_v57, 7  ;;  %v970_v58 = vrot.slane %v906_v57, 1  ;;  %v1034_v1 = vpack.c.bf16 %v906_v57, %v905_v35  ;;  %v4835_v35 = vld [vmem:[%s6551_s2 + $0x38] sm:$0xff]  }
 0x143   :  { %v920_v25 = vrot.slane %v904_v13, 7  ;;  %v968_v42 = vrot.slane %v904_v13, 1  ;;  %4412 = vmatpush3.bf16.msra.mxu1 %v4833_v0  ;;  %v1033_v28 = vpack.c.bf16 %v904_v13, %v903_v3  ;;  %v926_v27 = vsel %vm6627_vm15, %v918_v31, %v919_v14  ;;  %vm6631_vm15 = vmmov %vm6618_vm0 }
 0x144   :  { %4413 = vmatprep.subr.bf16.mxu1 %v4834_v11  ;;  %v938_v21 = vsel %vm6618_vm0, %v922_v32, %v6628_v61  ;;  %v923_v31 = vsel %vm6631_vm15, %v921_v9, %v922_v32  ;;  %v5663_v0 = vsel %vm355_vm9, %v966_v15, %v967_v48  ;;  %v5667_v61 = vsel %vm355_vm9, %v969_v18, %v970_v58  ;;  %vm3813_vm15 = vmpackc.low %vm4996_vm1, %vm5233_vm3 }
 0x145   :  { %4397 = vmatprep.mubr.bf16.mxu1 %v1033_v28  ;;  %v3811_v43 = vpack.c.bf16 %v5515_v33, %v938_v21  ;;  %v925_v3 = vsel %vm6632_vm2, %v919_v14, %v920_v25  ;;  %v924_v57 = vsel %vm6618_vm0, %v920_v25, %v921_v9  ;;  %v3874_v56 = vpack.c.bf16 %v5663_v0, %v5610_v24  ;;  %v4836_v33 = vld [vmem:[%s6551_s2 + $0x80] sm:$0xff]   ;;  %vm3819_vm3 = vmpackc.low %vm4996_vm1, %vm5267_vm5 }
 0x146   :  { %4398 = vmatmul.mubr.bf16.gmra.mrb[12].mxu1 %v1034_v1  ;;  %v3829_v13 = vpack.c.bf16 %v925_v3, %v926_v27  ;;  %v3832_v15 = vpack.c.bf16 %v923_v31, %v924_v57  ;;  %v972_v32 = vsel %vm355_vm9, %v968_v42, %v969_v18  ;;  %v973_v28 = vsel %vm355_vm9, %v967_v48, %v968_v42  ;;  %v4837_v42 = vld [vmem:[%s6551_s2 + $0x88] sm:$0xff]   ;;  %vm3825_vm5 = vmpackc.low %vm4996_vm1, %vm5302_vm7 }
 0x147   :  { %4414 = vmatpush3.bf16.msra.mxu1 %v4834_v11  ;;  %4417 = vmatprep.mubr.msk.bf16.mxu1 %vm5652_vm14, %v3811_v43  ;;  %v3877_v21 = vpack.c.bf16 %v972_v32, %v973_v28  ;;  %v6633_v14 = vrot.slane %v5489_v5, 1  ;;  %vm3816_vm14 = vmpackc.low %vm4996_vm1, %vm5246_vm4  ;;  %v6635_v48 = vpack.c.bf16 %v5561_v41, %v5549_v36  ;;  %v6636_v5 = vpack.c.bf16 %v5553_v4, %v5565_v44 }
 0x148   :  { %4415 = vmatprep.subr.bf16.mxu1 %v4835_v35  ;;  %vm3822_vm4 = vmpackc.low %vm4996_vm1, %vm5277_vm6  ;;  %v6639_v36 = vpack.c.bf16 %v5519_v49, %v5525_v34  ;;  %vm6642_vm2 = vnez %v6605_v16  ;;  %v4844_v16 = vld [vmem:[%s6553_s6] sm:$0xff]  }
 0x149   :  { %v986_v25 = vsel %vm355_vm9, %v970_v58, %v6633_v14  ;;  %v6634_v58 = vpack.c.bf16 %v5498_v39, %v5509_v30  ;;  %v6637_v39 = vpack.c.bf16 %v5614_v2, %v5595_v54  ;;  %vm3828_vm6 = vmpackc.low %vm4996_vm1, %vm5312_vm8  ;;  %v6638_v30 = vpack.c.bf16 %v5602_v51, %v5618_v20  ;;  %4465 = vmatprep.subr.bf16.mxu0 %v4844_v16  ;;  %v5812_v34 = vld [vmem:[%s6552_s8 + $0x2] ss:$0 sm:$0xff] }
 0x14a   :  { %v3880_v9 = vpack.c.bf16 %v986_v25, %v5667_v61  ;;  %vm3831_vm7 = vmpackc.low %vm4996_vm1, %vm5340_vm10  ;;  %4466 = vmatpush3.bf16.msra.mxu0 %v4844_v16 }
 0x14b   :  { %4416 = vmatpush3.bf16.msra.mxu1 %v4835_v35  ;;  %vm3858_vm8 = vmpackc.low %vm5346_vm11, %vm4996_vm1 }
 0x14c   :  { %4433 = vmatprep.subr.bf16.mxu1 %v4836_v33  ;;  %vm3861_vm10 = vmpackc.low %vm5375_vm12, %vm4996_vm1 }
 0x14d   :  { %vm3864_vm11 = vmpackc.low %vm5384_vm13, %vm4996_vm1  ;;  %vm6646_vm13 = vnez %v6609_v8  ;;  %v4846_v8 = vld [vmem:[%s6553_s6 + $0x10] sm:$0xff]  }
 0x14e   :  { %4418 = vmatmul.mubr.msk.bf16.vlgmr.msra.gmra.mrb[0].mxu1 %vm3813_vm15, %v6634_v58  ;;  %vm3867_vm0 = vmpackc.low %vm6642_vm2, %vm4996_vm1  ;;  %vm6643_vm15 = vnez %v6607_v12  ;;  %v4845_v12 = vld [vmem:[%s6553_s6 + $0x8] sm:$0xff]  }
 0x14f   :  { %4421 = vmatprep.mubr.msk.bf16.mxu1 %vm3816_vm14, %v6635_v48  ;;  %4434 = vmatpush3.bf16.msra.mxu1 %v4836_v33  ;;  %vm3870_vm12 = vmpackc.low %vm6643_vm15, %vm4996_vm1 }
 0x150   :  { %4435 = vmatprep.subr.bf16.mxu1 %v4837_v42  ;;  %vm3873_vm14 = vmpackc.low %vm6646_vm13, %vm4996_vm1  ;;  %4467 = vmatprep.subr.bf16.mxu0 %v4845_v12 }
 0x151   :  { %4468 = vmatpush3.bf16.msra.mxu0 %v4845_v12 }
 0x152   :  { %4469 = vmatprep.subr.bf16.mxu0 %v4846_v8 }
 0x153   :  { %4436 = vmatpush3.bf16.msra.mxu1 %v4837_v42 }
 0x154   :  { %4437 = vmatprep.subr.bf16.mxu1 %v4838_v55 }
 0x155   :  { %4470 = vmatpush3.bf16.msra.mxu0 %v4846_v8 }
 0x156   :  { %4422 = vmatmul.mubr.msk.bf16.gmra.mrb[4].mxu1 %vm3819_vm3, %v6636_v5  ;;  %vm6647_vm3 = vnez %v6611_v45  ;;  %v4847_v45 = vld [vmem:[%s6553_s6 + $0x18] sm:$0xff]  }
 0x157   :  { %4425 = vmatprep.mubr.msk.bf16.mxu1 %vm3822_vm4, %v6637_v39  ;;  %4438 = vmatpush3.bf16.msra.mxu1 %v4838_v55  ;;  %vm3876_vm4 = vmpackc.low %vm6647_vm3, %vm4996_vm1 }
 0x158   :  { %4439 = vmatprep.subr.bf16.mxu1 %v4839_v62  ;;  %4471 = vmatprep.subr.bf16.mxu0 %v4847_v45 }
 0x159   :  { %4472 = vmatpush3.bf16.msra.mxu0 %v4847_v45 }
 0x15b   :  { %4440 = vmatpush3.bf16.msra.mxu1 %v4839_v62 }
 0x15c   :  { %4441 = vmatprep.subr.bf16.mxu1 %v4840_v22 }
 0x15e   :  { %4426 = vmatmul.mubr.msk.bf16.gmra.mrb[8].mxu1 %vm3825_vm5, %v6638_v30  ;;  %vm6648_vm5 = vnez %v6615_v52  ;;  %v4848_v52 = vld [vmem:[%s6553_s6 + $0x20] sm:$0xff]  }
 0x15f   :  { %4429 = vmatprep.mubr.msk.bf16.mxu1 %vm3828_vm6, %v3829_v13  ;;  %4442 = vmatpush3.bf16.msra.mxu1 %v4840_v22  ;;  %vm3879_vm6 = vmpackc.low %vm6648_vm5, %vm4996_vm1 }
 0x160   :  { %4443 = vmatprep.subr.bf16.mxu1 %v4841_v29  ;;  %4473 = vmatprep.subr.bf16.mxu0 %v4848_v52 }
 0x161   :  { %4474 = vmatpush3.bf16.msra.mxu0 %v4848_v52 }
 0x163   :  { %4444 = vmatpush3.bf16.msra.mxu1 %v4841_v29 }
 0x164   :  { %4445 = vmatprep.subr.bf16.mxu1 %v4842_v53 }
 0x166   :  { %4430 = vmatmul.mubr.msk.bf16.gmra.mrb[12].mxu1 %vm3831_vm7, %v3832_v15 }
 0x167   :  { %4446 = vmatpush3.bf16.msra.mxu1 %v4842_v53  ;;  %4449 = vmatprep.mubr.msk.bf16.mxu1 %vm3858_vm8, %v6639_v36 }
 0x168   :  { %4447 = vmatprep.subr.bf16.mxu1 %v4843_v59 }
 0x16b   :  { %4448 = vmatpush3.bf16.msra.mxu1 %v4843_v59 }
 0x16e   :  { %4450 = vmatmul.mubr.msk.bf16.vlgmr.msra.gmra.mrb[0].mxu1 %vm3861_vm10, %v6640_v23 }
 0x16f   :  { %4453 = vmatprep.mubr.msk.bf16.mxu1 %vm3864_vm11, %v6641_v7 }
 0x176   :  { %4454 = vmatmul.mubr.msk.bf16.gmra.mrb[4].mxu1 %vm3867_vm0, %v6644_v47 }
 0x177   :  { %4457 = vmatprep.mubr.msk.bf16.mxu1 %vm3870_vm12, %v6645_v50 }
 0x17e   :  { %4458 = vmatmul.mubr.msk.bf16.gmra.mrb[8].mxu1 %vm3873_vm14, %v3874_v56 }
 0x17f   :  { %4461 = vmatprep.mubr.msk.bf16.mxu1 %vm3876_vm4, %v3877_v21 }
 0x186   :  { %4462 = vmatmul.mubr.msk.bf16.gmra.mrb[12].mxu1 %vm3879_vm6, %v3880_v9 }
 0x241   :  { %v4451_v49 = vpop.f32.mrb[0].mxu1 }
 0x242   :  { %v1531_v60 = vmul.f32 %v4451_v49, %v5807_v40  ;;  %v1449_v4 = vpop.f32.mrb[1].mxu1 }
 0x243   :  { %v1529_v37 = vmul.f32 %v5807_v40, %v1449_v4  ;;  %v4452_v41 = vpop.f32.mrb[2].mxu1 }
 0x244   :  { %v5817_v44 = vadd.f32 %v5812_v34, %v1531_v60  ;;  %v1532_v19 = vmul.f32 %v4452_v41, %v5807_v40  ;;  %v1452_v46 = vpop.f32.mrb[3].mxu1 }
 0x245   :  { %v5821_v51 = vadd.f32 %v5812_v34, %v1529_v37  ;;  %v1530_v54 = vmul.f32 %v5807_v40, %v1452_v46 }
 0x246   :  { %v1580_v10 = vmin.f32 %v5817_v44, 0.0  ;;  %v5826_v24 = vadd.f32 %v5812_v34, %v1532_v19  ;;  %vm1564_vm1 = vcmp.gt.f32.partialorder %v5817_v44, 0.0 }
 0x247   :  { %v1578_v2 = vmin.f32 %v5821_v51, 0.0  ;;  %v5830_v20 = vadd.f32 %v5812_v34, %v1530_v54  ;;  %vm1562_vm7 = vcmp.gt.f32.partialorder %v5821_v51, 0.0 }
 0x248   :  { %v1598_v6 = vmul.f32 1.442695, %v1580_v10  ;;  %v1581_v11 = vmin.f32 %v5826_v24, 0.0  ;;  %vm1565_vm8 = vcmp.gt.f32.partialorder %v5826_v24, 0.0 }
 0x249   :  { %v1594_v17 = vmul.f32 1.442695, %v1578_v2  ;;  %v1579_v18 = vmin.f32 %v5830_v20, 0.0  ;;  %v4455_v1 = vpop.f32.mrb[4].mxu1  ;;  %vm1563_vm10 = vcmp.gt.f32.partialorder %v5830_v20, 0.0 }
 0x24a   :  { %4936 = vpow2.f32 %v1598_v6  ;;  %v1600_v27 = vmul.f32 1.442695, %v1581_v11  ;;  %v1535_v63 = vmul.f32 %v4455_v1, %v5807_v40  ;;  %v1465_v35 = vpop.f32.mrb[5].mxu1 }
 0x24b   :  { %4938 = vpow2.f32 %v1594_v17  ;;  %v1596_v31 = vmul.f32 1.442695, %v1579_v18  ;;  %v1533_v0 = vmul.f32 %v5807_v40, %v1465_v35  ;;  %v4456_v61 = vpop.f32.mrb[6].mxu1  ;;  %v4850_v35 = vld [vmem:[%s6553_s6 + $0x30] sm:$0xff]  }
 0x24c   :  { %4940 = vpow2.f32 %v1600_v27  ;;  %v5837_v43 = vadd.f32 %v5812_v34, %v1535_v63  ;;  %v1536_v3 = vmul.f32 %v4456_v61, %v5807_v40  ;;  %v1468_v57 = vpop.f32.mrb[7].mxu1  ;;  %v4849_v63 = vld [vmem:[%s6553_s6 + $0x28] sm:$0xff]  }
 0x24d   :  { %4942 = vpow2.f32 %v1596_v31  ;;  %v5841_v56 = vadd.f32 %v5812_v34, %v1533_v0  ;;  %v1534_v13 = vmul.f32 %v5807_v40, %v1468_v57  ;;  %4475 = vmatprep.subr.bf16.mxu0 %v4849_v63 }
 0x24e   :  { %v1584_v15 = vmin.f32 %v5837_v43, 0.0  ;;  %v5846_v32 = vadd.f32 %v5812_v34, %v1536_v3  ;;  %vm1568_vm11 = vcmp.gt.f32.partialorder %v5837_v43, 0.0  ;;  %4476 = vmatpush3.bf16.msra.mxu0 %v4849_v63 }
 0x24f   :  { %v1582_v28 = vmin.f32 %v5841_v56, 0.0  ;;  %v5850_v21 = vadd.f32 %v5812_v34, %v1534_v13  ;;  %vm1566_vm2 = vcmp.gt.f32.partialorder %v5841_v56, 0.0  ;;  %4477 = vmatprep.subr.bf16.mxu0 %v4850_v35 }
 0x250   :  { %v1606_v14 = vmul.f32 1.442695, %v1584_v15  ;;  %v1585_v25 = vmin.f32 %v5846_v32, 0.0  ;;  %vm1569_vm0 = vcmp.gt.f32.partialorder %v5846_v32, 0.0 }
 0x251   :  { %v1602_v33 = vmul.f32 1.442695, %v1582_v28  ;;  %v1583_v9 = vmin.f32 %v5850_v21, 0.0  ;;  %v4459_v42 = vpop.f32.mrb[8].mxu1  ;;  %vm1567_vm15 = vcmp.gt.f32.partialorder %v5850_v21, 0.0 }
 0x252   :  { %4944 = vpow2.f32 %v1606_v14  ;;  %v1608_v58 = vmul.f32 1.442695, %v1585_v25  ;;  %v1539_v48 = vmul.f32 %v4459_v42, %v5807_v40  ;;  %v1481_v55 = vpop.f32.mrb[9].mxu1  ;;  %4478 = vmatpush3.bf16.msra.mxu0 %v4850_v35 }
 0x253   :  { %4946 = vpow2.f32 %v1602_v33  ;;  %v1604_v62 = vmul.f32 1.442695, %v1583_v9  ;;  %v1537_v5 = vmul.f32 %v5807_v40, %v1481_v55  ;;  %v4460_v39 = vpop.f32.mrb[10].mxu1 }
 0x254   :  { %v4937_v22 = vpop.eup %4936  ;;  %4948 = vpow2.f32 %v1608_v58  ;;  %v5858_v29 = vadd.f32 %v5812_v34, %v1539_v48  ;;  %v1540_v30 = vmul.f32 %v4460_v39, %v5807_v40  ;;  %v1484_v53 = vpop.f32.mrb[11].mxu1 }
 0x255   :  { %v4939_v59 = vpop.eup %4938  ;;  %v3884_v36 = vadd.f32 -1.0, %v4937_v22  ;;  %4950 = vpow2.f32 %v1604_v62  ;;  %v5862_v23 = vadd.f32 %v5812_v34, %v1537_v5  ;;  %v1538_v7 = vmul.f32 %v5807_v40, %v1484_v53 }
 0x256   :  { %v4941_v47 = vpop.eup %4940  ;;  %v3882_v50 = vadd.f32 -1.0, %v4939_v59  ;;  %v1588_v16 = vmin.f32 %v5858_v29, 0.0  ;;  %v5868_v12 = vadd.f32 %v5812_v34, %v1540_v30  ;;  %vm1572_vm12 = vcmp.gt.f32.partialorder %v5858_v29, 0.0 }
 0x257   :  { %v4943_v8 = vpop.eup %4942  ;;  %v1644_v45 = vsel %vm1564_vm1, %v5817_v44, %v3884_v36  ;;  %v3885_v52 = vadd.f32 -1.0, %v4941_v47  ;;  %v1586_v49 = vmin.f32 %v5862_v23, 0.0  ;;  %v5880_v44 = vadd.f32 %v5812_v34, %v1538_v7 }
 0x258   :  { %1676 = vst [vmem:[#allocation2 + $0x10] sm:$0xff] %v1644_v45  ;;  %v1642_v60 = vsel %vm1562_vm7, %v5821_v51, %v3882_v50  ;;  %v3883_v4 = vadd.f32 -1.0, %v4943_v8  ;;  %v1614_v37 = vmul.f32 1.442695, %v1588_v16  ;;  %v1589_v46 = vmin.f32 %v5868_v12, 0.0  ;;  %v4851_v16 = vld [vmem:[%s6553_s6 + $0x38] sm:$0xff]  }
 0x259   :  { %1674 = vst [vmem:[#allocation2] sm:$0xff] %v1642_v60  ;;  %v1645_v41 = vsel %vm1565_vm8, %v5826_v24, %v3885_v52  ;;  %v1610_v19 = vmul.f32 1.442695, %v1586_v49  ;;  %v4463_v54 = vpop.f32.mrb[12].mxu1  ;;  %v1587_v11 = vmin.f32 %v5880_v44, 0.0  ;;  %vm1570_vm13 = vcmp.gt.f32.partialorder %v5862_v23, 0.0  ;;  %4479 = vmatprep.subr.bf16.mxu0 %v4851_v16 }
 0x25a   :  { %1677 = vst [vmem:[#allocation2 + $0x18] sm:$0xff] %v1645_v41  ;;  %v1643_v10 = vsel %vm1563_vm10, %v5830_v20, %v3883_v4  ;;  %4952 = vpow2.f32 %v1614_v37  ;;  %v1543_v51 = vmul.f32 %v4463_v54, %v5807_v40  ;;  %v1497_v2 = vpop.f32.mrb[13].mxu1  ;;  %v1616_v6 = vmul.f32 1.442695, %v1589_v46  ;;  %4480 = vmatpush3.bf16.msra.mxu0 %v4851_v16 }
 0x25b   :  { %1675 = vst [vmem:[#allocation2 + $0x8] sm:$0xff] %v1643_v10  ;;  %4954 = vpow2.f32 %v1610_v19  ;;  %v4464_v24 = vpop.f32.mrb[14].mxu1  ;;  %v1541_v1 = vmul.f32 %v5807_v40, %v1497_v2  ;;  %v1612_v61 = vmul.f32 1.442695, %v1587_v11  ;;  %vm1573_vm14 = vcmp.gt.f32.partialorder %v5868_v12, 0.0 }
 0x25c   :  { %v4945_v17 = vpop.eup %4944  ;;  %v5887_v18 = vadd.f32 %v5812_v34, %v1543_v51  ;;  %v1544_v20 = vmul.f32 %v4464_v24, %v5807_v40  ;;  %v1500_v27 = vpop.f32.mrb[15].mxu1  ;;  %4956 = vpow2.f32 %v1616_v6  ;;  %vm1571_vm3 = vcmp.gt.f32.partialorder %v5880_v44, 0.0 }
 0x25d   :  { %v4947_v31 = vpop.eup %4946  ;;  %v3888_v0 = vadd.f32 -1.0, %v4945_v17  ;;  %v5900_v15 = vadd.f32 %v5812_v34, %v1541_v1  ;;  %v1542_v28 = vmul.f32 %v5807_v40, %v1500_v27  ;;  %4958 = vpow2.f32 %v1612_v61 }
 0x25e   :  { %v4949_v3 = vpop.eup %4948  ;;  %v3886_v57 = vadd.f32 -1.0, %v4947_v31  ;;  %v1592_v13 = vmin.f32 %v5887_v18, 0.0  ;;  %v5907_v9 = vadd.f32 %v5812_v34, %v1544_v20  ;;  %vm1576_vm4 = vcmp.gt.f32.partialorder %v5887_v18, 0.0 }
 0x25f   :  { %v4951_v14 = vpop.eup %4950  ;;  %v1648_v25 = vsel %vm1568_vm11, %v5837_v43, %v3888_v0  ;;  %v3889_v33 = vadd.f32 -1.0, %v4949_v3  ;;  %v1590_v43 = vmin.f32 %v5900_v15, 0.0  ;;  %vm1574_vm5 = vcmp.gt.f32.partialorder %v5900_v15, 0.0 }
 0x260   :  { %1680 = vst [vmem:[#allocation2 + $0x30] sm:$0xff] %v1648_v25  ;;  %v1646_v42 = vsel %vm1566_vm2, %v5841_v56, %v3886_v57  ;;  %v3887_v40 = vadd.f32 -1.0, %v4951_v14  ;;  %v1622_v58 = vmul.f32 1.442695, %v1592_v13  ;;  %v1593_v55 = vmin.f32 %v5907_v9, 0.0 }
 0x261   :  { %1678 = vst [vmem:[#allocation2 + $0x20] sm:$0xff] %v1646_v42  ;;  %v1649_v48 = vsel %vm1569_vm0, %v5846_v32, %v3889_v33  ;;  %v1692_v62 = vld [vmem:[#allocation2 + $0x10] ss:$2 sm:$0xff]  ;;  %v5919_v56 = vadd.f32 %v5812_v34, %v1542_v28  ;;  %v1708_v30 = vld [vmem:[#allocation2 + $0x11] ss:$2 sm:$0xff]  ;;  %vm1577_vm6 = vcmp.gt.f32.partialorder %v5907_v9, 0.0 }
 0x262   :  { %1681 = vst [vmem:[#allocation2 + $0x38] sm:$0xff] %v1649_v48  ;;  %v1647_v5 = vsel %vm1567_vm15, %v5850_v21, %v3887_v40  ;;  %4960 = vpow2.f32 %v1622_v58  ;;  %v1690_v39 = vld [vmem:[#allocation2] ss:$2 sm:$0xff]  ;;  %v1706_v22 = vld [vmem:[#allocation2 + $0x1] ss:$2 sm:$0xff]  ;;  %v5923_v36 = vmax.f32 %v1692_v62, %v1708_v30  ;;  %vm6657_vm11 = vcmp.lt.s32.totalorder %v5147_v26, 1 }
 0x263   :  { %1679 = vst [vmem:[#allocation2 + $0x28] sm:$0xff] %v1647_v5  ;;  %v1618_v53 = vmul.f32 1.442695, %v1590_v43  ;;  %v1624_v32 = vmul.f32 1.442695, %v1593_v55  ;;  %v5921_v59 = vmax.f32 %v1690_v39, %v1706_v22  ;;  %v1591_v47 = vmin.f32 %v5919_v56, 0.0  ;;  %vm6658_vm0 = vmmov %vm6657_vm11 }
 0x264   :  { %v4953_v7 = vpop.eup %4952  ;;  %vm1575_vm1 = vcmp.gt.f32.partialorder %v5919_v56, 0.0  ;;  %vm6659_vm15 = vmmov %vm6658_vm0 }
 0x265   :  { %v4955_v50 = vpop.eup %4954  ;;  %v3892_v21 = vadd.f32 -1.0, %v4953_v7  ;;  %4962 = vpow2.f32 %v1618_v53  ;;  %v4773_v34 = vpack.i.bf16 %v5923_v36, %v5921_v59  ;;  %v1620_v45 = vmul.f32 1.442695, %v1591_v47 }
 0x266   :  { %v3890_v8 = vadd.f32 -1.0, %v4955_v50  ;;  %4964 = vpow2.f32 %v1624_v32  ;;  %v4957_v52 = vpop.eup %4956  ;;  %v4853_v50 = vld [vmem:[%s6554_s3 + $0x28] sm:$0xff]  }
 0x267   :  { %v1652_v49 = vsel %vm1572_vm12, %v5858_v29, %v3892_v21  ;;  %4774 = vrot.lane.b32.xlu0 %v4773_v34, %s4997_s23  ;;  %v3893_v4 = vadd.f32 -1.0, %v4957_v52  ;;  %4966 = vpow2.f32 %v1620_v45  ;;  %v4959_v37 = vpop.eup %4958  ;;  %vm6660_vm12 = vcmask 523264  }
 0x268   :  { %1684 = vst [vmem:[#allocation2 + $0x50] sm:$0xff] %v1652_v49  ;;  %v1650_v60 = vsel %vm1570_vm13, %v5862_v23, %v3890_v8  ;;  %v3891_v46 = vadd.f32 -1.0, %v4959_v37  ;;  %vm6661_vm13 = vmmov %vm6660_vm12 }
 0x269   :  { %1682 = vst [vmem:[#allocation2 + $0x40] sm:$0xff] %v1650_v60  ;;  %v1696_v41 = vld [vmem:[#allocation2 + $0x30] ss:$2 sm:$0xff]  ;;  %v1712_v19 = vld [vmem:[#allocation2 + $0x31] ss:$2 sm:$0xff]  ;;  %v1653_v29 = vsel %vm1573_vm14, %v5868_v12, %v3893_v4 }
 0x26a   :  { %v1694_v54 = vld [vmem:[#allocation2 + $0x20] ss:$2 sm:$0xff]  ;;  %v1710_v10 = vld [vmem:[#allocation2 + $0x21] ss:$2 sm:$0xff]  ;;  %v1724_v51 = vmax.f32 %v1696_v41, %v1712_v19  ;;  %1685 = vst [vmem:[#allocation2 + $0x58] sm:$0xff] %v1653_v29  ;;  %v1651_v6 = vsel %vm1571_vm3, %v5880_v44, %v3891_v46  ;;  %v4855_v19 = vld [vmem:[%s6554_s3 + $0x38] sm:$0xff]  }
 0x26b   :  { %v1723_v2 = vmax.f32 %v1694_v54, %v1710_v10  ;;  %1683 = vst [vmem:[#allocation2 + $0x48] sm:$0xff] %v1651_v6  ;;  %v4856_v29 = vld [vmem:[%s6554_s3] sm:$0xff]   ;;  %v1888_v46 = vand.u32 7, %v5191_v38  ;;  %v6649_v54 = vld [vmem:[#allocation6_spill] sm:$0xff]  ;;  %v6650_v6 = vld [vmem:[#allocation5_spill] sm:$0xff] }
 0x26c   :  { %v4961_v23 = vpop.eup %4960  ;;  %v1895_v10 = vand.u32 7, %v6649_v54 }
 0x26d   :  { %v3896_v11 = vadd.f32 -1.0, %v4961_v23  ;;  %v4778_v24 = vpack.i.bf16 %v1724_v51, %v1723_v2  ;;  %vm5980_vm8 = vcmp.ne.s32.totalorder %v1888_v46, 0  ;;  %vm6043_vm14 = vcmp.ne.s32.totalorder %v1888_v46, 7 }
 0x26e   :  { %vm5976_vm7 = vcmp.ne.s32.totalorder %v1895_v10, 0  ;;  %vm6050_vm3 = vcmp.ne.s32.totalorder %v1895_v10, 7 }
 0x26f   :  { %v4963_v17 = vpop.eup %4962  ;;  %v1656_v1 = vsel %vm1576_vm4, %v5887_v18, %v3896_v11  ;;  %4779 = vrot.lane.b32.xlu0 %v4778_v24, %s4997_s23  ;;  %v1881_v11 = vand.u32 7, %v6650_v6 }
 0x270   :  { %v4965_v12 = vpop.eup %4964  ;;  %1688 = vst [vmem:[#allocation2 + $0x70] sm:$0xff] %v1656_v1  ;;  %v3894_v20 = vadd.f32 -1.0, %v4963_v17 }
 0x271   :  { %v3897_v27 = vadd.f32 -1.0, %v4965_v12  ;;  %v4967_v63 = vpop.eup %4966  ;;  %v1700_v44 = vld [vmem:[#allocation2 + $0x50] ss:$2 sm:$0xff]  ;;  %v1716_v31 = vld [vmem:[#allocation2 + $0x51] ss:$2 sm:$0xff]  ;;  %vm1999_vm2 = vcmp.ne.s32.totalorder %v1881_v11, 7 }
 0x272   :  { %v1654_v35 = vsel %vm1574_vm5, %v5900_v15, %v3894_v20  ;;  %v3895_v61 = vadd.f32 -1.0, %v4967_v63  ;;  %v1726_v18 = vmax.f32 %v1700_v44, %v1716_v31  ;;  %v1698_v3 = vld [vmem:[#allocation2 + $0x40] ss:$2 sm:$0xff]  ;;  %v1714_v57 = vld [vmem:[#allocation2 + $0x41] ss:$2 sm:$0xff]  ;;  %vm6058_vm5 = vcmp.ne.s32.totalorder %v1881_v11, 0 }
 0x273   :  { %1686 = vst [vmem:[#allocation2 + $0x60] sm:$0xff] %v1654_v35  ;;  %v1657_v0 = vsel %vm1577_vm6, %v5907_v9, %v3897_v27  ;;  %v1725_v28 = vmax.f32 %v1698_v3, %v1714_v57  ;;  %v4852_v9 = vld [vmem:[%s6554_s3 + $0x20] sm:$0xff]  }
 0x274   :  { %1689 = vst [vmem:[#allocation2 + $0x78] sm:$0xff] %v1657_v0  ;;  %v1655_v13 = vsel %vm1575_vm1, %v5919_v56, %v3895_v61  ;;  %4489 = vmatprep.subr.bf16.mxu0 %v4852_v9 }
 0x275   :  { %1687 = vst [vmem:[#allocation2 + $0x68] sm:$0xff] %v1655_v13  ;;  %v4783_v14 = vpack.i.bf16 %v1726_v18, %v1725_v28 }
 0x277   :  { %4784 = vrot.lane.b32.xlu1 %v4783_v14, %s4997_s23  ;;  %v4857_v14 = vld [vmem:[%s6554_s3 + $0x8] sm:$0xff]  }
 0x27b   :  { %v1704_v15 = vld [vmem:[#allocation2 + $0x70] ss:$2 sm:$0xff]  ;;  %v1720_v25 = vld [vmem:[#allocation2 + $0x71] ss:$2 sm:$0xff] }
 0x27c   :  { %v1728_v33 = vmax.f32 %v1704_v15, %v1720_v25  ;;  %v1702_v42 = vld [vmem:[#allocation2 + $0x60] ss:$2 sm:$0xff]  ;;  %v1718_v40 = vld [vmem:[#allocation2 + $0x61] ss:$2 sm:$0xff] }
 0x27d   :  { %v1727_v58 = vmax.f32 %v1702_v42, %v1718_v40 }
 0x27f   :  { %v4788_v48 = vpack.i.bf16 %v1728_v33, %v1727_v58 }
 0x281   :  { %4789 = vrot.lane.b32.xlu1 %v4788_v48, %s4997_s23 }
 0x2d9   :  { %v4775_v43 = vpop.permute.xlu0 %4774 }
 0x2da   :  { %v4777_v55 = vunpack.i.h.bf16 %v4775_v43  ;;  %v4776_v62 = vunpack.i.l.bf16 %v4775_v43 }
 0x2dc   :  { %v1746_v5 = vmax.f32 %v5923_v36, %v4777_v55  ;;  %v1745_v56 = vmax.f32 %v5921_v59, %v4776_v62  ;;  %v4854_v36 = vld [vmem:[%s6554_s3 + $0x30] sm:$0xff]  }
 0x2dd   :  { %v4858_v55 = vld [vmem:[%s6554_s3 + $0x10] sm:$0xff]  }
 0x2de   :  { %v1753_v39 = vpack.c.bf16 %v1746_v5, %v1745_v56  ;;  %v4859_v5 = vld [vmem:[%s6554_s3 + $0x18] sm:$0xff]   ;;  %v6662_v56 = vld [vmem:[#allocation3_spill] sm:$0xff] }
 0x2e0   :  { %4481 = vmatprep.mubr.bf16.mxu0 %v1753_v39  ;;  %v1902_v39 = vand.u32 7, %v6662_v56 }
 0x2e1   :  { %v4780_v22 = vpop.permute.xlu0 %4779 }
 0x2e2   :  { %v4782_v30 = vunpack.i.h.bf16 %v4780_v22  ;;  %v4781_v53 = vunpack.i.l.bf16 %v4780_v22  ;;  %v6663_v22 = vld [vmem:[#allocation7_spill] sm:$0xff]  ;;  %vm6062_vm6 = vcmp.ne.s32.totalorder %v1902_v39, 0 }
 0x2e4   :  { %v1748_v32 = vmax.f32 %v1724_v51, %v4782_v30  ;;  %v1747_v7 = vmax.f32 %v1723_v2, %v4781_v53  ;;  %v1874_v51 = vand.u32 7, %v5147_v26  ;;  %v1909_v30 = vand.u32 7, %v6663_v22  ;;  %v6664_v53 = vld [vmem:[#allocation4_spill] sm:$0xff] }
 0x2e6   :  { %v1754_v47 = vpack.c.bf16 %v1748_v32, %v1747_v7  ;;  %vm5984_vm10 = vcmp.ne.s32.totalorder %v1874_v51, 7  ;;  %v1916_v32 = vand.u32 7, %v6664_v53  ;;  %v6665_v7 = vld [vmem:[#allocation8_spill] sm:$0xff]  ;;  %vm6054_vm4 = vcmp.ne.s32.totalorder %v1874_v51, 0 }
 0x2e7   :  { %vm6066_vm1 = vcmp.ne.s32.totalorder %v1909_v30, 0 }
 0x2e8   :  { %4482 = vmatmul.mubr.bf16.vlgmr.msra.gmra.mrb[16].mxu0 %v1754_v47  ;;  %v1923_v47 = vand.u32 7, %v6665_v7  ;;  %v4862_v7 = vld [vmem:[%s6554_s3 + $0x50] sm:$0xff]  }
 0x2e9   :  { %4490 = vmatpush3.bf16.msra.mxu0 %v4852_v9  ;;  %v4785_v59 = vpop.permute.xlu1 %4784 }
 0x2ea   :  { %4491 = vmatprep.subr.bf16.mxu0 %v4853_v50  ;;  %v4787_v21 = vunpack.i.h.bf16 %v4785_v59  ;;  %v4786_v34 = vunpack.i.l.bf16 %v4785_v59  ;;  %v4868_v59 = vld [vmem:[%s6553_s6 + $0x60] sm:$0xff]  }
 0x2ec   :  { %v1750_v16 = vmax.f32 %v1726_v18, %v4787_v21  ;;  %v1749_v8 = vmax.f32 %v1725_v28, %v4786_v34  ;;  %v2379_v21 = vld [vmem:[%s6552_s8 + $0x3] ss:$0 sm:$0xff] }
 0x2ed   :  { %4492 = vmatpush3.bf16.msra.mxu0 %v4853_v50  ;;  %v4865_v50 = vld [vmem:[%s6553_s6 + $0x48] sm:$0xff]  }
 0x2ee   :  { %4493 = vmatprep.subr.bf16.mxu0 %v4854_v36  ;;  %v1755_v45 = vpack.c.bf16 %v1750_v16, %v1749_v8  ;;  %v2388_v16 = vld [vmem:[%s6552_s8 + $0x4] ss:$0 sm:$0xff] }
 0x2f0   :  { %4485 = vmatprep.mubr.bf16.mxu0 %v1755_v45 }
 0x2f1   :  { %4494 = vmatpush3.bf16.msra.mxu0 %v4854_v36  ;;  %v4860_v36 = vld [vmem:[%s6554_s3 + $0x40] sm:$0xff]  }
 0x2f2   :  { %4495 = vmatprep.subr.bf16.mxu0 %v4855_v19 }
 0x2f3   :  { %v4790_v52 = vpop.permute.xlu1 %4789 }
 0x2f4   :  { %v4792_v49 = vunpack.i.h.bf16 %v4790_v52  ;;  %v4791_v60 = vunpack.i.l.bf16 %v4790_v52 }
 0x2f5   :  { %4496 = vmatpush3.bf16.msra.mxu0 %v4855_v19 }
 0x2f6   :  { %v1752_v4 = vmax.f32 %v1728_v33, %v4792_v49  ;;  %v1751_v37 = vmax.f32 %v1727_v58, %v4791_v60  ;;  %4505 = vmatprep.subr.bf16.mxu0 %v4856_v29 }
 0x2f8   :  { %v1756_v41 = vpack.c.bf16 %v1752_v4, %v1751_v37 }
 0x2fa   :  { %4486 = vmatmul.mubr.bf16.gmra.mrb[20].mxu0 %v1756_v41 }
 0x3bb   :  { %v4483_v2 = vpop.f32.mrb[16].mxu0 }
 0x3bc   :  { %v5971_v23 = vpop.f32.mrb[17].mxu0  ;;  %v1976_v24 = vrot.slane %v4483_v2, 7  ;;  %v2008_v27 = vrot.slane %v4483_v2, 1 }
 0x3bd   :  { %v5974_v17 = vpop.f32.mrb[18].mxu0  ;;  %v1974_v0 = vrot.slane %v5971_v23, 7  ;;  %v2006_v57 = vrot.slane %v5971_v23, 1 }
 0x3be   :  { %v1977_v63 = vrot.slane %v5974_v17, 7  ;;  %v2009_v35 = vrot.slane %v5974_v17, 1  ;;  %v2043_v44 = vpack.c.bf16 %v5974_v17, %v4483_v2  ;;  %v1842_v31 = vpop.f32.mrb[19].mxu0 }
 0x3bf   :  { %v1975_v61 = vrot.slane %v1842_v31, 7  ;;  %v2007_v18 = vrot.slane %v1842_v31, 1  ;;  %v2042_v3 = vpack.c.bf16 %v1842_v31, %v5971_v23 }
 0x3c0   :  { %v1986_v13 = vsel %vm6657_vm11, %v1976_v24, %v1977_v63  ;;  %v6002_v28 = vsel %vm355_vm9, %v2008_v27, %v2009_v35  ;;  %vm6085_vm11 = vcmp.ne.s32.totalorder %v1916_v32, 0 }
 0x3c1   :  { %v1993_v15 = vsel %vm5976_vm7, %v1986_v13, 0.0  ;;  %v1987_v25 = vsel %vm6658_vm0, %v1975_v61, %v1976_v24  ;;  %v6015_v33 = vsel %vm6659_vm15, %v1974_v0, %v1975_v61  ;;  %4497 = vmatprep.mubr.msk.bf16.mxu0 %vm6660_vm12, %v2042_v3  ;;  %v2019_v42 = vsel %vm355_vm9, %v2007_v18, %v2008_v27  ;;  %vm6690_vm12 = vmmov %vm6659_vm15 }
 0x3c2   :  { %v1992_v9 = vsel %vm5980_vm8, %v1987_v25, 0.0  ;;  %v2020_v40 = vsel %vm355_vm9, %v2006_v57, %v2007_v18  ;;  %4498 = vmatmul.mubr.msk.bf16.vlgmr.msra.gmra.mrb[24].mxu0 %vm6661_vm13, %v2043_v44  ;;  %v2023_v43 = vsel %vm1999_vm2, %v2019_v42, 0.0  ;;  %vm6070_vm7 = vcmp.ne.s32.totalorder %v1923_v47, 0  ;;  %vm6691_vm13 = vmmov %vm6690_vm12 }
 0x3c3   :  { %v6027_v58 = vpack.c.bf16 %v1993_v15, %v1992_v9  ;;  %4506 = vmatpush3.bf16.msra.mxu0 %v4856_v29  ;;  %v2022_v48 = vsel %vm5984_vm10, %v2020_v40, 0.0  ;;  %vm6074_vm8 = vcmp.ne.s32.totalorder %v1916_v32, 7  ;;  %vm6078_vm10 = vcmp.ne.s32.totalorder %v1923_v47, 7  ;;  %v4861_v32 = vld [vmem:[%s6554_s3 + $0x48] sm:$0xff]   ;;  %v4863_v47 = vld [vmem:[%s6554_s3 + $0x58] sm:$0xff]  }
 0x3c4   :  { %4507 = vmatprep.subr.bf16.mxu0 %v4857_v14  ;;  %v6034_v62 = vpack.c.bf16 %v2023_v43, %v2022_v48  ;;  %v2024_v4 = vsel %vm6043_vm14, %v6002_v28, 0.0  ;;  %vm6089_vm2 = vcmp.ne.s32.totalorder %v1902_v39, 7  ;;  %vm6093_vm0 = vcmp.ne.s32.totalorder %v1909_v30, 7  ;;  %vm6692_vm14 = vmmov %vm6690_vm12 }
 0x3c5   :  { %v1991_v11 = vsel %vm6058_vm5, %v6015_v33, 0.0  ;;  %vm6694_vm5 = vcmask 523264  }
 0x3c7   :  { %4508 = vmatpush3.bf16.msra.mxu0 %v4857_v14 }
 0x3c8   :  { %4509 = vmatprep.subr.bf16.mxu0 %v4858_v55 }
 0x3cb   :  { %4510 = vmatpush3.bf16.msra.mxu0 %v4858_v55 }
 0x3cc   :  { %4511 = vmatprep.subr.bf16.mxu0 %v4859_v5 }
 0x3cd   :  { %v4487_v8 = vpop.f32.mrb[20].mxu0 }
 0x3ce   :  { %v1855_v37 = vpop.f32.mrb[21].mxu0  ;;  %v1980_v46 = vrot.slane %v4487_v8, 7  ;;  %v2012_v24 = vrot.slane %v4487_v8, 1 }
 0x3cf   :  { %4512 = vmatpush3.bf16.msra.mxu0 %v4859_v5  ;;  %v1978_v10 = vrot.slane %v1855_v37, 7  ;;  %v2010_v51 = vrot.slane %v1855_v37, 1  ;;  %v4488_v2 = vpop.f32.mrb[22].mxu0 }
 0x3d0   :  { %4521 = vmatprep.subr.bf16.mxu0 %v4860_v36  ;;  %v1981_v1 = vrot.slane %v4488_v2, 7  ;;  %v2013_v12 = vrot.slane %v4488_v2, 1  ;;  %v2045_v20 = vpack.c.bf16 %v4488_v2, %v4487_v8  ;;  %v1858_v27 = vpop.f32.mrb[23].mxu0 }
 0x3d1   :  { %v1985_v44 = vsel %vm6659_vm15, %v1977_v63, %v1978_v10  ;;  %v2017_v31 = vsel %vm355_vm9, %v2009_v35, %v2010_v51  ;;  %v1979_v61 = vrot.slane %v1858_v27, 7  ;;  %v2011_v18 = vrot.slane %v1858_v27, 1 }
 0x3d2   :  { %v2025_v3 = vsel %vm6050_vm3, %v2017_v31, 0.0  ;;  %v1982_v13 = vsel %vm6690_vm12, %v1980_v46, %v1981_v1  ;;  %v1989_v28 = vsel %vm6691_vm13, %v1981_v1, %v1974_v0  ;;  %v2014_v63 = vsel %vm355_vm9, %v2012_v24, %v2013_v12  ;;  %vm6693_vm3 = vmmov %vm6690_vm12 }
 0x3d3   :  { %v2258_v17 = vpack.c.bf16 %v2025_v3, %v2024_v4  ;;  %v2021_v35 = vsel %vm355_vm9, %v2013_v12, %v2006_v57  ;;  %v1983_v14 = vsel %vm6692_vm14, %v1979_v61, %v1980_v46  ;;  %v1984_v15 = vsel %vm6693_vm3, %v1978_v10, %v1979_v61 }
 0x3d4   :  { %v2015_v25 = vsel %vm355_vm9, %v2011_v18, %v2012_v24  ;;  %v2016_v0 = vsel %vm355_vm9, %v2010_v51, %v2011_v18  ;;  %v2044_v33 = vpack.c.bf16 %v1858_v27, %v1855_v37  ;;  %v1990_v9 = vsel %vm6054_vm4, %v1989_v28, 0.0  ;;  %vm6695_vm4 = vmmov %vm6694_vm5 }
 0x3d5   :  { %v2030_v23 = vpack.c.bf16 %v1991_v11, %v1990_v9  ;;  %v1994_v57 = vsel %vm6062_vm6, %v1985_v44, 0.0  ;;  %v1995_v42 = vsel %vm6066_vm1, %v1984_v15, 0.0  ;;  %v1996_v40 = vsel %vm6085_vm11, %v1983_v14, 0.0  ;;  %vm6696_vm6 = vmmov %vm6695_vm4 }
 0x3d6   :  { %4501 = vmatprep.mubr.msk.bf16.mxu0 %vm6694_vm5, %v2044_v33  ;;  %v2032_v48 = vpack.c.bf16 %v1995_v42, %v1994_v57  ;;  %v1997_v43 = vsel %vm6070_vm7, %v1982_v13, 0.0  ;;  %v2026_v55 = vsel %vm6089_vm2, %v2016_v0, 0.0  ;;  %v2027_v5 = vsel %vm6093_vm0, %v2015_v25, 0.0  ;;  %vm6697_vm1 = vmmov %vm6695_vm4 }
 0x3d7   :  { %4502 = vmatmul.mubr.msk.bf16.gmra.mrb[28].mxu0 %vm6695_vm4, %v2045_v20  ;;  %v2033_v56 = vpack.c.bf16 %v1997_v43, %v1996_v40  ;;  %v2259_v39 = vpack.c.bf16 %v2027_v5, %v2026_v55  ;;  %v2028_v22 = vsel %vm6074_vm8, %v2014_v63, 0.0  ;;  %v2029_v30 = vsel %vm6078_vm10, %v2021_v35, 0.0  ;;  %vm6698_vm7 = vmmov %vm6697_vm1 }
 0x3d8   :  { %4513 = vmatprep.mubr.msk.bf16.mxu0 %vm6696_vm6, %v2030_v23  ;;  %v2260_v53 = vpack.c.bf16 %v2029_v30, %v2028_v22  ;;  %vm6699_vm8 = vmmov %vm6697_vm1 }
 0x3d9   :  { %vm6700_vm10 = vmmov %vm6697_vm1 }
 0x3da   :  { %vm6701_vm11 = vmmov %vm6697_vm1 }
 0x3db   :  { %vm6702_vm2 = vmmov %vm6697_vm1 }
 0x3dc   :  { %vm6703_vm0 = vmmov %vm6697_vm1 }
 0x3df   :  { %4514 = vmatmul.mubr.msk.bf16.vlgmr.msra.gmra.mrb[24].mxu0 %vm6697_vm1, %v6027_v58  ;;  %v4864_v58 = vld [vmem:[%s6553_s6 + $0x40] sm:$0xff]  }
 0x3e0   :  { %4517 = vmatprep.mubr.msk.bf16.mxu0 %vm6698_vm7, %v2032_v48  ;;  %4522 = vmatpush3.bf16.msra.mxu0 %v4860_v36  ;;  %v4867_v36 = vld [vmem:[%s6553_s6 + $0x58] sm:$0xff]  }
 0x3e1   :  { %4523 = vmatprep.subr.bf16.mxu0 %v4861_v32  ;;  %4537 = vmatprep.subr.bf16.mxu1 %v4864_v58 }
 0x3e2   :  { %4538 = vmatpush3.bf16.msra.mxu1 %v4864_v58 }
 0x3e3   :  { %4539 = vmatprep.subr.bf16.mxu1 %v4865_v50 }
 0x3e4   :  { %4524 = vmatpush3.bf16.msra.mxu0 %v4861_v32 }
 0x3e5   :  { %4525 = vmatprep.subr.bf16.mxu0 %v4862_v7 }
 0x3e6   :  { %4540 = vmatpush3.bf16.msra.mxu1 %v4865_v50  ;;  %v4870_v50 = vld [vmem:[%s6553_s6 + $0x70] sm:$0xff]  }
 0x3e7   :  { %4518 = vmatmul.mubr.msk.bf16.gmra.mrb[28].mxu0 %vm6699_vm8, %v2033_v56 }
 0x3e8   :  { %4526 = vmatpush3.bf16.msra.mxu0 %v4862_v7  ;;  %4529 = vmatprep.mubr.msk.bf16.mxu0 %vm6700_vm10, %v6034_v62  ;;  %v4866_v62 = vld [vmem:[%s6553_s6 + $0x50] sm:$0xff]  }
 0x3e9   :  { %4527 = vmatprep.subr.bf16.mxu0 %v4863_v47  ;;  %4541 = vmatprep.subr.bf16.mxu1 %v4866_v62 }
 0x3ea   :  { %4542 = vmatpush3.bf16.msra.mxu1 %v4866_v62 }
 0x3eb   :  { %4543 = vmatprep.subr.bf16.mxu1 %v4867_v36 }
 0x3ec   :  { %4528 = vmatpush3.bf16.msra.mxu0 %v4863_v47  ;;  %v4869_v47 = vld [vmem:[%s6553_s6 + $0x68] sm:$0xff]  }
 0x3ee   :  { %4544 = vmatpush3.bf16.msra.mxu1 %v4867_v36 }
 0x3ef   :  { %4530 = vmatmul.mubr.msk.bf16.vlgmr.msra.gmra.mrb[24].mxu0 %vm6701_vm11, %v2258_v17  ;;  %4545 = vmatprep.subr.bf16.mxu1 %v4868_v59 }
 0x3f0   :  { %4533 = vmatprep.mubr.msk.bf16.mxu0 %vm6702_vm2, %v2259_v39 }
 0x3f2   :  { %4546 = vmatpush3.bf16.msra.mxu1 %v4868_v59 }
 0x3f3   :  { %4547 = vmatprep.subr.bf16.mxu1 %v4869_v47 }
 0x3f6   :  { %4548 = vmatpush3.bf16.msra.mxu1 %v4869_v47 }
 0x3f7   :  { %4534 = vmatmul.mubr.msk.bf16.gmra.mrb[28].mxu0 %vm6703_vm0, %v2260_v53  ;;  %4549 = vmatprep.subr.bf16.mxu1 %v4870_v50 }
 0x3fa   :  { %4550 = vmatpush3.bf16.msra.mxu1 %v4870_v50 }
 0x4c2   :  { %v4531_v34 = vpop.f32.mrb[24].mxu0 }
 0x4c3   :  { %v2382_v8 = vmul.f32 %v4531_v34, %v2379_v21  ;;  %v2340_v45 = vpop.f32.mrb[25].mxu0 }
 0x4c4   :  { %v2380_v52 = vmul.f32 %v2379_v21, %v2340_v45  ;;  %v4532_v49 = vpop.f32.mrb[26].mxu0 }
 0x4c5   :  { %v2391_v60 = vadd.f32 %v2388_v16, %v2382_v8  ;;  %v2383_v4 = vmul.f32 %v4532_v49, %v2379_v21  ;;  %v2343_v37 = vpop.f32.mrb[27].mxu0 }
 0x4c6   :  { %v2389_v41 = vadd.f32 %v2388_v16, %v2380_v52  ;;  %v2381_v19 = vmul.f32 %v2379_v21, %v2343_v37 }
 0x4c7   :  { %v2407_v29 = vmin.f32 %v2391_v60, 0.0  ;;  %v2392_v46 = vadd.f32 %v2388_v16, %v2383_v4  ;;  %vm2399_vm15 = vcmp.gt.f32.partialorder %v2391_v60, 0.0 }
 0x4c8   :  { %v2405_v10 = vmin.f32 %v2389_v41, 0.0  ;;  %v2390_v51 = vadd.f32 %v2388_v16, %v2381_v19  ;;  %vm2397_vm12 = vcmp.gt.f32.partialorder %v2389_v41, 0.0 }
 0x4c9   :  { %v2417_v2 = vmul.f32 1.442695, %v2407_v29  ;;  %v2408_v11 = vmin.f32 %v2392_v46, 0.0  ;;  %vm2400_vm13 = vcmp.gt.f32.partialorder %v2392_v46, 0.0 }
 0x4ca   :  { %v2413_v24 = vmul.f32 1.442695, %v2405_v10  ;;  %v2406_v1 = vmin.f32 %v2390_v51, 0.0  ;;  %v4535_v12 = vpop.f32.mrb[28].mxu0  ;;  %vm2398_vm14 = vcmp.gt.f32.partialorder %v2390_v51, 0.0  ;;  %v4871_v10 = vld [vmem:[%s6553_s6 + $0x78] sm:$0xff]  }
 0x4cb   :  { %4968 = vpow2.f32 %v2417_v2  ;;  %v2419_v20 = vmul.f32 1.442695, %v2408_v11  ;;  %v2386_v27 = vmul.f32 %v4535_v12, %v2379_v21  ;;  %v2356_v44 = vpop.f32.mrb[29].mxu0  ;;  %4551 = vmatprep.subr.bf16.mxu1 %v4871_v10 }
 0x4cc   :  { %4970 = vpow2.f32 %v2413_v24  ;;  %v2415_v31 = vmul.f32 1.442695, %v2406_v1  ;;  %v2384_v61 = vmul.f32 %v2379_v21, %v2356_v44  ;;  %v4536_v18 = vpop.f32.mrb[30].mxu0  ;;  %4552 = vmatpush3.bf16.msra.mxu1 %v4871_v10 }
 0x4cd   :  { %4972 = vpow2.f32 %v2419_v20  ;;  %v2395_v3 = vadd.f32 %v2388_v16, %v2386_v27  ;;  %v2387_v13 = vmul.f32 %v4536_v18, %v2379_v21  ;;  %v2359_v28 = vpop.f32.mrb[31].mxu0  ;;  %v4872_v27 = vld [vmem:[%s6555_s4 + $0x20] sm:$0xff]  }
 0x4ce   :  { %4974 = vpow2.f32 %v2415_v31  ;;  %v2393_v63 = vadd.f32 %v2388_v16, %v2384_v61  ;;  %v2385_v17 = vmul.f32 %v2379_v21, %v2359_v28  ;;  %4557 = vmatprep.subr.bf16.mxu1 %v4872_v27 }
 0x4cf   :  { %v2411_v35 = vmin.f32 %v2395_v3, 0.0  ;;  %v2396_v14 = vadd.f32 %v2388_v16, %v2387_v13  ;;  %vm2403_vm3 = vcmp.gt.f32.partialorder %v2395_v3, 0.0 }
 0x4d0   :  { %v2409_v15 = vmin.f32 %v2393_v63, 0.0  ;;  %v2394_v25 = vadd.f32 %v2388_v16, %v2385_v17  ;;  %vm2401_vm5 = vcmp.gt.f32.partialorder %v2393_v63, 0.0 }
 0x4d1   :  { %v2425_v0 = vmul.f32 1.442695, %v2411_v35  ;;  %v2412_v33 = vmin.f32 %v2396_v14, 0.0  ;;  %vm2404_vm4 = vcmp.gt.f32.partialorder %v2396_v14, 0.0 }
 0x4d2   :  { %v2421_v9 = vmul.f32 1.442695, %v2409_v15  ;;  %v2410_v23 = vmin.f32 %v2394_v25, 0.0  ;;  %vm2402_vm6 = vcmp.gt.f32.partialorder %v2394_v25, 0.0 }
 0x4d3   :  { %4976 = vpow2.f32 %v2425_v0  ;;  %v2427_v57 = vmul.f32 1.442695, %v2412_v33  ;;  %v4873_v0 = vld [vmem:[%s6555_s4 + $0x28] sm:$0xff]   ;;  %v4874_v33 = vld [vmem:[%s6555_s4 + $0x30] sm:$0xff]  }
 0x4d4   :  { %4978 = vpow2.f32 %v2421_v9  ;;  %v2423_v42 = vmul.f32 1.442695, %v2410_v23  ;;  %v4875_v9 = vld [vmem:[%s6555_s4 + $0x38] sm:$0xff]   ;;  %v4876_v23 = vld [vmem:[%s6555_s4] sm:$0xff]  }
 0x4d5   :  { %v4969_v40 = vpop.eup %4968  ;;  %4980 = vpow2.f32 %v2427_v57  ;;  %v2614_v57 = vand.u32 3, %v5191_v38 }
 0x4d6   :  { %v4971_v48 = vpop.eup %4970  ;;  %v3948_v43 = vadd.f32 -1.0, %v4969_v40  ;;  %4982 = vpow2.f32 %v2423_v42  ;;  %v2621_v42 = vand.u32 3, %v6649_v54  ;;  %v2600_v40 = vand.u32 3, %v5147_v26 }
 0x4d7   :  { %v4973_v55 = vpop.eup %4972  ;;  %v3946_v5 = vadd.f32 -1.0, %v4971_v48  ;;  %v2607_v48 = vand.u32 3, %v6650_v6  ;;  %vm6222_vm7 = vcmp.ne.s32.totalorder %v2614_v57, 3  ;;  %vm6230_vm10 = vcmp.ne.s32.totalorder %v2614_v57, 0 }
 0x4d8   :  { %v4975_v56 = vpop.eup %4974  ;;  %v2439_v39 = vsel %vm2399_vm15, %v2391_v60, %v3948_v43  ;;  %v3949_v22 = vadd.f32 -1.0, %v4973_v55  ;;  %vm6218_vm1 = vcmp.ne.s32.totalorder %v2621_v42, 0  ;;  %vm6226_vm8 = vcmp.ne.s32.totalorder %v2621_v42, 3  ;;  %v2954_v42 = vld [vmem:[%s6552_s8 + $0x6] ss:$0 sm:$0xff] }
 0x4d9   :  { %2464 = vst [vmem:[#allocation2 + $0x10] sm:$0xff] %v2439_v39  ;;  %v2437_v30 = vsel %vm2397_vm12, %v2389_v41, %v3946_v5  ;;  %v3947_v53 = vadd.f32 -1.0, %v4975_v56  ;;  %vm6234_vm11 = vcmp.ne.s32.totalorder %v2600_v40, 0  ;;  %vm6238_vm2 = vcmp.ne.s32.totalorder %v2607_v48, 0 }
 0x4da   :  { %2462 = vst [vmem:[#allocation2] sm:$0xff] %v2437_v30  ;;  %v2440_v32 = vsel %vm2400_vm13, %v2392_v46, %v3949_v22  ;;  %vm6242_vm0 = vcmp.ne.s32.totalorder %v2600_v40, 3  ;;  %vm6246_vm15 = vcmp.ne.s32.totalorder %v2607_v48, 3  ;;  %vm6720_vm12 = vcmp.lt.s32.totalorder %v5147_v26, 1 }
 0x4db   :  { %2465 = vst [vmem:[#allocation2 + $0x18] sm:$0xff] %v2440_v32  ;;  %v2438_v7 = vsel %vm2398_vm14, %v2390_v51, %v3947_v53  ;;  %vm6721_vm13 = vmmov %vm6720_vm12 }
 0x4dc   :  { %2463 = vst [vmem:[#allocation2 + $0x8] sm:$0xff] %v2438_v7  ;;  %vm6722_vm14 = vmmov %vm6720_vm12 }
 0x4dd   :  { %v4977_v58 = vpop.eup %4976 }
 0x4de   :  { %v4979_v62 = vpop.eup %4978  ;;  %v3952_v36 = vadd.f32 -1.0, %v4977_v58 }
 0x4df   :  { %v4981_v59 = vpop.eup %4980  ;;  %v3950_v21 = vadd.f32 -1.0, %v4979_v62 }
 0x4e0   :  { %v4983_v34 = vpop.eup %4982  ;;  %v2443_v16 = vsel %vm2403_vm3, %v2395_v3, %v3952_v36  ;;  %v3953_v8 = vadd.f32 -1.0, %v4981_v59  ;;  %vm6723_vm3 = vcmask 523264  }
 0x4e1   :  { %2468 = vst [vmem:[#allocation2 + $0x30] sm:$0xff] %v2443_v16  ;;  %v2441_v45 = vsel %vm2401_vm5, %v2393_v63, %v3950_v21  ;;  %v3951_v52 = vadd.f32 -1.0, %v4983_v34  ;;  %vm6724_vm5 = vmmov %vm6720_vm12 }
 0x4e2   :  { %2466 = vst [vmem:[#allocation2 + $0x20] sm:$0xff] %v2441_v45  ;;  %v2444_v49 = vsel %vm2404_vm4, %v2396_v14, %v3953_v8  ;;  %v2472_v60 = vld [vmem:[#allocation2 + $0x10] ss:$2 sm:$0xff]  ;;  %v2478_v4 = vld [vmem:[#allocation2 + $0x11] ss:$2 sm:$0xff]  ;;  %vm6725_vm4 = vmmov %vm6723_vm3 }
 0x4e3   :  { %2469 = vst [vmem:[#allocation2 + $0x38] sm:$0xff] %v2444_v49  ;;  %v2442_v37 = vsel %vm2402_vm6, %v2394_v25, %v3951_v52  ;;  %v2470_v41 = vld [vmem:[#allocation2] ss:$2 sm:$0xff]  ;;  %v2477_v19 = vld [vmem:[#allocation2 + $0x1] ss:$2 sm:$0xff]  ;;  %v2482_v29 = vmax.f32 %v2472_v60, %v2478_v4  ;;  %vm6726_vm6 = vmmov %vm6723_vm3 }
 0x4e4   :  { %2467 = vst [vmem:[#allocation2 + $0x28] sm:$0xff] %v2442_v37  ;;  %v2481_v46 = vmax.f32 %v2470_v41, %v2477_v19  ;;  %v4877_v4 = vld [vmem:[%s6555_s4 + $0x8] sm:$0xff]  }
 0x4e6   :  { %v4793_v51 = vpack.i.bf16 %v2482_v29, %v2481_v46 }
 0x4e8   :  { %4794 = vrot.lane.b32.xlu0 %v4793_v51, %s4998_s19 }
 0x4ea   :  { %v2476_v2 = vld [vmem:[#allocation2 + $0x30] ss:$2 sm:$0xff]  ;;  %v2480_v11 = vld [vmem:[#allocation2 + $0x31] ss:$2 sm:$0xff] }
 0x4eb   :  { %v2474_v24 = vld [vmem:[#allocation2 + $0x20] ss:$2 sm:$0xff]  ;;  %v2479_v1 = vld [vmem:[#allocation2 + $0x21] ss:$2 sm:$0xff]  ;;  %v2484_v12 = vmax.f32 %v2476_v2, %v2480_v11 }
 0x4ec   :  { %v2483_v20 = vmax.f32 %v2474_v24, %v2479_v1 }
 0x4ee   :  { %v4798_v44 = vpack.i.bf16 %v2484_v12, %v2483_v20 }
 0x4f0   :  { %4799 = vrot.lane.b32.xlu1 %v4798_v44, %s4998_s19 }
 0x55a   :  { %v4795_v31 = vpop.permute.xlu0 %4794 }
 0x55b   :  { %v4797_v61 = vunpack.i.h.bf16 %v4795_v31  ;;  %v4796_v18 = vunpack.i.l.bf16 %v4795_v31 }
 0x55d   :  { %v2494_v3 = vmax.f32 %v2482_v29, %v4797_v61  ;;  %v2493_v13 = vmax.f32 %v2481_v46, %v4796_v18  ;;  %v4879_v18 = vld [vmem:[%s6555_s4 + $0x18] sm:$0xff]  }
 0x55f   :  { %v2497_v28 = vpack.c.bf16 %v2494_v3, %v2493_v13  ;;  %v4880_v3 = vld [vmem:[%s6555_s4 + $0x40] sm:$0xff]   ;;  %v4881_v13 = vld [vmem:[%s6555_s4 + $0x48] sm:$0xff]  }
 0x561   :  { %4553 = vmatprep.mubr.bf16.mxu1 %v2497_v28  ;;  %v4882_v28 = vld [vmem:[%s6555_s4 + $0x50] sm:$0xff]  }
 0x562   :  { %v4800_v63 = vpop.permute.xlu1 %4799 }
 0x563   :  { %v4802_v17 = vunpack.i.h.bf16 %v4800_v63  ;;  %v4801_v35 = vunpack.i.l.bf16 %v4800_v63  ;;  %v4883_v63 = vld [vmem:[%s6555_s4 + $0x58] sm:$0xff]  }
 0x565   :  { %v2496_v14 = vmax.f32 %v2484_v12, %v4802_v17  ;;  %v2495_v15 = vmax.f32 %v2483_v20, %v4801_v35  ;;  %v4884_v17 = vld [vmem:[%s6553_s6 + $0x80] sm:$0xff]   ;;  %v4999_v35 = vmov 0.0  }
 0x566   :  { %4593 = vmatprep.subr.bf16.mxu0 %v4999_v35 }
 0x567   :  { %v2498_v25 = vpack.c.bf16 %v2496_v14, %v2495_v15  ;;  %4594 = vmatpush3.bf16.msra.mxu0 %v4884_v17  ;;  %v4885_v14 = vld [vmem:[%s6553_s6 + $0x88] sm:$0xff]   ;;  %v4886_v15 = vld [vmem:[%s6553_s6 + $0x90] sm:$0xff]  }
 0x568   :  { %4595 = vmatprep.subr.bf16.mxu0 %v4999_v35 }
 0x569   :  { %4554 = vmatmul.mubr.bf16.vlgmr.msra.gmra.mrb[16].mxu1 %v2498_v25  ;;  %v4887_v25 = vld [vmem:[%s6553_s6 + $0x98] sm:$0xff]  }
 0x56a   :  { %4558 = vmatpush3.bf16.msra.mxu1 %v4872_v27  ;;  %v4878_v27 = vld [vmem:[%s6555_s4 + $0x10] sm:$0xff]  }
 0x56b   :  { %4559 = vmatprep.subr.bf16.mxu1 %v4873_v0  ;;  %4596 = vmatpush3.bf16.msra.mxu0 %v4885_v14 }
 0x56c   :  { %4597 = vmatprep.subr.bf16.mxu0 %v4999_v35 }
 0x56e   :  { %4560 = vmatpush3.bf16.msra.mxu1 %v4873_v0  ;;  %v4888_v0 = vld [vmem:[%s6553_s6 + $0xa0] sm:$0xff]  }
 0x56f   :  { %4561 = vmatprep.subr.bf16.mxu1 %v4874_v33  ;;  %4598 = vmatpush3.bf16.msra.mxu0 %v4886_v15  ;;  %v4923_v15 = vld [vmem:[%s6557_s7 + $0x2c] ss:$16 sps:$4 sm:$0xff]  }
 0x570   :  { %4599 = vmatprep.subr.bf16.mxu0 %v4999_v35 }
 0x572   :  { %4562 = vmatpush3.bf16.msra.mxu1 %v4874_v33  ;;  %v4889_v33 = vld [vmem:[%s6553_s6 + $0xa8] sm:$0xff]  }
 0x573   :  { %4563 = vmatprep.subr.bf16.mxu1 %v4875_v9  ;;  %4600 = vmatpush3.bf16.msra.mxu0 %v4887_v25 }
 0x574   :  { %4601 = vmatprep.subr.bf16.mxu0 %v4999_v35 }
 0x576   :  { %4564 = vmatpush3.bf16.msra.mxu1 %v4875_v9  ;;  %v4890_v9 = vld [vmem:[%s6553_s6 + $0xb0] sm:$0xff]  }
 0x577   :  { %4569 = vmatprep.subr.bf16.mxu1 %v4876_v23  ;;  %4602 = vmatpush3.bf16.msra.mxu0 %v4888_v0 }
 0x578   :  { %4603 = vmatprep.subr.bf16.mxu0 %v4999_v35 }
 0x57b   :  { %4604 = vmatpush3.bf16.msra.mxu0 %v4889_v33  ;;  %v4927_v33 = vld [vmem:[%s6557_s7 + $0x48] ss:$16 sps:$4 sm:$0xff]  }
 0x57c   :  { %4605 = vmatprep.subr.bf16.mxu0 %v4999_v35 }
 0x57f   :  { %4606 = vmatpush3.bf16.msra.mxu0 %v4890_v9  ;;  %v4935_v9 = vld [vmem:[%s6557_s7 + $0x6c] ss:$16 sps:$4 sm:$0xff]  }
 0x580   :  { %4607 = vmatprep.subr.bf16.mxu0 %v4999_v35 }
 0x63c   :  { %v4555_v43 = vpop.f32.mrb[16].mxu1 }
 0x63d   :  { %v2581_v56 = vpop.f32.mrb[17].mxu1  ;;  %v2650_v30 = vrot.slane %v4555_v43, 7  ;;  %v2666_v58 = vrot.slane %v4555_v43, 1 }
 0x63e   :  { %v2648_v53 = vrot.slane %v2581_v56, 7  ;;  %v2664_v32 = vrot.slane %v2581_v56, 1  ;;  %v4556_v7 = vpop.f32.mrb[18].mxu1 }
 0x63f   :  { %v2651_v50 = vrot.slane %v4556_v7, 7  ;;  %v2667_v62 = vrot.slane %v4556_v7, 1  ;;  %v2687_v36 = vpack.c.bf16 %v4556_v7, %v4555_v43  ;;  %v2584_v59 = vpop.f32.mrb[19].mxu1 }
 0x640   :  { %v2649_v21 = vrot.slane %v2584_v59, 7  ;;  %v2665_v34 = vrot.slane %v2584_v59, 1  ;;  %v2686_v16 = vpack.c.bf16 %v2584_v59, %v2581_v56 }
 0x641   :  { %v2652_v45 = vsel %vm6720_vm12, %v2650_v30, %v2651_v50  ;;  %v2655_v52 = vsel %vm6721_vm13, %v2651_v50, %v2648_v53  ;;  %v2668_v49 = vsel %vm355_vm9, %v2666_v58, %v2667_v62  ;;  %v2671_v60 = vsel %vm355_vm9, %v2667_v62, %v2664_v32 }
 0x642   :  { %v2659_v37 = vsel %vm6218_vm1, %v2652_v45, 0.0  ;;  %v2674_v41 = vsel %vm6222_vm7, %v2668_v49, 0.0  ;;  %v2675_v19 = vsel %vm6226_vm8, %v2671_v60, 0.0  ;;  %v2653_v29 = vsel %vm6722_vm14, %v2649_v21, %v2650_v30  ;;  %4565 = vmatprep.mubr.msk.bf16.mxu1 %vm6723_vm3, %v2686_v16  ;;  %vm6727_vm1 = vmmov %vm6723_vm3 }
 0x643   :  { %v2856_v46 = vpack.c.bf16 %v2675_v19, %v2674_v41  ;;  %v2654_v10 = vsel %vm6724_vm5, %v2648_v53, %v2649_v21  ;;  %v2658_v51 = vsel %vm6230_vm10, %v2653_v29, 0.0  ;;  %v2669_v2 = vsel %vm355_vm9, %v2665_v34, %v2666_v58  ;;  %4566 = vmatmul.mubr.msk.bf16.vlgmr.msra.gmra.mrb[20].mxu1 %vm6725_vm4, %v2687_v36  ;;  %vm6728_vm7 = vmmov %vm6727_vm1  ;;  %v4891_v19 = vld [vmem:[%s6553_s6 + $0xb8] sm:$0xff]  }
 0x644   :  { %v2670_v11 = vsel %vm355_vm9, %v2664_v32, %v2665_v34  ;;  %v2677_v24 = vpack.c.bf16 %v2659_v37, %v2658_v51  ;;  %4570 = vmatpush3.bf16.msra.mxu1 %v4876_v23  ;;  %v2656_v1 = vsel %vm6234_vm11, %v2655_v52, 0.0  ;;  %v2657_v12 = vsel %vm6238_vm2, %v2654_v10, 0.0  ;;  %vm6729_vm8 = vmmov %vm6727_vm1  ;;  %v2949_v23 = vld [vmem:[%s6552_s8 + $0x5] ss:$0 sm:$0xff]  ;;  %4608 = vmatpush3.bf16.msra.mxu0 %v4891_v19 }
 0x645   :  { %4571 = vmatprep.subr.bf16.mxu1 %v4877_v4  ;;  %v2676_v20 = vpack.c.bf16 %v2657_v12, %v2656_v1  ;;  %v2672_v44 = vsel %vm6242_vm0, %v2670_v11, 0.0  ;;  %v2673_v31 = vsel %vm6246_vm15, %v2669_v2, 0.0  ;;  %vm5000_vm15 = vmmov 0   ;;  %4649 = vmatprep.subr.bf16.mxu0 %v4999_v35  ;;  %v4893_v12 = vld [vmem:[%s6556_s5 + $0x28] sm:$0xff]   ;;  %vm6738_vm4 = vmmov %vm6724_vm5 }
 0x646   :  { %v2855_v61 = vpack.c.bf16 %v2673_v31, %v2672_v44  ;;  %4609 = vmatprep.mubr.msk.bf16.mxu0 %vm5000_vm15, %v4999_v35 }
 0x647   :  { %4577 = vmatprep.mubr.msk.bf16.mxu1 %vm6726_vm6, %v2676_v20  ;;  %v4894_v20 = vld [vmem:[%s6556_s5 + $0x30] sm:$0xff]   ;;  %vm6739_vm6 = vmmov %vm6727_vm1 }
 0x648   :  { %4572 = vmatpush3.bf16.msra.mxu1 %v4877_v4 }
 0x649   :  { %4573 = vmatprep.subr.bf16.mxu1 %v4878_v27 }
 0x64c   :  { %4574 = vmatpush3.bf16.msra.mxu1 %v4878_v27 }
 0x64d   :  { %4575 = vmatprep.subr.bf16.mxu1 %v4879_v18 }
 0x650   :  { %4576 = vmatpush3.bf16.msra.mxu1 %v4879_v18 }
 0x651   :  { %4581 = vmatprep.subr.bf16.mxu1 %v4880_v3 }
 0x653   :  { %4578 = vmatmul.mubr.msk.bf16.vlgmr.msra.gmra.mrb[20].mxu1 %vm6727_vm1, %v2677_v24  ;;  %v4892_v24 = vld [vmem:[%s6556_s5 + $0x20] sm:$0xff]  }
 0x654   :  { %4582 = vmatpush3.bf16.msra.mxu1 %v4880_v3  ;;  %4589 = vmatprep.mubr.msk.bf16.mxu1 %vm6728_vm7, %v2855_v61 }
 0x655   :  { %4583 = vmatprep.subr.bf16.mxu1 %v4881_v13 }
 0x658   :  { %4584 = vmatpush3.bf16.msra.mxu1 %v4881_v13  ;;  %v4895_v13 = vld [vmem:[%s6556_s5 + $0x38] sm:$0xff]  }
 0x659   :  { %4585 = vmatprep.subr.bf16.mxu1 %v4882_v28 }
 0x65c   :  { %4586 = vmatpush3.bf16.msra.mxu1 %v4882_v28  ;;  %v3110_v28 = vand.u32 1, %v5147_v26 }
 0x65d   :  { %4587 = vmatprep.subr.bf16.mxu1 %v4883_v63 }
 0x65e   :  { %vm6373_vm12 = vcmp.ne.s32.totalorder %v3110_v28, 0  ;;  %vm6381_vm14 = vcmp.ne.s32.totalorder %v3110_v28, 1  ;;  %v4917_v28 = vld [vmem:[%s6557_s7 + $0xc] ss:$16 sps:$4 sm:$0xff]  }
 0x660   :  { %4588 = vmatpush3.bf16.msra.mxu1 %v4883_v63  ;;  %v3117_v63 = vand.u32 1, %v6650_v6  ;;  %v4896_v6 = vld [vmem:[%s6556_s5] sm:$0xff]  }
 0x661   :  { %4613 = vmatprep.subr.bf16.mxu1 %v4999_v35 }
 0x662   :  { %vm6377_vm13 = vcmp.ne.s32.totalorder %v3117_v63, 0  ;;  %vm6385_vm3 = vcmp.ne.s32.totalorder %v3117_v63, 1  ;;  %v4921_v63 = vld [vmem:[%s6557_s7 + $0x28] ss:$16 sps:$4 sm:$0xff]  }
 0x663   :  { %4590 = vmatmul.mubr.msk.bf16.vlgmr.msra.gmra.mrb[20].mxu1 %vm6729_vm8, %v2856_v46 }
 0x664   :  { %4621 = vmatprep.mubr.msk.bf16.mxu1 %vm5000_vm15, %v4999_v35  ;;  %4614 = vmatpush3.bf16.msra.mxu1 %v4892_v24 }
 0x665   :  { %4615 = vmatprep.subr.bf16.mxu1 %v4999_v35 }
 0x668   :  { %4616 = vmatpush3.bf16.msra.mxu1 %v4893_v12 }
 0x669   :  { %4617 = vmatprep.subr.bf16.mxu1 %v4999_v35 }
 0x66c   :  { %4618 = vmatpush3.bf16.msra.mxu1 %v4894_v20 }
 0x66d   :  { %4619 = vmatprep.subr.bf16.mxu1 %v4999_v35 }
 0x670   :  { %4620 = vmatpush3.bf16.msra.mxu1 %v4895_v13  ;;  %v4915_v13 = vld [vmem:[%s6557_s7 + $0x8] ss:$16 sps:$4 sm:$0xff]  }
 0x671   :  { %4625 = vmatprep.subr.bf16.mxu1 %v4999_v35 }
 0x736   :  { %v4591_v57 = vpop.f32.mrb[20].mxu1 }
 0x737   :  { %v2952_v40 = vmul.f32 %v4591_v57, %v2949_v23  ;;  %v2930_v48 = vpop.f32.mrb[21].mxu1 }
 0x738   :  { %v2950_v43 = vmul.f32 %v2949_v23, %v2930_v48  ;;  %v4592_v55 = vpop.f32.mrb[22].mxu1 }
 0x739   :  { %v2957_v5 = vadd.f32 %v2954_v42, %v2952_v40  ;;  %v2953_v56 = vmul.f32 %v4592_v55, %v2949_v23  ;;  %v2933_v39 = vpop.f32.mrb[23].mxu1 }
 0x73a   :  { %v2955_v38 = vadd.f32 %v2954_v42, %v2950_v43  ;;  %v2951_v54 = vmul.f32 %v2949_v23, %v2933_v39  ;;  %v4933_v23 = vld [vmem:[%s6557_s7 + $0x68] ss:$16 sps:$4 sm:$0xff]  }
 0x73b   :  { %v2965_v22 = vmin.f32 %v2957_v5, 0.0  ;;  %v2958_v30 = vadd.f32 %v2954_v42, %v2953_v56  ;;  %vm2961_vm10 = vcmp.gt.f32.partialorder %v2957_v5, 0.0 }
 0x73c   :  { %v2963_v53 = vmin.f32 %v2955_v38, 0.0  ;;  %v2956_v32 = vadd.f32 %v2954_v42, %v2951_v54  ;;  %vm2959_vm11 = vcmp.gt.f32.partialorder %v2955_v38, 0.0 }
 0x73d   :  { %v2971_v7 = vmul.f32 1.442695, %v2965_v22  ;;  %v2966_v47 = vmin.f32 %v2958_v30, 0.0  ;;  %vm2962_vm2 = vcmp.gt.f32.partialorder %v2958_v30, 0.0 }
 0x73e   :  { %v2967_v58 = vmul.f32 1.442695, %v2963_v53  ;;  %v2964_v50 = vmin.f32 %v2956_v32, 0.0  ;;  %vm2960_vm0 = vcmp.gt.f32.partialorder %v2956_v32, 0.0  ;;  %v4897_v53 = vld [vmem:[%s6556_s5 + $0x8] sm:$0xff]  }
 0x73f   :  { %4984 = vpow2.f32 %v2971_v7  ;;  %v2973_v62 = vmul.f32 1.442695, %v2966_v47  ;;  %v4898_v47 = vld [vmem:[%s6556_s5 + $0x10] sm:$0xff]  }
 0x740   :  { %4986 = vpow2.f32 %v2967_v58  ;;  %v2969_v36 = vmul.f32 1.442695, %v2964_v50  ;;  %v4899_v58 = vld [vmem:[%s6556_s5 + $0x18] sm:$0xff]   ;;  %v4900_v50 = vld [vmem:[%s6556_s5 + $0x40] sm:$0xff]  }
 0x741   :  { %4988 = vpow2.f32 %v2973_v62  ;;  %v4901_v62 = vld [vmem:[%s6556_s5 + $0x48] sm:$0xff]  }
 0x742   :  { %4990 = vpow2.f32 %v2969_v36  ;;  %v4902_v36 = vld [vmem:[%s6556_s5 + $0x50] sm:$0xff]  }
 0x749   :  { %v4985_v59 = vpop.eup %4984 }
 0x74a   :  { %v4987_v21 = vpop.eup %4986  ;;  %v4014_v34 = vadd.f32 -1.0, %v4985_v59  ;;  %v4903_v59 = vld [vmem:[%s6556_s5 + $0x58] sm:$0xff]  }
 0x74b   :  { %v4989_v16 = vpop.eup %4988  ;;  %v4012_v8 = vadd.f32 -1.0, %v4987_v21  ;;  %v4904_v21 = vld [vmem:[%s6553_s6 + $0xc0] sm:$0xff]  }
 0x74c   :  { %v4991_v45 = vpop.eup %4990  ;;  %v2981_v52 = vsel %vm2961_vm10, %v2957_v5, %v4014_v34  ;;  %v4015_v49 = vadd.f32 -1.0, %v4989_v16  ;;  %v4905_v34 = vld [vmem:[%s6553_s6 + $0xc8] sm:$0xff]   ;;  %v4906_v16 = vld [vmem:[%s6553_s6 + $0xd0] sm:$0xff]   ;;  %vm6741_vm10 = vmmov %vm6727_vm1 }
 0x74d   :  { %3002 = vst [vmem:[#allocation2 + $0x10] sm:$0xff] %v2981_v52  ;;  %v2979_v60 = vsel %vm2959_vm11, %v2955_v38, %v4012_v8  ;;  %v4013_v4 = vadd.f32 -1.0, %v4991_v45  ;;  %v4907_v8 = vld [vmem:[%s6553_s6 + $0xd8] sm:$0xff]   ;;  %v4908_v45 = vld [vmem:[%s6553_s6 + $0xe0] sm:$0xff]   ;;  %v4909_v52 = vld [vmem:[%s6553_s6 + $0xe8] sm:$0xff]  }
 0x74e   :  { %3000 = vst [vmem:[#allocation2] sm:$0xff] %v2979_v60  ;;  %v2982_v37 = vsel %vm2962_vm2, %v2958_v30, %v4015_v49  ;;  %v4910_v49 = vld [vmem:[%s6553_s6 + $0xf0] sm:$0xff]   ;;  %v3381_v60 = vld [vmem:[%s6552_s8 + $0x7] ss:$0 sm:$0xff]  ;;  %vm6742_vm11 = vmmov %vm6727_vm1 }
 0x74f   :  { %3003 = vst [vmem:[#allocation2 + $0x18] sm:$0xff] %v2982_v37  ;;  %v2980_v41 = vsel %vm2960_vm0, %v2956_v32, %v4013_v4  ;;  %v3384_v37 = vld [vmem:[%s6552_s8 + $0x20] ss:$0 sm:$0xff] }
 0x750   :  { %3001 = vst [vmem:[#allocation2 + $0x8] sm:$0xff] %v2980_v41 }
 0x756   :  { %v3005_v29 = vld [vmem:[#allocation2 + $0x10] ss:$2 sm:$0xff]  ;;  %v3007_v46 = vld [vmem:[#allocation2 + $0x11] ss:$2 sm:$0xff] }
 0x757   :  { %v3004_v10 = vld [vmem:[#allocation2] ss:$2 sm:$0xff]  ;;  %v3006_v51 = vld [vmem:[#allocation2 + $0x1] ss:$2 sm:$0xff]  ;;  %v3009_v2 = vmax.f32 %v3005_v29, %v3007_v46 }
 0x758   :  { %v3008_v11 = vmax.f32 %v3004_v10, %v3006_v51 }
 0x75a   :  { %v4803_v1 = vpack.i.bf16 %v3009_v2, %v3008_v11 }
 0x75c   :  { %4804 = vrot.lane.b32.xlu0 %v4803_v1, %s5001_s17 }
 0x7ce   :  { %v4805_v27 = vpop.permute.xlu0 %4804 }
 0x7cf   :  { %v4807_v44 = vunpack.i.h.bf16 %v4805_v27  ;;  %v4806_v31 = vunpack.i.l.bf16 %v4805_v27 }
 0x7d1   :  { %v3015_v61 = vmax.f32 %v3009_v2, %v4807_v44  ;;  %v3014_v18 = vmax.f32 %v3008_v11, %v4806_v31  ;;  %v4911_v44 = vld [vmem:[%s6553_s6 + $0xf8] sm:$0xff]  }
 0x7d3   :  { %v3016_v3 = vpack.c.bf16 %v3015_v61, %v3014_v18 }
 0x7d5   :  { %4610 = vmatmul.mubr.bf16.vlgmr.msra.gmra.mrb[32].mxu0 %v3016_v3  ;;  %v4914_v3 = vld [vmem:[%s6557_s7 + $0x4] ss:$16 sps:$4 sm:$0xff]  }
 0x7d6   :  { %4665 = vmatprep.mubr.msk.bf16.mxu0 %vm5000_vm15, %v4999_v35  ;;  %4650 = vmatpush3.bf16.msra.mxu0 %v4904_v21 }
 0x7d7   :  { %4651 = vmatprep.subr.bf16.mxu0 %v4999_v35 }
 0x7da   :  { %4652 = vmatpush3.bf16.msra.mxu0 %v4905_v34 }
 0x7db   :  { %4653 = vmatprep.subr.bf16.mxu0 %v4999_v35 }
 0x7de   :  { %4654 = vmatpush3.bf16.msra.mxu0 %v4906_v16 }
 0x7df   :  { %4655 = vmatprep.subr.bf16.mxu0 %v4999_v35 }
 0x7e2   :  { %4656 = vmatpush3.bf16.msra.mxu0 %v4907_v8 }
 0x7e3   :  { %4657 = vmatprep.subr.bf16.mxu0 %v4999_v35 }
 0x7e6   :  { %4658 = vmatpush3.bf16.msra.mxu0 %v4908_v45 }
 0x7e7   :  { %4659 = vmatprep.subr.bf16.mxu0 %v4999_v35 }
 0x7ea   :  { %4660 = vmatpush3.bf16.msra.mxu0 %v4909_v52 }
 0x7eb   :  { %4661 = vmatprep.subr.bf16.mxu0 %v4999_v35 }
 0x7ee   :  { %4662 = vmatpush3.bf16.msra.mxu0 %v4910_v49 }
 0x7ef   :  { %4663 = vmatprep.subr.bf16.mxu0 %v4999_v35 }
 0x7f2   :  { %4664 = vmatpush3.bf16.msra.mxu0 %v4911_v44 }
 0x7f3   :  { %3636 = vmatprep.subr.bf16.mxu0 %v4914_v3 }
 0x8a8   :  { %v3099_v17 = vpop.f32.mrb[32].mxu0 }
 0x8a9   :  { %v4611_v14 = vpop.f32.mrb[33].mxu0  ;;  %v3132_v25 = vrot.slane %v3099_v17, 7  ;;  %v3140_v57 = vrot.slane %v3099_v17, 1 }
 0x8aa   :  { %v3102_v0 = vpop.f32.mrb[34].mxu0 }
 0x8ab   :  { %v3133_v42 = vrot.slane %v3102_v0, 7  ;;  %v3141_v40 = vrot.slane %v3102_v0, 1  ;;  %v3155_v48 = vpack.c.bf16 %v3102_v0, %v3099_v17  ;;  %v4612_v43 = vpop.f32.mrb[35].mxu0  ;;  %v4929_v0 = vld [vmem:[%s6557_s7 + $0x4c] ss:$16 sps:$4 sm:$0xff]  }
 0x8ac   :  { %v4918_v43 = vld [vmem:[%s6557_s7 + $0x20] ss:$16 sps:$4 sm:$0xff]  }
 0x8ad   :  { %v3134_v55 = vsel %vm6724_vm5, %v3132_v25, %v3133_v42  ;;  %v3135_v5 = vsel %vm6738_vm4, %v3133_v42, %v3132_v25  ;;  %v3142_v56 = vsel %vm355_vm9, %v3140_v57, %v3141_v40  ;;  %v3143_v39 = vsel %vm355_vm9, %v3141_v40, %v3140_v57  ;;  %4622 = vmatmul.mubr.msk.bf16.vlgmr.msra.gmra.mrb[24].mxu1 %vm6739_vm6, %v3155_v48  ;;  %vm6740_vm9 = vmmov %vm6727_vm1  ;;  %v4912_v42 = vld [vmem:[%s6557_s7] ss:$16 sps:$4 sm:$0xff]   ;;  %v4920_v48 = vld [vmem:[%s6557_s7 + $0x24] ss:$16 sps:$4 sm:$0xff]  }
 0x8ae   :  { %v3136_v38 = vsel %vm6373_vm12, %v3135_v5, 0.0  ;;  %v3137_v54 = vsel %vm6377_vm13, %v3134_v55, 0.0  ;;  %v3144_v22 = vsel %vm6381_vm14, %v3142_v56, 0.0  ;;  %v3145_v30 = vsel %vm6385_vm3, %v3143_v39, 0.0  ;;  %4626 = vmatpush3.bf16.msra.mxu1 %v4896_v6  ;;  %4633 = vmatprep.mubr.msk.bf16.mxu1 %vm5000_vm15, %v4999_v35  ;;  %v4926_v55 = vld [vmem:[%s6557_s7 + $0x44] ss:$16 sps:$4 sm:$0xff]  }
 0x8af   :  { %v3146_v32 = vpack.c.bf16 %v3137_v54, %v3136_v38  ;;  %v3301_v7 = vpack.c.bf16 %v3145_v30, %v3144_v22  ;;  %4627 = vmatprep.subr.bf16.mxu1 %v4999_v35  ;;  %v4924_v5 = vld [vmem:[%s6557_s7 + $0x40] ss:$16 sps:$4 sm:$0xff]   ;;  %v4932_v56 = vld [vmem:[%s6557_s7 + $0x64] ss:$16 sps:$4 sm:$0xff]   ;;  %v5003_v38 = vmov 0  }
 0x8b0   :  { %v4930_v39 = vld [vmem:[%s6557_s7 + $0x60] ss:$16 sps:$4 sm:$0xff]  }
 0x8b2   :  { %4628 = vmatpush3.bf16.msra.mxu1 %v4897_v53 }
 0x8b3   :  { %4629 = vmatprep.subr.bf16.mxu1 %v4999_v35 }
 0x8b6   :  { %4630 = vmatpush3.bf16.msra.mxu1 %v4898_v47  ;;  %v3543_v47 = vsub.s32 2, %v5147_v26 }
 0x8b7   :  { %4631 = vmatprep.subr.bf16.mxu1 %v4999_v35 }
 0x8ba   :  { %4632 = vmatpush3.bf16.msra.mxu1 %v4899_v58  ;;  %v4097_v58 = vld [vmem:[%s6552_s8 + $0x21] ss:$8 sm:$0xf] }
 0x8bb   :  { %4637 = vmatprep.subr.bf16.mxu1 %v4999_v35 }
 0x8bd   :  { %4634 = vmatmul.mubr.msk.bf16.vlgmr.msra.gmra.mrb[24].mxu1 %vm6740_vm9, %v3146_v32 }
 0x8be   :  { %4638 = vmatpush3.bf16.msra.mxu1 %v4900_v50  ;;  %4645 = vmatprep.mubr.msk.bf16.mxu1 %vm5000_vm15, %v4999_v35  ;;  %v3539_v50 = vsub.s32 1, %v5147_v26 }
 0x8bf   :  { %4639 = vmatprep.subr.bf16.mxu1 %v4999_v35 }
 0x8c0   :  { %v3540_v21 = vrot.slane %v4097_v58, %v3539_v50 }
 0x8c2   :  { %4640 = vmatpush3.bf16.msra.mxu1 %v4901_v62  ;;  %v3547_v62 = vsub.s32 3, %v5147_v26 }
 0x8c3   :  { %4641 = vmatprep.subr.bf16.mxu1 %v4999_v35 }
 0x8c4   :  { %v3548_v34 = vrot.slane %v4097_v58, %v3547_v62 }
 0x8c6   :  { %4642 = vmatpush3.bf16.msra.mxu1 %v4902_v36 }
 0x8c7   :  { %4643 = vmatprep.subr.bf16.mxu1 %v4999_v35 }
 0x8ca   :  { %4644 = vmatpush3.bf16.msra.mxu1 %v4903_v59  ;;  %v3544_v59 = vrot.slane %v4097_v58, %v3543_v47 }
 0x8cb   :  { %3677 = vmatprep.subr.bf16.mxu1 %v4917_v28 }
 0x8cd   :  { %4646 = vmatmul.mubr.msk.bf16.vlgmr.msra.gmra.mrb[24].mxu1 %vm6727_vm1, %v3301_v7  ;;  %v3535_v7 = vsub.s32 0, %v5147_v26 }
 0x8ce   :  { %3678 = vmatpush1.bf16.msra.mxu1 %v4915_v13  ;;  %3709 = vmatprep.mubr.bf16.mxu1 %v5003_v38 }
 0x8cf   :  { %3679 = vmatprep.subr.bf16.mxu1 %v4923_v15  ;;  %v3536_v36 = vrot.slane %v4097_v58, %v3535_v7 }
 0x8d2   :  { %3680 = vmatpush1.bf16.msra.mxu1 %v4921_v63 }
 0x8d3   :  { %3681 = vmatprep.subr.bf16.mxu1 %v4929_v0 }
 0x8d6   :  { %3682 = vmatpush1.bf16.msra.mxu1 %v4927_v33 }
 0x8d7   :  { %3683 = vmatprep.subr.bf16.mxu1 %v4935_v9 }
 0x8da   :  { %3684 = vmatpush1.bf16.msra.mxu1 %v4933_v23 }
 0x9a0   :  { %v3372_v4 = vpop.f32.mrb[24].mxu1 }
 0x9a1   :  { %v3382_v41 = vmul.f32 %v3381_v60, %v3372_v4  ;;  %v4647_v19 = vpop.f32.mrb[25].mxu1 }
 0x9a2   :  { %v3375_v29 = vpop.f32.mrb[26].mxu1 }
 0x9a3   :  { %v3385_v46 = vadd.f32 %v3384_v37, %v3382_v41  ;;  %v3383_v10 = vmul.f32 %v3381_v60, %v3375_v29  ;;  %v4648_v51 = vpop.f32.mrb[27].mxu1 }
 0x9a5   :  { %v3389_v2 = vmin.f32 %v3385_v46, 0.0  ;;  %v3386_v11 = vadd.f32 %v3384_v37, %v3383_v10  ;;  %vm3387_vm7 = vcmp.gt.f32.partialorder %v3385_v46, 0.0 }
 0x9a7   :  { %v3391_v24 = vmul.f32 1.442695, %v3389_v2  ;;  %v3390_v1 = vmin.f32 %v3386_v11, 0.0  ;;  %vm3388_vm8 = vcmp.gt.f32.partialorder %v3386_v11, 0.0 }
 0x9a9   :  { %4992 = vpow2.f32 %v3391_v24  ;;  %v3393_v35 = vmul.f32 1.442695, %v3390_v1 }
 0x9ab   :  { %4994 = vpow2.f32 %v3393_v35 }
 0x9b3   :  { %v4993_v12 = vpop.eup %4992 }
 0x9b4   :  { %v4071_v20 = vadd.f32 -1.0, %v4993_v12 }
 0x9b5   :  { %v4995_v27 = vpop.eup %4994 }
 0x9b6   :  { %v3397_v31 = vsel %vm3387_vm7, %v3385_v46, %v4071_v20  ;;  %v4072_v61 = vadd.f32 -1.0, %v4995_v27 }
 0x9b7   :  { %3416 = vst [vmem:[#allocation2] sm:$0xff] %v3397_v31 }
 0x9b8   :  { %v3398_v18 = vsel %vm3388_vm8, %v3386_v11, %v4072_v61 }
 0x9b9   :  { %3417 = vst [vmem:[#allocation2 + $0x8] sm:$0xff] %v3398_v18 }
 0x9c0   :  { %v3418_v17 = vld [vmem:[#allocation2] ss:$2 sm:$0xff]  ;;  %v3419_v14 = vld [vmem:[#allocation2 + $0x1] ss:$2 sm:$0xff] }
 0x9c1   :  { %v3420_v25 = vmax.f32 %v3418_v17, %v3419_v14 }
 0x9c3   :  { %3421 = vrot.lane.b32.xlu1 %v3420_v25, %s5002_s14 }
 0xa35   :  { %v3422_v6 = vpop.permute.xlu1 %3421 }
 0xa36   :  { %v3423_v57 = vmax.f32 %v3420_v25, %v3422_v6 }
 0xa38   :  { %v3424_v40 = vpack.c.bf16 %v3423_v57, %v3423_v57 }
 0xa3a   :  { %4666 = vmatmul.mubr.bf16.vlgmr.msra.gmra.mrb[36].mxu0 %v3424_v40 }
 0xa3b   :  { %3637 = vmatpush1.bf16.msra.mxu0 %v4912_v42  ;;  %3668 = vmatprep.mubr.bf16.mxu0 %v5003_v38 }
 0xa3c   :  { %3638 = vmatprep.subr.bf16.mxu0 %v4920_v48 }
 0xa3f   :  { %3639 = vmatpush1.bf16.msra.mxu0 %v4918_v43 }
 0xa40   :  { %3640 = vmatprep.subr.bf16.mxu0 %v4926_v55 }
 0xa43   :  { %3641 = vmatpush1.bf16.msra.mxu0 %v4924_v5 }
 0xa44   :  { %3642 = vmatprep.subr.bf16.mxu0 %v4932_v56 }
 0xa47   :  { %3643 = vmatpush1.bf16.msra.mxu0 %v4930_v39 }
 0xb0d   :  { %v3507_v54 = vpop.f32.mrb[36].mxu0 }
 0xb0e   :  { %v3513_v22 = vpack.c.bf16 %v3507_v54, %v3507_v54  ;;  %v4667_v30 = vpop.f32.mrb[37].mxu0 }
 0xb0f   :  { %v3510_v53 = vpop.f32.mrb[38].mxu0 }
 0xb10   :  { %v4668_v32 = vpop.f32.mrb[39].mxu0  ;;  %4114 = vmatmul.mubr.msk.bf16.vlgmr.msra.gmra.mrb[40].mxu0 %vm6741_vm10, %v3513_v22  ;;  %4115 = vmatmul.mubr.msk.bf16.vlgmr.msra.gmra.mrb[28].mxu1 %vm6742_vm11, %v3513_v22 }
 0xbe3   :  { %v3670_v16 = vpop.f32.mrb[40].mxu0  ;;  %v3711_v8 = vpop.f32.mrb[28].mxu1 }
 0xbe4   :  { %v3671_v45 = vadd.f32 %v3670_v16, %v3536_v36  ;;  %v3712_v52 = vadd.f32 %v3711_v8, %v3544_v59  ;;  %v3672_v49 = vpop.f32.mrb[41].mxu0  ;;  %v3713_v60 = vpop.f32.mrb[29].mxu1 }
 0xbe5   :  { %v3673_v4 = vadd.f32 %v3672_v49, %v3540_v21  ;;  %v3714_v37 = vadd.f32 %v3713_v60, %v3548_v34  ;;  %v3674_v41 = vpop.f32.mrb[42].mxu0  ;;  %v3715_v19 = vpop.f32.mrb[30].mxu1 }
 0xbe6   :  { %3718 = vst [vmem:[%s6558_s9] sm:$0xff] %v3671_v45  ;;  %3720 = vst [vmem:[%s6558_s9 + $0x10] sm:$0xff] %v3712_v52  ;;  %v3675_v26 = vpop.f32.mrb[43].mxu0  ;;  %v3716_v29 = vpop.f32.mrb[31].mxu1 }
 0xbe7   :  { %3719 = vst [vmem:[%s6558_s9 + $0x8] sm:$0xff] %v3673_v4  ;;  %3721 = vst [vmem:[%s6558_s9 + $0x18] sm:$0xff] %v3714_v37 }

</bundles_post_ra>
